<compile_context>
chip_gen: v7x
topology: tpu7x:2x2x1
jax: 0.10.0
libtpu: 0.0.40
codegen_flags: <defaults>
</compile_context>

<pallas_src>
import functools

import jax
import jax.numpy as jnp
from jax.experimental import pallas as pl
from jax.experimental.pallas import tpu as pltpu

_VMEM_LIMIT = 32 * 1024 * 1024   # >= v5e's 16 MiB scoped default, safe on v6e/v7x
_TM = 256                        # M-tile for flat matmuls (fits every generation, bf16)
_THW = 512                       # spatial-row tile for the fused deconv kernel
_SLOPE = 0.1                     # LeakyReLU slope used by Real-CUGAN


def _leaky(x):
    return jnp.where(x > 0, x, _SLOPE * x)


# ---------------------------------------------------------------------------
# Kernel 1: 3x3 valid conv on NHWC, one output row per grid step.
# The three input specs deliver rows i, i+1, i+2 (halo without im2col); the
# 9 kernel taps become 9 MXU dots; the kx shift is applied to the f32 result
# (sublane slice) so the bf16 operands are never re-laid-out.
# ---------------------------------------------------------------------------

def _conv3x3_row_kernel(x0_ref, x1_ref, x2_ref, w_ref, b_ref, o_ref, *, act):
    _, _, wo, cout = o_ref.shape
    _, _, w_in, cin = x0_ref.shape
    rows = (x0_ref, x1_ref, x2_ref)
    acc = jnp.zeros((wo, cout), jnp.float32)
    for ky in range(3):
        xk = rows[ky][...].reshape(w_in, cin)                 # (W, Cin) bf16
        for kx in range(3):
            pk = jnp.dot(xk, w_ref[ky * 3 + kx],              # (W, Cout) f32
                         preferred_element_type=jnp.float32)
            acc = acc + pk[kx:kx + wo, :]
    acc = acc + b_ref[...]
    if act == "leaky":
        acc = _leaky(acc)
    o_ref[...] = acc.reshape(1, 1, wo, cout).astype(o_ref.dtype)


def conv3x3(x, w9, b, act="leaky", out_dtype=jnp.bfloat16):
    """x: (N,H,W,Cin) bf16; w9: (9,Cin,Cout) bf16; b: (1,Cout) f32."""
    N, H, W, Cin = x.shape
    Cout = w9.shape[-1]
    Ho, Wo = H - 2, W - 2
    return pl.pallas_call(
        functools.partial(_conv3x3_row_kernel, act=act),
        out_shape=jax.ShapeDtypeStruct((N, Ho, Wo, Cout), out_dtype),
        grid=(N, Ho),
        in_specs=[
            pl.BlockSpec((1, 1, W, Cin), lambda n, i: (n, i, 0, 0)),
            pl.BlockSpec((1, 1, W, Cin), lambda n, i: (n, i + 1, 0, 0)),
            pl.BlockSpec((1, 1, W, Cin), lambda n, i: (n, i + 2, 0, 0)),
            pl.BlockSpec((9, Cin, Cout), lambda n, i: (0, 0, 0)),   # VMEM-resident
            pl.BlockSpec((1, Cout), lambda n, i: (0, 0)),
        ],
        out_specs=pl.BlockSpec((1, 1, Wo, Cout), lambda n, i: (n, i, 0, 0)),
        compiler_params=pltpu.CompilerParams(
            dimension_semantics=("parallel", "parallel"),
            vmem_limit_bytes=_VMEM_LIMIT),
    )(x, x, x, w9, b)


# ---------------------------------------------------------------------------
# Kernel 2: M-tiled (M,K)@(K,N) + bias + optional LeakyReLU.
# Weights/bias use a constant index_map (stay resident); M axis is "parallel".
# ---------------------------------------------------------------------------

def _mm_bias_act_kernel(x_ref, w_ref, b_ref, o_ref, *, act):
    acc = jnp.dot(x_ref[...], w_ref[...], preferred_element_type=jnp.float32)
    acc = acc + b_ref[...]
    if act == "leaky":
        acc = _leaky(acc)
    o_ref[...] = acc.astype(o_ref.dtype)


def matmul_bias_act(x, w, b, act=None, out_dtype=jnp.bfloat16, tm=_TM):
    """x: (M,K) bf16; w: (K,Nd) bf16; b: (1,Nd) f32."""
    M, K = x.shape
    Nd = w.shape[1]
    if M <= tm:
        TM, Mp = M, M
    else:
        TM = tm
        Mp = ((M + TM - 1) // TM) * TM
        x = jnp.pad(x, ((0, Mp - M), (0, 0)))
    out = pl.pallas_call(
        functools.partial(_mm_bias_act_kernel, act=act),
        out_shape=jax.ShapeDtypeStruct((Mp, Nd), out_dtype),
        grid=(Mp // TM,),
        in_specs=[
            pl.BlockSpec((TM, K), lambda i: (i, 0)),
            pl.BlockSpec((K, Nd), lambda i: (0, 0)),
            pl.BlockSpec((1, Nd), lambda i: (0, 0)),
        ],
        out_specs=pl.BlockSpec((TM, Nd), lambda i: (i, 0)),
        compiler_params=pltpu.CompilerParams(
            dimension_semantics=("parallel",),
            vmem_limit_bytes=_VMEM_LIMIT),
    )(x, w, b)
    return out[:M] if Mp != M else out


# ---------------------------------------------------------------------------
# Kernel 3: conv2_up (ConvTranspose2d 2x2 s2, phase decomposition) with the SE
# per-(batch,channel) scale and the x1 skip-add fused in:
#   out = leaky((x * se_scale) @ W_up + b_up) + skip      (all in one pass)
# ---------------------------------------------------------------------------

def _up_fused_kernel(x_ref, s_ref, skip_ref, w_ref, b_ref, o_ref):
    _, t, c = x_ref.shape
    no = o_ref.shape[2]
    x = x_ref[...].reshape(t, c) * s_ref[...].reshape(1, c)          # bf16
    acc = jnp.dot(x, w_ref[...], preferred_element_type=jnp.float32)
    acc = acc + b_ref[...]
    acc = _leaky(acc)
    acc = acc + skip_ref[...].reshape(t, no).astype(jnp.float32)
    o_ref[...] = acc.reshape(1, t, no).astype(o_ref.dtype)


def deconv2x2_fused(x2f, scale3, skip, w, b, out_dtype=jnp.bfloat16, thw=_THW):
    """x2f: (N,HW,C); scale3: (N,1,C); skip: (N,HW,No); w: (C,No); b: (1,No)."""
    N, HW, C = x2f.shape
    No = w.shape[1]
    if HW <= thw:
        T, HWp = HW, HW
    else:
        T = thw
        HWp = ((HW + T - 1) // T) * T
        x2f = jnp.pad(x2f, ((0, 0), (0, HWp - HW), (0, 0)))
        skip = jnp.pad(skip, ((0, 0), (0, HWp - HW), (0, 0)))
    out = pl.pallas_call(
        _up_fused_kernel,
        out_shape=jax.ShapeDtypeStruct((N, HWp, No), out_dtype),
        grid=(N, HWp // T),
        in_specs=[
            pl.BlockSpec((1, T, C), lambda n, i: (n, i, 0)),
            pl.BlockSpec((1, 1, C), lambda n, i: (n, 0, 0)),
            pl.BlockSpec((1, T, No), lambda n, i: (n, i, 0)),
            pl.BlockSpec((C, No), lambda n, i: (0, 0)),
            pl.BlockSpec((1, No), lambda n, i: (0, 0)),
        ],
        out_specs=pl.BlockSpec((1, T, No), lambda n, i: (n, i, 0)),
        compiler_params=pltpu.CompilerParams(
            dimension_semantics=("parallel", "parallel"),
            vmem_limit_bytes=_VMEM_LIMIT),
    )(x2f, scale3, skip, w, b)
    return out[:, :HW, :] if HWp != HW else out


# ---------------------------------------------------------------------------
# Kernel 4: tiny SE squeeze/excite MLP on the (N, C) channel means.
# ---------------------------------------------------------------------------

def _se_mlp_kernel(m_ref, w1_ref, b1_ref, w2_ref, b2_ref, o_ref):
    h = jnp.dot(m_ref[...], w1_ref[...], preferred_element_type=jnp.float32) + b1_ref[...]
    h = jnp.maximum(h, 0.0)
    s = jnp.dot(h, w2_ref[...], preferred_element_type=jnp.float32) + b2_ref[...]
    o_ref[...] = jax.nn.sigmoid(s).astype(o_ref.dtype)


def se_mlp(m, w1, b1, w2, b2):
    N, C = m.shape
    Cr = w1.shape[1]
    return pl.pallas_call(
        _se_mlp_kernel,
        out_shape=jax.ShapeDtypeStruct((N, C), jnp.float32),
        grid=(1,),
        in_specs=[
            pl.BlockSpec((N, C), lambda i: (0, 0)),
            pl.BlockSpec((C, Cr), lambda i: (0, 0)),
            pl.BlockSpec((1, Cr), lambda i: (0, 0)),
            pl.BlockSpec((Cr, C), lambda i: (0, 0)),
            pl.BlockSpec((1, C), lambda i: (0, 0)),
        ],
        out_specs=pl.BlockSpec((N, C), lambda i: (0, 0)),
        compiler_params=pltpu.CompilerParams(vmem_limit_bytes=_VMEM_LIMIT),
    )(m, w1, b1, w2, b2)


# ---------------------------------------------------------------------------
# Weight preparation (runs once, OUTSIDE jit): transposes, reshapes, bf16 cast.
# ---------------------------------------------------------------------------

def prepare_params(p):
    f32, bf16 = jnp.float32, jnp.bfloat16

    def w3x3(w):   # torch (Cout, Cin, 3, 3) -> (9, Cin, Cout), taps ordered (ky, kx)
        cout, cin = w.shape[0], w.shape[1]
        return jnp.transpose(w, (2, 3, 1, 0)).reshape(9, cin, cout).astype(bf16)

    def b_row(b):
        return b.reshape(1, -1).astype(f32)

    pp = {}
    for name in ("c1a", "c1b", "c2a", "c2b", "c3"):
        pp[name + "_w9"] = w3x3(p[name + "_w"])
        pp[name + "_b"] = b_row(p[name + "_b"])

    # conv1_down 2x2 s2 -> space-to-depth matmul; rows ordered (ky, kx, ci)
    w = p["down_w"]
    pp["down_w2d"] = jnp.transpose(w, (2, 3, 1, 0)).reshape(4 * w.shape[1], w.shape[0]).astype(bf16)
    pp["down_b"] = b_row(p["down_b"])

    # SEBlock 1x1 convs
    pp["se1_w"] = p["se1_w"].reshape(p["se1_w"].shape[0], -1).T.astype(f32)   # (C, C/8)
    pp["se1_b"] = b_row(p["se1_b"])
    pp["se2_w"] = p["se2_w"].reshape(p["se2_w"].shape[0], -1).T.astype(f32)   # (C/8, C)
    pp["se2_b"] = b_row(p["se2_b"])

    # conv2_up: ConvTranspose2d(64,64,2,2,0), torch (Cin,Cout,K,K) -> (Cin, 4*Cout)
    w = p["up_w"]
    cin, cout = w.shape[0], w.shape[1]
    pp["up_w2d"] = jnp.transpose(w, (0, 2, 3, 1)).reshape(cin, 4 * cout).astype(bf16)
    pp["up_b"] = jnp.tile(p["up_b"], 4).reshape(1, 4 * cout).astype(f32)

    # conv_bottom: ConvTranspose2d(64,out_nc,5,3,2) -> (Cin, 25*out_nc) columns
    # (ky,kx,co), zero-padded to a multiple of 128 lanes for unmasked stores.
    w = p["cb_w"]
    cin, out_nc = w.shape[0], w.shape[1]
    ncol = 25 * out_nc
    ncol_pad = ((ncol + 127) // 128) * 128
    wm = jnp.transpose(w, (0, 2, 3, 1)).reshape(cin, ncol)
    pp["cb_w2d"] = jnp.pad(wm, ((0, 0), (0, ncol_pad - ncol))).astype(bf16)
    pp["cb_zero_b"] = jnp.zeros((1, ncol_pad), f32)
    pp["cb_b"] = p["cb_b"].astype(f32)
    return pp


# ---------------------------------------------------------------------------
# UNet1x3 forward (deconv=True).  Glue (reshape/transpose/col2im/mean) is pure
# data movement; all FLOPs run in the Pallas kernels above.
# ---------------------------------------------------------------------------

def unet1x3_forward(x_nchw, pp):
    x = jnp.transpose(x_nchw, (0, 2, 3, 1)).astype(jnp.bfloat16)       # NCHW -> NHWC

    # conv1 = UNetConv(in, 32, 64, se=False)
    x1 = conv3x3(x, pp["c1a_w9"], pp["c1a_b"])
    x1 = conv3x3(x1, pp["c1b_w9"], pp["c1b_b"])
    N, H1, W1, C1 = x1.shape

    # conv1_down (2x2 stride 2) + leaky, as space-to-depth + tiled matmul
    Hd, Wd = H1 // 2, W1 // 2
    xs = x1[:, :2 * Hd, :2 * Wd, :].reshape(N, Hd, 2, Wd, 2, C1)
    xs = jnp.transpose(xs, (0, 1, 3, 2, 4, 5)).reshape(N * Hd * Wd, 4 * C1)
    x2 = matmul_bias_act(xs, pp["down_w2d"], pp["down_b"], act="leaky")
    x2 = x2.reshape(N, Hd, Wd, C1)

    # F.pad(x1, (-4,-4,-4,-4)): crop 4 on each border (skip connection)
    x1c = x1[:, 4:-4, 4:-4, :]

    # conv2 = UNetConv(64, 128, 64, se=True)
    x2 = conv3x3(x2, pp["c2a_w9"], pp["c2a_b"])
    x2 = conv3x3(x2, pp["c2b_w9"], pp["c2b_b"])

    # SEBlock: channel mean -> 1x1 -> relu -> 1x1 -> sigmoid (scale applied
    # inside the conv2_up kernel — no rewrite of x2).
    m = jnp.mean(x2.astype(jnp.float32), axis=(1, 2))                  # (N, C)
    scale = se_mlp(m, pp["se1_w"], pp["se1_b"], pp["se2_w"], pp["se2_b"])

    # conv2_up (phase-decomposed deconv) + leaky + fused SE scale + fused skip
    N2, H2, W2, C2 = x2.shape
    HW = H2 * W2
    x2f = x2.reshape(N2, HW, C2)
    sc = scale.astype(jnp.bfloat16).reshape(N2, 1, C2)
    skip = x1c.reshape(N, H2, 2, W2, 2, C1)
    skip = jnp.transpose(skip, (0, 1, 3, 2, 4, 5)).reshape(N, HW, 4 * C1)
    up = deconv2x2_fused(x2f, sc, skip, pp["up_w2d"], pp["up_b"])
    y = up.reshape(N, H2, W2, 2, 2, C1)
    y = jnp.transpose(y, (0, 1, 3, 2, 4, 5)).reshape(N, 2 * H2, 2 * W2, C1)

    # conv3 (3x3) + leaky
    x3 = conv3x3(y, pp["c3_w9"], pp["c3_b"])

    # conv_bottom = ConvTranspose2d(64, out_nc, 5, 3, 2): phase matmul + col2im
    out_nc = pp["cb_b"].shape[0]
    N3, H3, W3, C3 = x3.shape
    t = matmul_bias_act(x3.reshape(N3 * H3 * W3, C3), pp["cb_w2d"], pp["cb_zero_b"],
                        act=None, out_dtype=jnp.float32)
    t = t[:, :25 * out_nc].reshape(N3, H3, W3, 5, 5, out_nc)
    Ht, Wt = 3 * (H3 - 1) + 5, 3 * (W3 - 1) + 5
    z = jnp.zeros((N3, Ht, Wt, out_nc), jnp.float32)
    for ky in range(5):
        for kx in range(5):
            z = z.at[:, ky:ky + 3 * (H3 - 1) + 1:3,
                        kx:kx + 3 * (W3 - 1) + 1:3, :].add(t[:, :, :, ky, kx, :])
    z = z[:, 2:Ht - 2, 2:Wt - 2, :] + pp["cb_b"].reshape(1, 1, 1, out_nc)

    return jnp.transpose(z, (0, 3, 1, 2))                              # NHWC -> NCHW


# ---------------------------------------------------------------------------
# Deterministic parameter init (kaiming-normal-like, synthetic — no checkpoint)
# ---------------------------------------------------------------------------

def _init_params(key, in_nc=3, out_nc=3):
    keys = jax.random.split(key, 32)
    ki = iter(range(32))

    def kaiming(shape, fan_out):
        std = (2.0 / fan_out) ** 0.5
        return jax.random.normal(keys[next(ki)], shape, jnp.float32) * std

    def bias(shape):
        return jax.random.normal(keys[next(ki)], shape, jnp.float32) * 0.05

    p = {}
    p["c1a_w"] = kaiming((32, in_nc, 3, 3), 32 * 9);   p["c1a_b"] = bias((32,))
    p["c1b_w"] = kaiming((64, 32, 3, 3), 64 * 9);      p["c1b_b"] = bias((64,))
    p["down_w"] = kaiming((64, 64, 2, 2), 64 * 4);     p["down_b"] = bias((64,))
    p["c2a_w"] = kaiming((128, 64, 3, 3), 128 * 9);    p["c2a_b"] = bias((128,))
    p["c2b_w"] = kaiming((64, 128, 3, 3), 64 * 9);     p["c2b_b"] = bias((64,))
    p["se1_w"] = kaiming((8, 64, 1, 1), 8);            p["se1_b"] = bias((8,))
    p["se2_w"] = kaiming((64, 8, 1, 1), 64);           p["se2_b"] = bias((64,))
    p["up_w"] = kaiming((64, 64, 2, 2), 64 * 4);       p["up_b"] = bias((64,))
    p["c3_w"] = kaiming((64, 64, 3, 3), 64 * 9);       p["c3_b"] = bias((64,))
    p["cb_w"] = kaiming((64, out_nc, 5, 5), 64 * 25);  p["cb_b"] = bias((out_nc,))
    return p


if __name__ == "__main__":
    key = jax.random.PRNGKey(0)
    kp, kx = jax.random.split(key)

    in_nc, out_nc = 3, 3
    params = _init_params(kp, in_nc=in_nc, out_nc=out_nc)
    pp = prepare_params(params)              # weight prep happens outside jit

    # Input (NCHW, like PyTorch): batch=2, channels=3, spatial=16
    x = jax.random.normal(kx, (2, in_nc, 16, 16), jnp.float32)

    fwd = jax.jit(unet1x3_forward)
    z = fwd(x, pp)
    jax.block_until_ready(z)

    # With H=W=16 and deconv=True: output spatial = 3*(H-14) - 2 = 4
    assert z.shape == (2, out_nc, 4, 4), z.shape
    assert bool(jnp.all(jnp.isfinite(z)))
    print("KERNEL_OK")
</pallas_src>

<mosaic_0001>
module attributes {stable_mosaic.version = 11 : i64} {
  func.func @_conv3x3_row_kernel(%arg0: i32, %arg1: i32, %arg2: memref<1x1x16x3xbf16, #tpu.memory_space<vmem>>, %arg3: memref<1x1x16x3xbf16, #tpu.memory_space<vmem>>, %arg4: memref<1x1x16x3xbf16, #tpu.memory_space<vmem>>, %arg5: memref<9x3x32xbf16, #tpu.memory_space<vmem>>, %arg6: memref<1x32xf32, #tpu.memory_space<vmem>>, %arg7: memref<1x1x14x32xbf16, #tpu.memory_space<vmem>>) attributes {dimension_semantics = [#tpu.dimension_semantics<parallel>, #tpu.dimension_semantics<parallel>], iteration_bounds = array<i64: 2, 14>, scalar_prefetch = 0 : i64, scratch_operands = 0 : i64, tpu.core_type = #tpu.core_type<tc>, window_params = [{transform_indices = @transform_0, window_bounds = array<i64: 1, 1, 16, 3>}, {transform_indices = @transform_1, window_bounds = array<i64: 1, 1, 16, 3>}, {transform_indices = @transform_2, window_bounds = array<i64: 1, 1, 16, 3>}, {pipeline_mode = #tpu.pipeline_mode<synchronous>, transform_indices = @transform_3, window_bounds = array<i64: 9, 3, 32>}, {pipeline_mode = #tpu.pipeline_mode<synchronous>, transform_indices = @transform_4, window_bounds = array<i64: 1, 32>}, {transform_indices = @transform_5, window_bounds = array<i64: 1, 1, 14, 32>}]} {
    %cst = arith.constant 0.000000e+00 : f32
    %0 = vector.broadcast %cst : f32 to vector<14x32xf32>
    %c0 = arith.constant 0 : index
    %c0_0 = arith.constant 0 : index
    %c0_1 = arith.constant 0 : index
    %c0_2 = arith.constant 0 : index
    %1 = vector.load %arg2[%c0, %c0_0, %c0_1, %c0_2] : memref<1x1x16x3xbf16, #tpu.memory_space<vmem>>, vector<1x1x16x3xbf16>
    %2 = vector.shape_cast %1 : vector<1x1x16x3xbf16> to vector<16x3xbf16>
    %c0_3 = arith.constant 0 : index
    %c0_4 = arith.constant 0 : index
    %c0_5 = arith.constant 0 : index
    %3 = vector.load %arg5[%c0_3, %c0_4, %c0_5] : memref<9x3x32xbf16, #tpu.memory_space<vmem>>, vector<1x3x32xbf16>
    %4 = vector.shape_cast %3 : vector<1x3x32xbf16> to vector<3x32xbf16>
    %cst_6 = arith.constant dense<0.000000e+00> : vector<16x32xf32>
    %5 = tpu.matmul %2, %4, %cst_6 {dimension_numbers = #tpu.dot_dimension_numbers<[1], [0], [0], [1], [0, 0, 1, 1], [], []>} : vector<16x3xbf16>, vector<3x32xbf16>, vector<16x32xf32> -> vector<16x32xf32>
    %6 = vector.extract_strided_slice %5 {offsets = [0, 0], sizes = [14, 32], strides = [1, 1]} : vector<16x32xf32> to vector<14x32xf32>
    %7 = arith.addf %0, %6 : vector<14x32xf32>
    %c1 = arith.constant 1 : index
    %c0_7 = arith.constant 0 : index
    %c0_8 = arith.constant 0 : index
    %8 = vector.load %arg5[%c1, %c0_7, %c0_8] : memref<9x3x32xbf16, #tpu.memory_space<vmem>>, vector<1x3x32xbf16>
    %9 = vector.shape_cast %8 : vector<1x3x32xbf16> to vector<3x32xbf16>
    %cst_9 = arith.constant dense<0.000000e+00> : vector<16x32xf32>
    %10 = tpu.matmul %2, %9, %cst_9 {dimension_numbers = #tpu.dot_dimension_numbers<[1], [0], [0], [1], [0, 0, 1, 1], [], []>} : vector<16x3xbf16>, vector<3x32xbf16>, vector<16x32xf32> -> vector<16x32xf32>
    %11 = vector.extract_strided_slice %10 {offsets = [1, 0], sizes = [14, 32], strides = [1, 1]} : vector<16x32xf32> to vector<14x32xf32>
    %12 = arith.addf %7, %11 : vector<14x32xf32>
    %c2 = arith.constant 2 : index
    %c0_10 = arith.constant 0 : index
    %c0_11 = arith.constant 0 : index
    %13 = vector.load %arg5[%c2, %c0_10, %c0_11] : memref<9x3x32xbf16, #tpu.memory_space<vmem>>, vector<1x3x32xbf16>
    %14 = vector.shape_cast %13 : vector<1x3x32xbf16> to vector<3x32xbf16>
    %cst_12 = arith.constant dense<0.000000e+00> : vector<16x32xf32>
    %15 = tpu.matmul %2, %14, %cst_12 {dimension_numbers = #tpu.dot_dimension_numbers<[1], [0], [0], [1], [0, 0, 1, 1], [], []>} : vector<16x3xbf16>, vector<3x32xbf16>, vector<16x32xf32> -> vector<16x32xf32>
    %16 = vector.extract_strided_slice %15 {offsets = [2, 0], sizes = [14, 32], strides = [1, 1]} : vector<16x32xf32> to vector<14x32xf32>
    %17 = arith.addf %12, %16 : vector<14x32xf32>
    %c0_13 = arith.constant 0 : index
    %c0_14 = arith.constant 0 : index
    %c0_15 = arith.constant 0 : index
    %c0_16 = arith.constant 0 : index
    %18 = vector.load %arg3[%c0_13, %c0_14, %c0_15, %c0_16] : memref<1x1x16x3xbf16, #tpu.memory_space<vmem>>, vector<1x1x16x3xbf16>
    %19 = vector.shape_cast %18 : vector<1x1x16x3xbf16> to vector<16x3xbf16>
    %c3 = arith.constant 3 : index
    %c0_17 = arith.constant 0 : index
    %c0_18 = arith.constant 0 : index
    %20 = vector.load %arg5[%c3, %c0_17, %c0_18] : memref<9x3x32xbf16, #tpu.memory_space<vmem>>, vector<1x3x32xbf16>
    %21 = vector.shape_cast %20 : vector<1x3x32xbf16> to vector<3x32xbf16>
    %cst_19 = arith.constant dense<0.000000e+00> : vector<16x32xf32>
    %22 = tpu.matmul %19, %21, %cst_19 {dimension_numbers = #tpu.dot_dimension_numbers<[1], [0], [0], [1], [0, 0, 1, 1], [], []>} : vector<16x3xbf16>, vector<3x32xbf16>, vector<16x32xf32> -> vector<16x32xf32>
    %23 = vector.extract_strided_slice %22 {offsets = [0, 0], sizes = [14, 32], strides = [1, 1]} : vector<16x32xf32> to vector<14x32xf32>
    %24 = arith.addf %17, %23 : vector<14x32xf32>
    %c4 = arith.constant 4 : index
    %c0_20 = arith.constant 0 : index
    %c0_21 = arith.constant 0 : index
    %25 = vector.load %arg5[%c4, %c0_20, %c0_21] : memref<9x3x32xbf16, #tpu.memory_space<vmem>>, vector<1x3x32xbf16>
    %26 = vector.shape_cast %25 : vector<1x3x32xbf16> to vector<3x32xbf16>
    %cst_22 = arith.constant dense<0.000000e+00> : vector<16x32xf32>
    %27 = tpu.matmul %19, %26, %cst_22 {dimension_numbers = #tpu.dot_dimension_numbers<[1], [0], [0], [1], [0, 0, 1, 1], [], []>} : vector<16x3xbf16>, vector<3x32xbf16>, vector<16x32xf32> -> vector<16x32xf32>
    %28 = vector.extract_strided_slice %27 {offsets = [1, 0], sizes = [14, 32], strides = [1, 1]} : vector<16x32xf32> to vector<14x32xf32>
    %29 = arith.addf %24, %28 : vector<14x32xf32>
    %c5 = arith.constant 5 : index
    %c0_23 = arith.constant 0 : index
    %c0_24 = arith.constant 0 : index
    %30 = vector.load %arg5[%c5, %c0_23, %c0_24] : memref<9x3x32xbf16, #tpu.memory_space<vmem>>, vector<1x3x32xbf16>
    %31 = vector.shape_cast %30 : vector<1x3x32xbf16> to vector<3x32xbf16>
    %cst_25 = arith.constant dense<0.000000e+00> : vector<16x32xf32>
    %32 = tpu.matmul %19, %31, %cst_25 {dimension_numbers = #tpu.dot_dimension_numbers<[1], [0], [0], [1], [0, 0, 1, 1], [], []>} : vector<16x3xbf16>, vector<3x32xbf16>, vector<16x32xf32> -> vector<16x32xf32>
    %33 = vector.extract_strided_slice %32 {offsets = [2, 0], sizes = [14, 32], strides = [1, 1]} : vector<16x32xf32> to vector<14x32xf32>
    %34 = arith.addf %29, %33 : vector<14x32xf32>
    %c0_26 = arith.constant 0 : index
    %c0_27 = arith.constant 0 : index
    %c0_28 = arith.constant 0 : index
    %c0_29 = arith.constant 0 : index
    %35 = vector.load %arg4[%c0_26, %c0_27, %c0_28, %c0_29] : memref<1x1x16x3xbf16, #tpu.memory_space<vmem>>, vector<1x1x16x3xbf16>
    %36 = vector.shape_cast %35 : vector<1x1x16x3xbf16> to vector<16x3xbf16>
    %c6 = arith.constant 6 : index
    %c0_30 = arith.constant 0 : index
    %c0_31 = arith.constant 0 : index
    %37 = vector.load %arg5[%c6, %c0_30, %c0_31] : memref<9x3x32xbf16, #tpu.memory_space<vmem>>, vector<1x3x32xbf16>
    %38 = vector.shape_cast %37 : vector<1x3x32xbf16> to vector<3x32xbf16>
    %cst_32 = arith.constant dense<0.000000e+00> : vector<16x32xf32>
    %39 = tpu.matmul %36, %38, %cst_32 {dimension_numbers = #tpu.dot_dimension_numbers<[1], [0], [0], [1], [0, 0, 1, 1], [], []>} : vector<16x3xbf16>, vector<3x32xbf16>, vector<16x32xf32> -> vector<16x32xf32>
    %40 = vector.extract_strided_slice %39 {offsets = [0, 0], sizes = [14, 32], strides = [1, 1]} : vector<16x32xf32> to vector<14x32xf32>
    %41 = arith.addf %34, %40 : vector<14x32xf32>
    %c7 = arith.constant 7 : index
    %c0_33 = arith.constant 0 : index
    %c0_34 = arith.constant 0 : index
    %42 = vector.load %arg5[%c7, %c0_33, %c0_34] : memref<9x3x32xbf16, #tpu.memory_space<vmem>>, vector<1x3x32xbf16>
    %43 = vector.shape_cast %42 : vector<1x3x32xbf16> to vector<3x32xbf16>
    %cst_35 = arith.constant dense<0.000000e+00> : vector<16x32xf32>
    %44 = tpu.matmul %36, %43, %cst_35 {dimension_numbers = #tpu.dot_dimension_numbers<[1], [0], [0], [1], [0, 0, 1, 1], [], []>} : vector<16x3xbf16>, vector<3x32xbf16>, vector<16x32xf32> -> vector<16x32xf32>
    %45 = vector.extract_strided_slice %44 {offsets = [1, 0], sizes = [14, 32], strides = [1, 1]} : vector<16x32xf32> to vector<14x32xf32>
    %46 = arith.addf %41, %45 : vector<14x32xf32>
    %c8 = arith.constant 8 : index
    %c0_36 = arith.constant 0 : index
    %c0_37 = arith.constant 0 : index
    %47 = vector.load %arg5[%c8, %c0_36, %c0_37] : memref<9x3x32xbf16, #tpu.memory_space<vmem>>, vector<1x3x32xbf16>
    %48 = vector.shape_cast %47 : vector<1x3x32xbf16> to vector<3x32xbf16>
    %cst_38 = arith.constant dense<0.000000e+00> : vector<16x32xf32>
    %49 = tpu.matmul %36, %48, %cst_38 {dimension_numbers = #tpu.dot_dimension_numbers<[1], [0], [0], [1], [0, 0, 1, 1], [], []>} : vector<16x3xbf16>, vector<3x32xbf16>, vector<16x32xf32> -> vector<16x32xf32>
    %50 = vector.extract_strided_slice %49 {offsets = [2, 0], sizes = [14, 32], strides = [1, 1]} : vector<16x32xf32> to vector<14x32xf32>
    %51 = arith.addf %46, %50 : vector<14x32xf32>
    %c0_39 = arith.constant 0 : index
    %c0_40 = arith.constant 0 : index
    %52 = vector.load %arg6[%c0_39, %c0_40] : memref<1x32xf32, #tpu.memory_space<vmem>>, vector<1x32xf32>
    %53 = vector.broadcast %52 : vector<1x32xf32> to vector<14x32xf32>
    %54 = arith.addf %51, %53 : vector<14x32xf32>
    %cst_41 = arith.constant 0.000000e+00 : f32
    %55 = vector.broadcast %cst_41 : f32 to vector<14x32xf32>
    %56 = arith.cmpf ogt, %54, %55 : vector<14x32xf32>
    %cst_42 = arith.constant 1.000000e-01 : f32
    %57 = vector.broadcast %cst_42 : f32 to vector<14x32xf32>
    %58 = arith.mulf %57, %54 : vector<14x32xf32>
    %59 = arith.select %56, %54, %58 : vector<14x32xi1>, vector<14x32xf32>
    %60 = vector.shape_cast %59 : vector<14x32xf32> to vector<1x1x14x32xf32>
    %61 = arith.truncf %60 : vector<1x1x14x32xf32> to vector<1x1x14x32xbf16>
    %c0_43 = arith.constant 0 : index
    %c0_44 = arith.constant 0 : index
    %c0_45 = arith.constant 0 : index
    %c0_46 = arith.constant 0 : index
    %62 = vector.load %arg7[%c0_43, %c0_44, %c0_45, %c0_46] : memref<1x1x14x32xbf16, #tpu.memory_space<vmem>>, vector<1x1x14x32xbf16>
    tpu.vector_store %arg7[%c0_43, %c0_44, %c0_45, %c0_46], %61 {strides = array<i32>} : memref<1x1x14x32xbf16, #tpu.memory_space<vmem>>, vector<1x1x14x32xbf16>,
    return
  }
  func.func @transform_0(%arg0: i32, %arg1: i32) -> (i32, i32, i32, i32) {
    %c0_i32 = arith.constant 0 : i32
    %c0_i32_0 = arith.constant 0 : i32
    %c0_i32_1 = arith.constant 0 : i32
    return %arg0, %arg1, %c0_i32, %c0_i32_0 : i32, i32, i32, i32
  }
  func.func @transform_1(%arg0: i32, %arg1: i32) -> (i32, i32, i32, i32) {
    %c1_i32 = arith.constant 1 : i32
    %0 = arith.addi %arg1, %c1_i32 : i32
    %c0_i32 = arith.constant 0 : i32
    %c0_i32_0 = arith.constant 0 : i32
    %c0_i32_1 = arith.constant 0 : i32
    return %arg0, %0, %c0_i32, %c0_i32_0 : i32, i32, i32, i32
  }
  func.func @transform_2(%arg0: i32, %arg1: i32) -> (i32, i32, i32, i32) {
    %c2_i32 = arith.constant 2 : i32
    %0 = arith.addi %arg1, %c2_i32 : i32
    %c0_i32 = arith.constant 0 : i32
    %c0_i32_0 = arith.constant 0 : i32
    %c0_i32_1 = arith.constant 0 : i32
    return %arg0, %0, %c0_i32, %c0_i32_0 : i32, i32, i32, i32
  }
  func.func @transform_3(%arg0: i32, %arg1: i32) -> (i32, i32, i32) {
    %c0_i32 = arith.constant 0 : i32
    %c0_i32_0 = arith.constant 0 : i32
    %c0_i32_1 = arith.constant 0 : i32
    %c0_i32_2 = arith.constant 0 : i32
    return %c0_i32, %c0_i32_0, %c0_i32_1 : i32, i32, i32
  }
  func.func @transform_4(%arg0: i32, %arg1: i32) -> (i32, i32) {
    %c0_i32 = arith.constant 0 : i32
    %c0_i32_0 = arith.constant 0 : i32
    %c0_i32_1 = arith.constant 0 : i32
    return %c0_i32, %c0_i32_0 : i32, i32
  }
  func.func @transform_5(%arg0: i32, %arg1: i32) -> (i32, i32, i32, i32) {
    %c0_i32 = arith.constant 0 : i32
    %c0_i32_0 = arith.constant 0 : i32
    %c0_i32_1 = arith.constant 0 : i32
    return %arg0, %arg1, %c0_i32, %c0_i32_0 : i32, i32, i32, i32
  }
}

module attributes {stable_mosaic.version = 11 : i64} {
  func.func @_conv3x3_row_kernel(%arg0: i32, %arg1: i32, %arg2: memref<1x1x14x32xbf16, #tpu.memory_space<vmem>>, %arg3: memref<1x1x14x32xbf16, #tpu.memory_space<vmem>>, %arg4: memref<1x1x14x32xbf16, #tpu.memory_space<vmem>>, %arg5: memref<9x32x64xbf16, #tpu.memory_space<vmem>>, %arg6: memref<1x64xf32, #tpu.memory_space<vmem>>, %arg7: memref<1x1x12x64xbf16, #tpu.memory_space<vmem>>) attributes {dimension_semantics = [#tpu.dimension_semantics<parallel>, #tpu.dimension_semantics<parallel>], iteration_bounds = array<i64: 2, 12>, scalar_prefetch = 0 : i64, scratch_operands = 0 : i64, tpu.core_type = #tpu.core_type<tc>, window_params = [{transform_indices = @transform_0, window_bounds = array<i64: 1, 1, 14, 32>}, {transform_indices = @transform_1, window_bounds = array<i64: 1, 1, 14, 32>}, {transform_indices = @transform_2, window_bounds = array<i64: 1, 1, 14, 32>}, {pipeline_mode = #tpu.pipeline_mode<synchronous>, transform_indices = @transform_3, window_bounds = array<i64: 9, 32, 64>}, {pipeline_mode = #tpu.pipeline_mode<synchronous>, transform_indices = @transform_4, window_bounds = array<i64: 1, 64>}, {transform_indices = @transform_5, window_bounds = array<i64: 1, 1, 12, 64>}]} {
    %cst = arith.constant 0.000000e+00 : f32
    %0 = vector.broadcast %cst : f32 to vector<12x64xf32>
    %c0 = arith.constant 0 : index
    %c0_0 = arith.constant 0 : index
    %c0_1 = arith.constant 0 : index
    %c0_2 = arith.constant 0 : index
    %1 = vector.load %arg2[%c0, %c0_0, %c0_1, %c0_2] : memref<1x1x14x32xbf16, #tpu.memory_space<vmem>>, vector<1x1x14x32xbf16>
    %2 = vector.shape_cast %1 : vector<1x1x14x32xbf16> to vector<14x32xbf16>
    %c0_3 = arith.constant 0 : index
    %c0_4 = arith.constant 0 : index
    %c0_5 = arith.constant 0 : index
    %3 = vector.load %arg5[%c0_3, %c0_4, %c0_5] : memref<9x32x64xbf16, #tpu.memory_space<vmem>>, vector<1x32x64xbf16>
    %4 = vector.shape_cast %3 : vector<1x32x64xbf16> to vector<32x64xbf16>
    %cst_6 = arith.constant dense<0.000000e+00> : vector<14x64xf32>
    %5 = tpu.matmul %2, %4, %cst_6 {dimension_numbers = #tpu.dot_dimension_numbers<[1], [0], [0], [1], [0, 0, 1, 1], [], []>} : vector<14x32xbf16>, vector<32x64xbf16>, vector<14x64xf32> -> vector<14x64xf32>
    %6 = vector.extract_strided_slice %5 {offsets = [0, 0], sizes = [12, 64], strides = [1, 1]} : vector<14x64xf32> to vector<12x64xf32>
    %7 = arith.addf %0, %6 : vector<12x64xf32>
    %c1 = arith.constant 1 : index
    %c0_7 = arith.constant 0 : index
    %c0_8 = arith.constant 0 : index
    %8 = vector.load %arg5[%c1, %c0_7, %c0_8] : memref<9x32x64xbf16, #tpu.memory_space<vmem>>, vector<1x32x64xbf16>
    %9 = vector.shape_cast %8 : vector<1x32x64xbf16> to vector<32x64xbf16>
    %cst_9 = arith.constant dense<0.000000e+00> : vector<14x64xf32>
    %10 = tpu.matmul %2, %9, %cst_9 {dimension_numbers = #tpu.dot_dimension_numbers<[1], [0], [0], [1], [0, 0, 1, 1], [], []>} : vector<14x32xbf16>, vector<32x64xbf16>, vector<14x64xf32> -> vector<14x64xf32>
    %11 = vector.extract_strided_slice %10 {offsets = [1, 0], sizes = [12, 64], strides = [1, 1]} : vector<14x64xf32> to vector<12x64xf32>
    %12 = arith.addf %7, %11 : vector<12x64xf32>
    %c2 = arith.constant 2 : index
    %c0_10 = arith.constant 0 : index
    %c0_11 = arith.constant 0 : index
    %13 = vector.load %arg5[%c2, %c0_10, %c0_11] : memref<9x32x64xbf16, #tpu.memory_space<vmem>>, vector<1x32x64xbf16>
    %14 = vector.shape_cast %13 : vector<1x32x64xbf16> to vector<32x64xbf16>
    %cst_12 = arith.constant dense<0.000000e+00> : vector<14x64xf32>
    %15 = tpu.matmul %2, %14, %cst_12 {dimension_numbers = #tpu.dot_dimension_numbers<[1], [0], [0], [1], [0, 0, 1, 1], [], []>} : vector<14x32xbf16>, vector<32x64xbf16>, vector<14x64xf32> -> vector<14x64xf32>
    %16 = vector.extract_strided_slice %15 {offsets = [2, 0], sizes = [12, 64], strides = [1, 1]} : vector<14x64xf32> to vector<12x64xf32>
    %17 = arith.addf %12, %16 : vector<12x64xf32>
    %c0_13 = arith.constant 0 : index
    %c0_14 = arith.constant 0 : index
    %c0_15 = arith.constant 0 : index
    %c0_16 = arith.constant 0 : index
    %18 = vector.load %arg3[%c0_13, %c0_14, %c0_15, %c0_16] : memref<1x1x14x32xbf16, #tpu.memory_space<vmem>>, vector<1x1x14x32xbf16>
    %19 = vector.shape_cast %18 : vector<1x1x14x32xbf16> to vector<14x32xbf16>
    %c3 = arith.constant 3 : index
    %c0_17 = arith.constant 0 : index
    %c0_18 = arith.constant 0 : index
    %20 = vector.load %arg5[%c3, %c0_17, %c0_18] : memref<9x32x64xbf16, #tpu.memory_space<vmem>>, vector<1x32x64xbf16>
    %21 = vector.shape_cast %20 : vector<1x32x64xbf16> to vector<32x64xbf16>
    %cst_19 = arith.constant dense<0.000000e+00> : vector<14x64xf32>
    %22 = tpu.matmul %19, %21, %cst_19 {dimension_numbers = #tpu.dot_dimension_numbers<[1], [0], [0], [1], [0, 0, 1, 1], [], []>} : vector<14x32xbf16>, vector<32x64xbf16>, vector<14x64xf32> -> vector<14x64xf32>
    %23 = vector.extract_strided_slice %22 {offsets = [0, 0], sizes = [12, 64], strides = [1, 1]} : vector<14x64xf32> to vector<12x64xf32>
    %24 = arith.addf %17, %23 : vector<12x64xf32>
    %c4 = arith.constant 4 : index
    %c0_20 = arith.constant 0 : index
    %c0_21 = arith.constant 0 : index
    %25 = vector.load %arg5[%c4, %c0_20, %c0_21] : memref<9x32x64xbf16, #tpu.memory_space<vmem>>, vector<1x32x64xbf16>
    %26 = vector.shape_cast %25 : vector<1x32x64xbf16> to vector<32x64xbf16>
    %cst_22 = arith.constant dense<0.000000e+00> : vector<14x64xf32>
    %27 = tpu.matmul %19, %26, %cst_22 {dimension_numbers = #tpu.dot_dimension_numbers<[1], [0], [0], [1], [0, 0, 1, 1], [], []>} : vector<14x32xbf16>, vector<32x64xbf16>, vector<14x64xf32> -> vector<14x64xf32>
    %28 = vector.extract_strided_slice %27 {offsets = [1, 0], sizes = [12, 64], strides = [1, 1]} : vector<14x64xf32> to vector<12x64xf32>
    %29 = arith.addf %24, %28 : vector<12x64xf32>
    %c5 = arith.constant 5 : index
    %c0_23 = arith.constant 0 : index
    %c0_24 = arith.constant 0 : index
    %30 = vector.load %arg5[%c5, %c0_23, %c0_24] : memref<9x32x64xbf16, #tpu.memory_space<vmem>>, vector<1x32x64xbf16>
    %31 = vector.shape_cast %30 : vector<1x32x64xbf16> to vector<32x64xbf16>
    %cst_25 = arith.constant dense<0.000000e+00> : vector<14x64xf32>
    %32 = tpu.matmul %19, %31, %cst_25 {dimension_numbers = #tpu.dot_dimension_numbers<[1], [0], [0], [1], [0, 0, 1, 1], [], []>} : vector<14x32xbf16>, vector<32x64xbf16>, vector<14x64xf32> -> vector<14x64xf32>
    %33 = vector.extract_strided_slice %32 {offsets = [2, 0], sizes = [12, 64], strides = [1, 1]} : vector<14x64xf32> to vector<12x64xf32>
    %34 = arith.addf %29, %33 : vector<12x64xf32>
    %c0_26 = arith.constant 0 : index
    %c0_27 = arith.constant 0 : index
    %c0_28 = arith.constant 0 : index
    %c0_29 = arith.constant 0 : index
    %35 = vector.load %arg4[%c0_26, %c0_27, %c0_28, %c0_29] : memref<1x1x14x32xbf16, #tpu.memory_space<vmem>>, vector<1x1x14x32xbf16>
    %36 = vector.shape_cast %35 : vector<1x1x14x32xbf16> to vector<14x32xbf16>
    %c6 = arith.constant 6 : index
    %c0_30 = arith.constant 0 : index
    %c0_31 = arith.constant 0 : index
    %37 = vector.load %arg5[%c6, %c0_30, %c0_31] : memref<9x32x64xbf16, #tpu.memory_space<vmem>>, vector<1x32x64xbf16>
    %38 = vector.shape_cast %37 : vector<1x32x64xbf16> to vector<32x64xbf16>
    %cst_32 = arith.constant dense<0.000000e+00> : vector<14x64xf32>
    %39 = tpu.matmul %36, %38, %cst_32 {dimension_numbers = #tpu.dot_dimension_numbers<[1], [0], [0], [1], [0, 0, 1, 1], [], []>} : vector<14x32xbf16>, vector<32x64xbf16>, vector<14x64xf32> -> vector<14x64xf32>
    %40 = vector.extract_strided_slice %39 {offsets = [0, 0], sizes = [12, 64], strides = [1, 1]} : vector<14x64xf32> to vector<12x64xf32>
    %41 = arith.addf %34, %40 : vector<12x64xf32>
    %c7 = arith.constant 7 : index
    %c0_33 = arith.constant 0 : index
    %c0_34 = arith.constant 0 : index
    %42 = vector.load %arg5[%c7, %c0_33, %c0_34] : memref<9x32x64xbf16, #tpu.memory_space<vmem>>, vector<1x32x64xbf16>
    %43 = vector.shape_cast %42 : vector<1x32x64xbf16> to vector<32x64xbf16>
    %cst_35 = arith.constant dense<0.000000e+00> : vector<14x64xf32>
    %44 = tpu.matmul %36, %43, %cst_35 {dimension_numbers = #tpu.dot_dimension_numbers<[1], [0], [0], [1], [0, 0, 1, 1], [], []>} : vector<14x32xbf16>, vector<32x64xbf16>, vector<14x64xf32> -> vector<14x64xf32>
    %45 = vector.extract_strided_slice %44 {offsets = [1, 0], sizes = [12, 64], strides = [1, 1]} : vector<14x64xf32> to vector<12x64xf32>
    %46 = arith.addf %41, %45 : vector<12x64xf32>
    %c8 = arith.constant 8 : index
    %c0_36 = arith.constant 0 : index
    %c0_37 = arith.constant 0 : index
    %47 = vector.load %arg5[%c8, %c0_36, %c0_37] : memref<9x32x64xbf16, #tpu.memory_space<vmem>>, vector<1x32x64xbf16>
    %48 = vector.shape_cast %47 : vector<1x32x64xbf16> to vector<32x64xbf16>
    %cst_38 = arith.constant dense<0.000000e+00> : vector<14x64xf32>
    %49 = tpu.matmul %36, %48, %cst_38 {dimension_numbers = #tpu.dot_dimension_numbers<[1], [0], [0], [1], [0, 0, 1, 1], [], []>} : vector<14x32xbf16>, vector<32x64xbf16>, vector<14x64xf32> -> vector<14x64xf32>
    %50 = vector.extract_strided_slice %49 {offsets = [2, 0], sizes = [12, 64], strides = [1, 1]} : vector<14x64xf32> to vector<12x64xf32>
    %51 = arith.addf %46, %50 : vector<12x64xf32>
    %c0_39 = arith.constant 0 : index
    %c0_40 = arith.constant 0 : index
    %52 = vector.load %arg6[%c0_39, %c0_40] : memref<1x64xf32, #tpu.memory_space<vmem>>, vector<1x64xf32>
    %53 = vector.broadcast %52 : vector<1x64xf32> to vector<12x64xf32>
    %54 = arith.addf %51, %53 : vector<12x64xf32>
    %cst_41 = arith.constant 0.000000e+00 : f32
    %55 = vector.broadcast %cst_41 : f32 to vector<12x64xf32>
    %56 = arith.cmpf ogt, %54, %55 : vector<12x64xf32>
    %cst_42 = arith.constant 1.000000e-01 : f32
    %57 = vector.broadcast %cst_42 : f32 to vector<12x64xf32>
    %58 = arith.mulf %57, %54 : vector<12x64xf32>
    %59 = arith.select %56, %54, %58 : vector<12x64xi1>, vector<12x64xf32>
    %60 = vector.shape_cast %59 : vector<12x64xf32> to vector<1x1x12x64xf32>
    %61 = arith.truncf %60 : vector<1x1x12x64xf32> to vector<1x1x12x64xbf16>
    %c0_43 = arith.constant 0 : index
    %c0_44 = arith.constant 0 : index
    %c0_45 = arith.constant 0 : index
    %c0_46 = arith.constant 0 : index
    %62 = vector.load %arg7[%c0_43, %c0_44, %c0_45, %c0_46] : memref<1x1x12x64xbf16, #tpu.memory_space<vmem>>, vector<1x1x12x64xbf16>
    tpu.vector_store %arg7[%c0_43, %c0_44, %c0_45, %c0_46], %61 {strides = array<i32>} : memref<1x1x12x64xbf16, #tpu.memory_space<vmem>>, vector<1x1x12x64xbf16>,
    return
  }
  func.func @transform_0(%arg0: i32, %arg1: i32) -> (i32, i32, i32, i32) {
    %c0_i32 = arith.constant 0 : i32
    %c0_i32_0 = arith.constant 0 : i32
    %c0_i32_1 = arith.constant 0 : i32
    return %arg0, %arg1, %c0_i32, %c0_i32_0 : i32, i32, i32, i32
  }
  func.func @transform_1(%arg0: i32, %arg1: i32) -> (i32, i32, i32, i32) {
    %c1_i32 = arith.constant 1 : i32
    %0 = arith.addi %arg1, %c1_i32 : i32
    %c0_i32 = arith.constant 0 : i32
    %c0_i32_0 = arith.constant 0 : i32
    %c0_i32_1 = arith.constant 0 : i32
    return %arg0, %0, %c0_i32, %c0_i32_0 : i32, i32, i32, i32
  }
  func.func @transform_2(%arg0: i32, %arg1: i32) -> (i32, i32, i32, i32) {
    %c2_i32 = arith.constant 2 : i32
    %0 = arith.addi %arg1, %c2_i32 : i32
    %c0_i32 = arith.constant 0 : i32
    %c0_i32_0 = arith.constant 0 : i32
    %c0_i32_1 = arith.constant 0 : i32
    return %arg0, %0, %c0_i32, %c0_i32_0 : i32, i32, i32, i32
  }
  func.func @transform_3(%arg0: i32, %arg1: i32) -> (i32, i32, i32) {
    %c0_i32 = arith.constant 0 : i32
    %c0_i32_0 = arith.constant 0 : i32
    %c0_i32_1 = arith.constant 0 : i32
    %c0_i32_2 = arith.constant 0 : i32
    return %c0_i32, %c0_i32_0, %c0_i32_1 : i32, i32, i32
  }
  func.func @transform_4(%arg0: i32, %arg1: i32) -> (i32, i32) {
    %c0_i32 = arith.constant 0 : i32
    %c0_i32_0 = arith.constant 0 : i32
    %c0_i32_1 = arith.constant 0 : i32
    return %c0_i32, %c0_i32_0 : i32, i32
  }
  func.func @transform_5(%arg0: i32, %arg1: i32) -> (i32, i32, i32, i32) {
    %c0_i32 = arith.constant 0 : i32
    %c0_i32_0 = arith.constant 0 : i32
    %c0_i32_1 = arith.constant 0 : i32
    return %arg0, %arg1, %c0_i32, %c0_i32_0 : i32, i32, i32, i32
  }
}

module attributes {stable_mosaic.version = 11 : i64} {
  func.func @_mm_bias_act_kernel(%arg0: i32, %arg1: memref<72x256xbf16, #tpu.memory_space<vmem>>, %arg2: memref<256x64xbf16, #tpu.memory_space<vmem>>, %arg3: memref<1x64xf32, #tpu.memory_space<vmem>>, %arg4: memref<72x64xbf16, #tpu.memory_space<vmem>>) attributes {dimension_semantics = [#tpu.dimension_semantics<parallel>], iteration_bounds = array<i64: 1>, scalar_prefetch = 0 : i64, scratch_operands = 0 : i64, tpu.core_type = #tpu.core_type<tc>, window_params = [{transform_indices = @transform_0, window_bounds = array<i64: 72, 256>}, {pipeline_mode = #tpu.pipeline_mode<synchronous>, transform_indices = @transform_1, window_bounds = array<i64: 256, 64>}, {pipeline_mode = #tpu.pipeline_mode<synchronous>, transform_indices = @transform_2, window_bounds = array<i64: 1, 64>}, {transform_indices = @transform_3, window_bounds = array<i64: 72, 64>}]} {
    %c0 = arith.constant 0 : index
    %c0_0 = arith.constant 0 : index
    %0 = vector.load %arg1[%c0, %c0_0] : memref<72x256xbf16, #tpu.memory_space<vmem>>, vector<72x256xbf16>
    %c0_1 = arith.constant 0 : index
    %c0_2 = arith.constant 0 : index
    %1 = vector.load %arg2[%c0_1, %c0_2] : memref<256x64xbf16, #tpu.memory_space<vmem>>, vector<256x64xbf16>
    %cst = arith.constant dense<0.000000e+00> : vector<72x64xf32>
    %2 = tpu.matmul %0, %1, %cst {dimension_numbers = #tpu.dot_dimension_numbers<[1], [0], [0], [1], [0, 0, 1, 1], [], []>} : vector<72x256xbf16>, vector<256x64xbf16>, vector<72x64xf32> -> vector<72x64xf32>
    %c0_3 = arith.constant 0 : index
    %c0_4 = arith.constant 0 : index
    %3 = vector.load %arg3[%c0_3, %c0_4] : memref<1x64xf32, #tpu.memory_space<vmem>>, vector<1x64xf32>
    %4 = vector.broadcast %3 : vector<1x64xf32> to vector<72x64xf32>
    %5 = arith.addf %2, %4 : vector<72x64xf32>
    %cst_5 = arith.constant 0.000000e+00 : f32
    %6 = vector.broadcast %cst_5 : f32 to vector<72x64xf32>
    %7 = arith.cmpf ogt, %5, %6 : vector<72x64xf32>
    %cst_6 = arith.constant 1.000000e-01 : f32
    %8 = vector.broadcast %cst_6 : f32 to vector<72x64xf32>
    %9 = arith.mulf %8, %5 : vector<72x64xf32>
    %10 = arith.select %7, %5, %9 : vector<72x64xi1>, vector<72x64xf32>
    %11 = arith.truncf %10 : vector<72x64xf32> to vector<72x64xbf16>
    %c0_7 = arith.constant 0 : index
    %c0_8 = arith.constant 0 : index
    %12 = vector.load %arg4[%c0_7, %c0_8] : memref<72x64xbf16, #tpu.memory_space<vmem>>, vector<72x64xbf16>
    tpu.vector_store %arg4[%c0_7, %c0_8], %11 {strides = array<i32>} : memref<72x64xbf16, #tpu.memory_space<vmem>>, vector<72x64xbf16>,
    return
  }
  func.func @transform_0(%arg0: i32) -> (i32, i32) {
    %c0_i32 = arith.constant 0 : i32
    %c0_i32_0 = arith.constant 0 : i32
    return %arg0, %c0_i32 : i32, i32
  }
  func.func @transform_1(%arg0: i32) -> (i32, i32) {
    %c0_i32 = arith.constant 0 : i32
    %c0_i32_0 = arith.constant 0 : i32
    %c0_i32_1 = arith.constant 0 : i32
    return %c0_i32, %c0_i32_0 : i32, i32
  }
  func.func @transform_2(%arg0: i32) -> (i32, i32) {
    %c0_i32 = arith.constant 0 : i32
    %c0_i32_0 = arith.constant 0 : i32
    %c0_i32_1 = arith.constant 0 : i32
    return %c0_i32, %c0_i32_0 : i32, i32
  }
  func.func @transform_3(%arg0: i32) -> (i32, i32) {
    %c0_i32 = arith.constant 0 : i32
    %c0_i32_0 = arith.constant 0 : i32
    return %arg0, %c0_i32 : i32, i32
  }
}

module attributes {stable_mosaic.version = 11 : i64} {
  func.func @_conv3x3_row_kernel(%arg0: i32, %arg1: i32, %arg2: memref<1x1x4x128xbf16, #tpu.memory_space<vmem>>, %arg3: memref<1x1x4x128xbf16, #tpu.memory_space<vmem>>, %arg4: memref<1x1x4x128xbf16, #tpu.memory_space<vmem>>, %arg5: memref<9x128x64xbf16, #tpu.memory_space<vmem>>, %arg6: memref<1x64xf32, #tpu.memory_space<vmem>>, %arg7: memref<1x1x2x64xbf16, #tpu.memory_space<vmem>>) attributes {dimension_semantics = [#tpu.dimension_semantics<parallel>, #tpu.dimension_semantics<parallel>], iteration_bounds = array<i64: 2, 2>, scalar_prefetch = 0 : i64, scratch_operands = 0 : i64, tpu.core_type = #tpu.core_type<tc>, window_params = [{transform_indices = @transform_0, window_bounds = array<i64: 1, 1, 4, 128>}, {transform_indices = @transform_1, window_bounds = array<i64: 1, 1, 4, 128>}, {transform_indices = @transform_2, window_bounds = array<i64: 1, 1, 4, 128>}, {pipeline_mode = #tpu.pipeline_mode<synchronous>, transform_indices = @transform_3, window_bounds = array<i64: 9, 128, 64>}, {pipeline_mode = #tpu.pipeline_mode<synchronous>, transform_indices = @transform_4, window_bounds = array<i64: 1, 64>}, {transform_indices = @transform_5, window_bounds = array<i64: 1, 1, 2, 64>}]} {
    %cst = arith.constant 0.000000e+00 : f32
    %0 = vector.broadcast %cst : f32 to vector<2x64xf32>
    %c0 = arith.constant 0 : index
    %c0_0 = arith.constant 0 : index
    %c0_1 = arith.constant 0 : index
    %c0_2 = arith.constant 0 : index
    %1 = vector.load %arg2[%c0, %c0_0, %c0_1, %c0_2] : memref<1x1x4x128xbf16, #tpu.memory_space<vmem>>, vector<1x1x4x128xbf16>
    %2 = vector.shape_cast %1 : vector<1x1x4x128xbf16> to vector<4x128xbf16>
    %c0_3 = arith.constant 0 : index
    %c0_4 = arith.constant 0 : index
    %c0_5 = arith.constant 0 : index
    %3 = vector.load %arg5[%c0_3, %c0_4, %c0_5] : memref<9x128x64xbf16, #tpu.memory_space<vmem>>, vector<1x128x64xbf16>
    %4 = vector.shape_cast %3 : vector<1x128x64xbf16> to vector<128x64xbf16>
    %cst_6 = arith.constant dense<0.000000e+00> : vector<4x64xf32>
    %5 = tpu.matmul %2, %4, %cst_6 {dimension_numbers = #tpu.dot_dimension_numbers<[1], [0], [0], [1], [0, 0, 1, 1], [], []>} : vector<4x128xbf16>, vector<128x64xbf16>, vector<4x64xf32> -> vector<4x64xf32>
    %6 = vector.extract_strided_slice %5 {offsets = [0, 0], sizes = [2, 64], strides = [1, 1]} : vector<4x64xf32> to vector<2x64xf32>
    %7 = arith.addf %0, %6 : vector<2x64xf32>
    %c1 = arith.constant 1 : index
    %c0_7 = arith.constant 0 : index
    %c0_8 = arith.constant 0 : index
    %8 = vector.load %arg5[%c1, %c0_7, %c0_8] : memref<9x128x64xbf16, #tpu.memory_space<vmem>>, vector<1x128x64xbf16>
    %9 = vector.shape_cast %8 : vector<1x128x64xbf16> to vector<128x64xbf16>
    %cst_9 = arith.constant dense<0.000000e+00> : vector<4x64xf32>
    %10 = tpu.matmul %2, %9, %cst_9 {dimension_numbers = #tpu.dot_dimension_numbers<[1], [0], [0], [1], [0, 0, 1, 1], [], []>} : vector<4x128xbf16>, vector<128x64xbf16>, vector<4x64xf32> -> vector<4x64xf32>
    %11 = vector.extract_strided_slice %10 {offsets = [1, 0], sizes = [2, 64], strides = [1, 1]} : vector<4x64xf32> to vector<2x64xf32>
    %12 = arith.addf %7, %11 : vector<2x64xf32>
    %c2 = arith.constant 2 : index
    %c0_10 = arith.constant 0 : index
    %c0_11 = arith.constant 0 : index
    %13 = vector.load %arg5[%c2, %c0_10, %c0_11] : memref<9x128x64xbf16, #tpu.memory_space<vmem>>, vector<1x128x64xbf16>
    %14 = vector.shape_cast %13 : vector<1x128x64xbf16> to vector<128x64xbf16>
    %cst_12 = arith.constant dense<0.000000e+00> : vector<4x64xf32>
    %15 = tpu.matmul %2, %14, %cst_12 {dimension_numbers = #tpu.dot_dimension_numbers<[1], [0], [0], [1], [0, 0, 1, 1], [], []>} : vector<4x128xbf16>, vector<128x64xbf16>, vector<4x64xf32> -> vector<4x64xf32>
    %16 = vector.extract_strided_slice %15 {offsets = [2, 0], sizes = [2, 64], strides = [1, 1]} : vector<4x64xf32> to vector<2x64xf32>
    %17 = arith.addf %12, %16 : vector<2x64xf32>
    %c0_13 = arith.constant 0 : index
    %c0_14 = arith.constant 0 : index
    %c0_15 = arith.constant 0 : index
    %c0_16 = arith.constant 0 : index
    %18 = vector.load %arg3[%c0_13, %c0_14, %c0_15, %c0_16] : memref<1x1x4x128xbf16, #tpu.memory_space<vmem>>, vector<1x1x4x128xbf16>
    %19 = vector.shape_cast %18 : vector<1x1x4x128xbf16> to vector<4x128xbf16>
    %c3 = arith.constant 3 : index
    %c0_17 = arith.constant 0 : index
    %c0_18 = arith.constant 0 : index
    %20 = vector.load %arg5[%c3, %c0_17, %c0_18] : memref<9x128x64xbf16, #tpu.memory_space<vmem>>, vector<1x128x64xbf16>
    %21 = vector.shape_cast %20 : vector<1x128x64xbf16> to vector<128x64xbf16>
    %cst_19 = arith.constant dense<0.000000e+00> : vector<4x64xf32>
    %22 = tpu.matmul %19, %21, %cst_19 {dimension_numbers = #tpu.dot_dimension_numbers<[1], [0], [0], [1], [0, 0, 1, 1], [], []>} : vector<4x128xbf16>, vector<128x64xbf16>, vector<4x64xf32> -> vector<4x64xf32>
    %23 = vector.extract_strided_slice %22 {offsets = [0, 0], sizes = [2, 64], strides = [1, 1]} : vector<4x64xf32> to vector<2x64xf32>
    %24 = arith.addf %17, %23 : vector<2x64xf32>
    %c4 = arith.constant 4 : index
    %c0_20 = arith.constant 0 : index
    %c0_21 = arith.constant 0 : index
    %25 = vector.load %arg5[%c4, %c0_20, %c0_21] : memref<9x128x64xbf16, #tpu.memory_space<vmem>>, vector<1x128x64xbf16>
    %26 = vector.shape_cast %25 : vector<1x128x64xbf16> to vector<128x64xbf16>
    %cst_22 = arith.constant dense<0.000000e+00> : vector<4x64xf32>
    %27 = tpu.matmul %19, %26, %cst_22 {dimension_numbers = #tpu.dot_dimension_numbers<[1], [0], [0], [1], [0, 0, 1, 1], [], []>} : vector<4x128xbf16>, vector<128x64xbf16>, vector<4x64xf32> -> vector<4x64xf32>
    %28 = vector.extract_strided_slice %27 {offsets = [1, 0], sizes = [2, 64], strides = [1, 1]} : vector<4x64xf32> to vector<2x64xf32>
    %29 = arith.addf %24, %28 : vector<2x64xf32>
    %c5 = arith.constant 5 : index
    %c0_23 = arith.constant 0 : index
    %c0_24 = arith.constant 0 : index
    %30 = vector.load %arg5[%c5, %c0_23, %c0_24] : memref<9x128x64xbf16, #tpu.memory_space<vmem>>, vector<1x128x64xbf16>
    %31 = vector.shape_cast %30 : vector<1x128x64xbf16> to vector<128x64xbf16>
    %cst_25 = arith.constant dense<0.000000e+00> : vector<4x64xf32>
    %32 = tpu.matmul %19, %31, %cst_25 {dimension_numbers = #tpu.dot_dimension_numbers<[1], [0], [0], [1], [0, 0, 1, 1], [], []>} : vector<4x128xbf16>, vector<128x64xbf16>, vector<4x64xf32> -> vector<4x64xf32>
    %33 = vector.extract_strided_slice %32 {offsets = [2, 0], sizes = [2, 64], strides = [1, 1]} : vector<4x64xf32> to vector<2x64xf32>
    %34 = arith.addf %29, %33 : vector<2x64xf32>
    %c0_26 = arith.constant 0 : index
    %c0_27 = arith.constant 0 : index
    %c0_28 = arith.constant 0 : index
    %c0_29 = arith.constant 0 : index
    %35 = vector.load %arg4[%c0_26, %c0_27, %c0_28, %c0_29] : memref<1x1x4x128xbf16, #tpu.memory_space<vmem>>, vector<1x1x4x128xbf16>
    %36 = vector.shape_cast %35 : vector<1x1x4x128xbf16> to vector<4x128xbf16>
    %c6 = arith.constant 6 : index
    %c0_30 = arith.constant 0 : index
    %c0_31 = arith.constant 0 : index
    %37 = vector.load %arg5[%c6, %c0_30, %c0_31] : memref<9x128x64xbf16, #tpu.memory_space<vmem>>, vector<1x128x64xbf16>
    %38 = vector.shape_cast %37 : vector<1x128x64xbf16> to vector<128x64xbf16>
    %cst_32 = arith.constant dense<0.000000e+00> : vector<4x64xf32>
    %39 = tpu.matmul %36, %38, %cst_32 {dimension_numbers = #tpu.dot_dimension_numbers<[1], [0], [0], [1], [0, 0, 1, 1], [], []>} : vector<4x128xbf16>, vector<128x64xbf16>, vector<4x64xf32> -> vector<4x64xf32>
    %40 = vector.extract_strided_slice %39 {offsets = [0, 0], sizes = [2, 64], strides = [1, 1]} : vector<4x64xf32> to vector<2x64xf32>
    %41 = arith.addf %34, %40 : vector<2x64xf32>
    %c7 = arith.constant 7 : index
    %c0_33 = arith.constant 0 : index
    %c0_34 = arith.constant 0 : index
    %42 = vector.load %arg5[%c7, %c0_33, %c0_34] : memref<9x128x64xbf16, #tpu.memory_space<vmem>>, vector<1x128x64xbf16>
    %43 = vector.shape_cast %42 : vector<1x128x64xbf16> to vector<128x64xbf16>
    %cst_35 = arith.constant dense<0.000000e+00> : vector<4x64xf32>
    %44 = tpu.matmul %36, %43, %cst_35 {dimension_numbers = #tpu.dot_dimension_numbers<[1], [0], [0], [1], [0, 0, 1, 1], [], []>} : vector<4x128xbf16>, vector<128x64xbf16>, vector<4x64xf32> -> vector<4x64xf32>
    %45 = vector.extract_strided_slice %44 {offsets = [1, 0], sizes = [2, 64], strides = [1, 1]} : vector<4x64xf32> to vector<2x64xf32>
    %46 = arith.addf %41, %45 : vector<2x64xf32>
    %c8 = arith.constant 8 : index
    %c0_36 = arith.constant 0 : index
    %c0_37 = arith.constant 0 : index
    %47 = vector.load %arg5[%c8, %c0_36, %c0_37] : memref<9x128x64xbf16, #tpu.memory_space<vmem>>, vector<1x128x64xbf16>
    %48 = vector.shape_cast %47 : vector<1x128x64xbf16> to vector<128x64xbf16>
    %cst_38 = arith.constant dense<0.000000e+00> : vector<4x64xf32>
    %49 = tpu.matmul %36, %48, %cst_38 {dimension_numbers = #tpu.dot_dimension_numbers<[1], [0], [0], [1], [0, 0, 1, 1], [], []>} : vector<4x128xbf16>, vector<128x64xbf16>, vector<4x64xf32> -> vector<4x64xf32>
    %50 = vector.extract_strided_slice %49 {offsets = [2, 0], sizes = [2, 64], strides = [1, 1]} : vector<4x64xf32> to vector<2x64xf32>
    %51 = arith.addf %46, %50 : vector<2x64xf32>
    %c0_39 = arith.constant 0 : index
    %c0_40 = arith.constant 0 : index
    %52 = vector.load %arg6[%c0_39, %c0_40] : memref<1x64xf32, #tpu.memory_space<vmem>>, vector<1x64xf32>
    %53 = vector.broadcast %52 : vector<1x64xf32> to vector<2x64xf32>
    %54 = arith.addf %51, %53 : vector<2x64xf32>
    %cst_41 = arith.constant 0.000000e+00 : f32
    %55 = vector.broadcast %cst_41 : f32 to vector<2x64xf32>
    %56 = arith.cmpf ogt, %54, %55 : vector<2x64xf32>
    %cst_42 = arith.constant 1.000000e-01 : f32
    %57 = vector.broadcast %cst_42 : f32 to vector<2x64xf32>
    %58 = arith.mulf %57, %54 : vector<2x64xf32>
    %59 = arith.select %56, %54, %58 : vector<2x64xi1>, vector<2x64xf32>
    %60 = vector.shape_cast %59 : vector<2x64xf32> to vector<1x1x2x64xf32>
    %61 = arith.truncf %60 : vector<1x1x2x64xf32> to vector<1x1x2x64xbf16>
    %c0_43 = arith.constant 0 : index
    %c0_44 = arith.constant 0 : index
    %c0_45 = arith.constant 0 : index
    %c0_46 = arith.constant 0 : index
    %62 = vector.load %arg7[%c0_43, %c0_44, %c0_45, %c0_46] : memref<1x1x2x64xbf16, #tpu.memory_space<vmem>>, vector<1x1x2x64xbf16>
    tpu.vector_store %arg7[%c0_43, %c0_44, %c0_45, %c0_46], %61 {strides = array<i32>} : memref<1x1x2x64xbf16, #tpu.memory_space<vmem>>, vector<1x1x2x64xbf16>,
    return
  }
  func.func @transform_0(%arg0: i32, %arg1: i32) -> (i32, i32, i32, i32) {
    %c0_i32 = arith.constant 0 : i32
    %c0_i32_0 = arith.constant 0 : i32
    %c0_i32_1 = arith.constant 0 : i32
    return %arg0, %arg1, %c0_i32, %c0_i32_0 : i32, i32, i32, i32
  }
  func.func @transform_1(%arg0: i32, %arg1: i32) -> (i32, i32, i32, i32) {
    %c1_i32 = arith.constant 1 : i32
    %0 = arith.addi %arg1, %c1_i32 : i32
    %c0_i32 = arith.constant 0 : i32
    %c0_i32_0 = arith.constant 0 : i32
    %c0_i32_1 = arith.constant 0 : i32
    return %arg0, %0, %c0_i32, %c0_i32_0 : i32, i32, i32, i32
  }
  func.func @transform_2(%arg0: i32, %arg1: i32) -> (i32, i32, i32, i32) {
    %c2_i32 = arith.constant 2 : i32
    %0 = arith.addi %arg1, %c2_i32 : i32
    %c0_i32 = arith.constant 0 : i32
    %c0_i32_0 = arith.constant 0 : i32
    %c0_i32_1 = arith.constant 0 : i32
    return %arg0, %0, %c0_i32, %c0_i32_0 : i32, i32, i32, i32
  }
  func.func @transform_3(%arg0: i32, %arg1: i32) -> (i32, i32, i32) {
    %c0_i32 = arith.constant 0 : i32
    %c0_i32_0 = arith.constant 0 : i32
    %c0_i32_1 = arith.constant 0 : i32
    %c0_i32_2 = arith.constant 0 : i32
    return %c0_i32, %c0_i32_0, %c0_i32_1 : i32, i32, i32
  }
  func.func @transform_4(%arg0: i32, %arg1: i32) -> (i32, i32) {
    %c0_i32 = arith.constant 0 : i32
    %c0_i32_0 = arith.constant 0 : i32
    %c0_i32_1 = arith.constant 0 : i32
    return %c0_i32, %c0_i32_0 : i32, i32
  }
  func.func @transform_5(%arg0: i32, %arg1: i32) -> (i32, i32, i32, i32) {
    %c0_i32 = arith.constant 0 : i32
    %c0_i32_0 = arith.constant 0 : i32
    %c0_i32_1 = arith.constant 0 : i32
    return %arg0, %arg1, %c0_i32, %c0_i32_0 : i32, i32, i32, i32
  }
}

module attributes {stable_mosaic.version = 11 : i64} {
  func.func @_conv3x3_row_kernel(%arg0: i32, %arg1: i32, %arg2: memref<1x1x6x64xbf16, #tpu.memory_space<vmem>>, %arg3: memref<1x1x6x64xbf16, #tpu.memory_space<vmem>>, %arg4: memref<1x1x6x64xbf16, #tpu.memory_space<vmem>>, %arg5: memref<9x64x128xbf16, #tpu.memory_space<vmem>>, %arg6: memref<1x128xf32, #tpu.memory_space<vmem>>, %arg7: memref<1x1x4x128xbf16, #tpu.memory_space<vmem>>) attributes {dimension_semantics = [#tpu.dimension_semantics<parallel>, #tpu.dimension_semantics<parallel>], iteration_bounds = array<i64: 2, 4>, scalar_prefetch = 0 : i64, scratch_operands = 0 : i64, tpu.core_type = #tpu.core_type<tc>, window_params = [{transform_indices = @transform_0, window_bounds = array<i64: 1, 1, 6, 64>}, {transform_indices = @transform_1, window_bounds = array<i64: 1, 1, 6, 64>}, {transform_indices = @transform_2, window_bounds = array<i64: 1, 1, 6, 64>}, {pipeline_mode = #tpu.pipeline_mode<synchronous>, transform_indices = @transform_3, window_bounds = array<i64: 9, 64, 128>}, {pipeline_mode = #tpu.pipeline_mode<synchronous>, transform_indices = @transform_4, window_bounds = array<i64: 1, 128>}, {transform_indices = @transform_5, window_bounds = array<i64: 1, 1, 4, 128>}]} {
    %cst = arith.constant 0.000000e+00 : f32
    %0 = vector.broadcast %cst : f32 to vector<4x128xf32>
    %c0 = arith.constant 0 : index
    %c0_0 = arith.constant 0 : index
    %c0_1 = arith.constant 0 : index
    %c0_2 = arith.constant 0 : index
    %1 = vector.load %arg2[%c0, %c0_0, %c0_1, %c0_2] : memref<1x1x6x64xbf16, #tpu.memory_space<vmem>>, vector<1x1x6x64xbf16>
    %2 = vector.shape_cast %1 : vector<1x1x6x64xbf16> to vector<6x64xbf16>
    %c0_3 = arith.constant 0 : index
    %c0_4 = arith.constant 0 : index
    %c0_5 = arith.constant 0 : index
    %3 = vector.load %arg5[%c0_3, %c0_4, %c0_5] : memref<9x64x128xbf16, #tpu.memory_space<vmem>>, vector<1x64x128xbf16>
    %4 = vector.shape_cast %3 : vector<1x64x128xbf16> to vector<64x128xbf16>
    %cst_6 = arith.constant dense<0.000000e+00> : vector<6x128xf32>
    %5 = tpu.matmul %2, %4, %cst_6 {dimension_numbers = #tpu.dot_dimension_numbers<[1], [0], [0], [1], [0, 0, 1, 1], [], []>} : vector<6x64xbf16>, vector<64x128xbf16>, vector<6x128xf32> -> vector<6x128xf32>
    %6 = vector.extract_strided_slice %5 {offsets = [0, 0], sizes = [4, 128], strides = [1, 1]} : vector<6x128xf32> to vector<4x128xf32>
    %7 = arith.addf %0, %6 : vector<4x128xf32>
    %c1 = arith.constant 1 : index
    %c0_7 = arith.constant 0 : index
    %c0_8 = arith.constant 0 : index
    %8 = vector.load %arg5[%c1, %c0_7, %c0_8] : memref<9x64x128xbf16, #tpu.memory_space<vmem>>, vector<1x64x128xbf16>
    %9 = vector.shape_cast %8 : vector<1x64x128xbf16> to vector<64x128xbf16>
    %cst_9 = arith.constant dense<0.000000e+00> : vector<6x128xf32>
    %10 = tpu.matmul %2, %9, %cst_9 {dimension_numbers = #tpu.dot_dimension_numbers<[1], [0], [0], [1], [0, 0, 1, 1], [], []>} : vector<6x64xbf16>, vector<64x128xbf16>, vector<6x128xf32> -> vector<6x128xf32>
    %11 = vector.extract_strided_slice %10 {offsets = [1, 0], sizes = [4, 128], strides = [1, 1]} : vector<6x128xf32> to vector<4x128xf32>
    %12 = arith.addf %7, %11 : vector<4x128xf32>
    %c2 = arith.constant 2 : index
    %c0_10 = arith.constant 0 : index
    %c0_11 = arith.constant 0 : index
    %13 = vector.load %arg5[%c2, %c0_10, %c0_11] : memref<9x64x128xbf16, #tpu.memory_space<vmem>>, vector<1x64x128xbf16>
    %14 = vector.shape_cast %13 : vector<1x64x128xbf16> to vector<64x128xbf16>
    %cst_12 = arith.constant dense<0.000000e+00> : vector<6x128xf32>
    %15 = tpu.matmul %2, %14, %cst_12 {dimension_numbers = #tpu.dot_dimension_numbers<[1], [0], [0], [1], [0, 0, 1, 1], [], []>} : vector<6x64xbf16>, vector<64x128xbf16>, vector<6x128xf32> -> vector<6x128xf32>
    %16 = vector.extract_strided_slice %15 {offsets = [2, 0], sizes = [4, 128], strides = [1, 1]} : vector<6x128xf32> to vector<4x128xf32>
    %17 = arith.addf %12, %16 : vector<4x128xf32>
    %c0_13 = arith.constant 0 : index
    %c0_14 = arith.constant 0 : index
    %c0_15 = arith.constant 0 : index
    %c0_16 = arith.constant 0 : index
    %18 = vector.load %arg3[%c0_13, %c0_14, %c0_15, %c0_16] : memref<1x1x6x64xbf16, #tpu.memory_space<vmem>>, vector<1x1x6x64xbf16>
    %19 = vector.shape_cast %18 : vector<1x1x6x64xbf16> to vector<6x64xbf16>
    %c3 = arith.constant 3 : index
    %c0_17 = arith.constant 0 : index
    %c0_18 = arith.constant 0 : index
    %20 = vector.load %arg5[%c3, %c0_17, %c0_18] : memref<9x64x128xbf16, #tpu.memory_space<vmem>>, vector<1x64x128xbf16>
    %21 = vector.shape_cast %20 : vector<1x64x128xbf16> to vector<64x128xbf16>
    %cst_19 = arith.constant dense<0.000000e+00> : vector<6x128xf32>
    %22 = tpu.matmul %19, %21, %cst_19 {dimension_numbers = #tpu.dot_dimension_numbers<[1], [0], [0], [1], [0, 0, 1, 1], [], []>} : vector<6x64xbf16>, vector<64x128xbf16>, vector<6x128xf32> -> vector<6x128xf32>
    %23 = vector.extract_strided_slice %22 {offsets = [0, 0], sizes = [4, 128], strides = [1, 1]} : vector<6x128xf32> to vector<4x128xf32>
    %24 = arith.addf %17, %23 : vector<4x128xf32>
    %c4 = arith.constant 4 : index
    %c0_20 = arith.constant 0 : index
    %c0_21 = arith.constant 0 : index
    %25 = vector.load %arg5[%c4, %c0_20, %c0_21] : memref<9x64x128xbf16, #tpu.memory_space<vmem>>, vector<1x64x128xbf16>
    %26 = vector.shape_cast %25 : vector<1x64x128xbf16> to vector<64x128xbf16>
    %cst_22 = arith.constant dense<0.000000e+00> : vector<6x128xf32>
    %27 = tpu.matmul %19, %26, %cst_22 {dimension_numbers = #tpu.dot_dimension_numbers<[1], [0], [0], [1], [0, 0, 1, 1], [], []>} : vector<6x64xbf16>, vector<64x128xbf16>, vector<6x128xf32> -> vector<6x128xf32>
    %28 = vector.extract_strided_slice %27 {offsets = [1, 0], sizes = [4, 128], strides = [1, 1]} : vector<6x128xf32> to vector<4x128xf32>
    %29 = arith.addf %24, %28 : vector<4x128xf32>
    %c5 = arith.constant 5 : index
    %c0_23 = arith.constant 0 : index
    %c0_24 = arith.constant 0 : index
    %30 = vector.load %arg5[%c5, %c0_23, %c0_24] : memref<9x64x128xbf16, #tpu.memory_space<vmem>>, vector<1x64x128xbf16>
    %31 = vector.shape_cast %30 : vector<1x64x128xbf16> to vector<64x128xbf16>
    %cst_25 = arith.constant dense<0.000000e+00> : vector<6x128xf32>
    %32 = tpu.matmul %19, %31, %cst_25 {dimension_numbers = #tpu.dot_dimension_numbers<[1], [0], [0], [1], [0, 0, 1, 1], [], []>} : vector<6x64xbf16>, vector<64x128xbf16>, vector<6x128xf32> -> vector<6x128xf32>
    %33 = vector.extract_strided_slice %32 {offsets = [2, 0], sizes = [4, 128], strides = [1, 1]} : vector<6x128xf32> to vector<4x128xf32>
    %34 = arith.addf %29, %33 : vector<4x128xf32>
    %c0_26 = arith.constant 0 : index
    %c0_27 = arith.constant 0 : index
    %c0_28 = arith.constant 0 : index
    %c0_29 = arith.constant 0 : index
    %35 = vector.load %arg4[%c0_26, %c0_27, %c0_28, %c0_29] : memref<1x1x6x64xbf16, #tpu.memory_space<vmem>>, vector<1x1x6x64xbf16>
    %36 = vector.shape_cast %35 : vector<1x1x6x64xbf16> to vector<6x64xbf16>
    %c6 = arith.constant 6 : index
    %c0_30 = arith.constant 0 : index
    %c0_31 = arith.constant 0 : index
    %37 = vector.load %arg5[%c6, %c0_30, %c0_31] : memref<9x64x128xbf16, #tpu.memory_space<vmem>>, vector<1x64x128xbf16>
    %38 = vector.shape_cast %37 : vector<1x64x128xbf16> to vector<64x128xbf16>
    %cst_32 = arith.constant dense<0.000000e+00> : vector<6x128xf32>
    %39 = tpu.matmul %36, %38, %cst_32 {dimension_numbers = #tpu.dot_dimension_numbers<[1], [0], [0], [1], [0, 0, 1, 1], [], []>} : vector<6x64xbf16>, vector<64x128xbf16>, vector<6x128xf32> -> vector<6x128xf32>
    %40 = vector.extract_strided_slice %39 {offsets = [0, 0], sizes = [4, 128], strides = [1, 1]} : vector<6x128xf32> to vector<4x128xf32>
    %41 = arith.addf %34, %40 : vector<4x128xf32>
    %c7 = arith.constant 7 : index
    %c0_33 = arith.constant 0 : index
    %c0_34 = arith.constant 0 : index
    %42 = vector.load %arg5[%c7, %c0_33, %c0_34] : memref<9x64x128xbf16, #tpu.memory_space<vmem>>, vector<1x64x128xbf16>
    %43 = vector.shape_cast %42 : vector<1x64x128xbf16> to vector<64x128xbf16>
    %cst_35 = arith.constant dense<0.000000e+00> : vector<6x128xf32>
    %44 = tpu.matmul %36, %43, %cst_35 {dimension_numbers = #tpu.dot_dimension_numbers<[1], [0], [0], [1], [0, 0, 1, 1], [], []>} : vector<6x64xbf16>, vector<64x128xbf16>, vector<6x128xf32> -> vector<6x128xf32>
    %45 = vector.extract_strided_slice %44 {offsets = [1, 0], sizes = [4, 128], strides = [1, 1]} : vector<6x128xf32> to vector<4x128xf32>
    %46 = arith.addf %41, %45 : vector<4x128xf32>
    %c8 = arith.constant 8 : index
    %c0_36 = arith.constant 0 : index
    %c0_37 = arith.constant 0 : index
    %47 = vector.load %arg5[%c8, %c0_36, %c0_37] : memref<9x64x128xbf16, #tpu.memory_space<vmem>>, vector<1x64x128xbf16>
    %48 = vector.shape_cast %47 : vector<1x64x128xbf16> to vector<64x128xbf16>
    %cst_38 = arith.constant dense<0.000000e+00> : vector<6x128xf32>
    %49 = tpu.matmul %36, %48, %cst_38 {dimension_numbers = #tpu.dot_dimension_numbers<[1], [0], [0], [1], [0, 0, 1, 1], [], []>} : vector<6x64xbf16>, vector<64x128xbf16>, vector<6x128xf32> -> vector<6x128xf32>
    %50 = vector.extract_strided_slice %49 {offsets = [2, 0], sizes = [4, 128], strides = [1, 1]} : vector<6x128xf32> to vector<4x128xf32>
    %51 = arith.addf %46, %50 : vector<4x128xf32>
    %c0_39 = arith.constant 0 : index
    %c0_40 = arith.constant 0 : index
    %52 = vector.load %arg6[%c0_39, %c0_40] : memref<1x128xf32, #tpu.memory_space<vmem>>, vector<1x128xf32>
    %53 = vector.broadcast %52 : vector<1x128xf32> to vector<4x128xf32>
    %54 = arith.addf %51, %53 : vector<4x128xf32>
    %cst_41 = arith.constant 0.000000e+00 : f32
    %55 = vector.broadcast %cst_41 : f32 to vector<4x128xf32>
    %56 = arith.cmpf ogt, %54, %55 : vector<4x128xf32>
    %cst_42 = arith.constant 1.000000e-01 : f32
    %57 = vector.broadcast %cst_42 : f32 to vector<4x128xf32>
    %58 = arith.mulf %57, %54 : vector<4x128xf32>
    %59 = arith.select %56, %54, %58 : vector<4x128xi1>, vector<4x128xf32>
    %60 = vector.shape_cast %59 : vector<4x128xf32> to vector<1x1x4x128xf32>
    %61 = arith.truncf %60 : vector<1x1x4x128xf32> to vector<1x1x4x128xbf16>
    %c0_43 = arith.constant 0 : index
    %c0_44 = arith.constant 0 : index
    %c0_45 = arith.constant 0 : index
    %c0_46 = arith.constant 0 : index
    %62 = vector.load %arg7[%c0_43, %c0_44, %c0_45, %c0_46] : memref<1x1x4x128xbf16, #tpu.memory_space<vmem>>, vector<1x1x4x128xbf16>
    tpu.vector_store %arg7[%c0_43, %c0_44, %c0_45, %c0_46], %61 {strides = array<i32>} : memref<1x1x4x128xbf16, #tpu.memory_space<vmem>>, vector<1x1x4x128xbf16>,
    return
  }
  func.func @transform_0(%arg0: i32, %arg1: i32) -> (i32, i32, i32, i32) {
    %c0_i32 = arith.constant 0 : i32
    %c0_i32_0 = arith.constant 0 : i32
    %c0_i32_1 = arith.constant 0 : i32
    return %arg0, %arg1, %c0_i32, %c0_i32_0 : i32, i32, i32, i32
  }
  func.func @transform_1(%arg0: i32, %arg1: i32) -> (i32, i32, i32, i32) {
    %c1_i32 = arith.constant 1 : i32
    %0 = arith.addi %arg1, %c1_i32 : i32
    %c0_i32 = arith.constant 0 : i32
    %c0_i32_0 = arith.constant 0 : i32
    %c0_i32_1 = arith.constant 0 : i32
    return %arg0, %0, %c0_i32, %c0_i32_0 : i32, i32, i32, i32
  }
  func.func @transform_2(%arg0: i32, %arg1: i32) -> (i32, i32, i32, i32) {
    %c2_i32 = arith.constant 2 : i32
    %0 = arith.addi %arg1, %c2_i32 : i32
    %c0_i32 = arith.constant 0 : i32
    %c0_i32_0 = arith.constant 0 : i32
    %c0_i32_1 = arith.constant 0 : i32
    return %arg0, %0, %c0_i32, %c0_i32_0 : i32, i32, i32, i32
  }
  func.func @transform_3(%arg0: i32, %arg1: i32) -> (i32, i32, i32) {
    %c0_i32 = arith.constant 0 : i32
    %c0_i32_0 = arith.constant 0 : i32
    %c0_i32_1 = arith.constant 0 : i32
    %c0_i32_2 = arith.constant 0 : i32
    return %c0_i32, %c0_i32_0, %c0_i32_1 : i32, i32, i32
  }
  func.func @transform_4(%arg0: i32, %arg1: i32) -> (i32, i32) {
    %c0_i32 = arith.constant 0 : i32
    %c0_i32_0 = arith.constant 0 : i32
    %c0_i32_1 = arith.constant 0 : i32
    return %c0_i32, %c0_i32_0 : i32, i32
  }
  func.func @transform_5(%arg0: i32, %arg1: i32) -> (i32, i32, i32, i32) {
    %c0_i32 = arith.constant 0 : i32
    %c0_i32_0 = arith.constant 0 : i32
    %c0_i32_1 = arith.constant 0 : i32
    return %arg0, %arg1, %c0_i32, %c0_i32_0 : i32, i32, i32, i32
  }
}

module attributes {stable_mosaic.version = 11 : i64} {
  func.func @_se_mlp_kernel(%arg0: i32, %arg1: memref<2x64xf32, #tpu.memory_space<vmem>>, %arg2: memref<64x8xf32, #tpu.memory_space<vmem>>, %arg3: memref<1x8xf32, #tpu.memory_space<vmem>>, %arg4: memref<8x64xf32, #tpu.memory_space<vmem>>, %arg5: memref<1x64xf32, #tpu.memory_space<vmem>>, %arg6: memref<2x64xf32, #tpu.memory_space<vmem>>) attributes {dimension_semantics = [#tpu.dimension_semantics<arbitrary>], iteration_bounds = array<i64: 1>, scalar_prefetch = 0 : i64, scratch_operands = 0 : i64, tpu.core_type = #tpu.core_type<tc>, window_params = [{pipeline_mode = #tpu.pipeline_mode<synchronous>, transform_indices = @transform_0, window_bounds = array<i64: 2, 64>}, {pipeline_mode = #tpu.pipeline_mode<synchronous>, transform_indices = @transform_1, window_bounds = array<i64: 64, 8>}, {pipeline_mode = #tpu.pipeline_mode<synchronous>, transform_indices = @transform_2, window_bounds = array<i64: 1, 8>}, {pipeline_mode = #tpu.pipeline_mode<synchronous>, transform_indices = @transform_3, window_bounds = array<i64: 8, 64>}, {pipeline_mode = #tpu.pipeline_mode<synchronous>, transform_indices = @transform_4, window_bounds = array<i64: 1, 64>}, {pipeline_mode = #tpu.pipeline_mode<synchronous>, transform_indices = @transform_5, window_bounds = array<i64: 2, 64>}]} {
    %c0 = arith.constant 0 : index
    %c0_0 = arith.constant 0 : index
    %0 = vector.load %arg1[%c0, %c0_0] : memref<2x64xf32, #tpu.memory_space<vmem>>, vector<2x64xf32>
    %c0_1 = arith.constant 0 : index
    %c0_2 = arith.constant 0 : index
    %1 = vector.load %arg2[%c0_1, %c0_2] : memref<64x8xf32, #tpu.memory_space<vmem>>, vector<64x8xf32>
    %cst = arith.constant dense<0.000000e+00> : vector<2x8xf32>
    %2 = tpu.matmul %0, %1, %cst {dimension_numbers = #tpu.dot_dimension_numbers<[1], [0], [0], [1], [0, 0, 1, 1], [], []>} : vector<2x64xf32>, vector<64x8xf32>, vector<2x8xf32> -> vector<2x8xf32>
    %c0_3 = arith.constant 0 : index
    %c0_4 = arith.constant 0 : index
    %3 = vector.load %arg3[%c0_3, %c0_4] : memref<1x8xf32, #tpu.memory_space<vmem>>, vector<1x8xf32>
    %4 = vector.broadcast %3 : vector<1x8xf32> to vector<2x8xf32>
    %5 = arith.addf %2, %4 : vector<2x8xf32>
    %cst_5 = arith.constant 0.000000e+00 : f32
    %6 = vector.broadcast %cst_5 : f32 to vector<2x8xf32>
    %7 = arith.maximumf %5, %6 : vector<2x8xf32>
    %c0_6 = arith.constant 0 : index
    %c0_7 = arith.constant 0 : index
    %8 = vector.load %arg4[%c0_6, %c0_7] : memref<8x64xf32, #tpu.memory_space<vmem>>, vector<8x64xf32>
    %cst_8 = arith.constant dense<0.000000e+00> : vector<2x64xf32>
    %9 = tpu.matmul %7, %8, %cst_8 {dimension_numbers = #tpu.dot_dimension_numbers<[1], [0], [0], [1], [0, 0, 1, 1], [], []>} : vector<2x8xf32>, vector<8x64xf32>, vector<2x64xf32> -> vector<2x64xf32>
    %c0_9 = arith.constant 0 : index
    %c0_10 = arith.constant 0 : index
    %10 = vector.load %arg5[%c0_9, %c0_10] : memref<1x64xf32, #tpu.memory_space<vmem>>, vector<1x64xf32>
    %11 = vector.broadcast %10 : vector<1x64xf32> to vector<2x64xf32>
    %12 = arith.addf %9, %11 : vector<2x64xf32>
    %13 = arith.negf %12 : vector<2x64xf32>
    %14 = math.exp %13 : vector<2x64xf32>
    %cst_11 = arith.constant 1.000000e+00 : f32
    %15 = vector.broadcast %cst_11 : f32 to vector<2x64xf32>
    %16 = arith.addf %15, %14 : vector<2x64xf32>
    %17 = arith.divf %15, %16 : vector<2x64xf32>
    %c0_12 = arith.constant 0 : index
    %c0_13 = arith.constant 0 : index
    %18 = vector.load %arg6[%c0_12, %c0_13] : memref<2x64xf32, #tpu.memory_space<vmem>>, vector<2x64xf32>
    tpu.vector_store %arg6[%c0_12, %c0_13], %17 {strides = array<i32>} : memref<2x64xf32, #tpu.memory_space<vmem>>, vector<2x64xf32>,
    return
  }
  func.func @transform_0(%arg0: i32) -> (i32, i32) {
    %c0_i32 = arith.constant 0 : i32
    %c0_i32_0 = arith.constant 0 : i32
    %c0_i32_1 = arith.constant 0 : i32
    return %c0_i32, %c0_i32_0 : i32, i32
  }
  func.func @transform_1(%arg0: i32) -> (i32, i32) {
    %c0_i32 = arith.constant 0 : i32
    %c0_i32_0 = arith.constant 0 : i32
    %c0_i32_1 = arith.constant 0 : i32
    return %c0_i32, %c0_i32_0 : i32, i32
  }
  func.func @transform_2(%arg0: i32) -> (i32, i32) {
    %c0_i32 = arith.constant 0 : i32
    %c0_i32_0 = arith.constant 0 : i32
    %c0_i32_1 = arith.constant 0 : i32
    return %c0_i32, %c0_i32_0 : i32, i32
  }
  func.func @transform_3(%arg0: i32) -> (i32, i32) {
    %c0_i32 = arith.constant 0 : i32
    %c0_i32_0 = arith.constant 0 : i32
    %c0_i32_1 = arith.constant 0 : i32
    return %c0_i32, %c0_i32_0 : i32, i32
  }
  func.func @transform_4(%arg0: i32) -> (i32, i32) {
    %c0_i32 = arith.constant 0 : i32
    %c0_i32_0 = arith.constant 0 : i32
    %c0_i32_1 = arith.constant 0 : i32
    return %c0_i32, %c0_i32_0 : i32, i32
  }
  func.func @transform_5(%arg0: i32) -> (i32, i32) {
    %c0_i32 = arith.constant 0 : i32
    %c0_i32_0 = arith.constant 0 : i32
    %c0_i32_1 = arith.constant 0 : i32
    return %c0_i32, %c0_i32_0 : i32, i32
  }
}

module attributes {stable_mosaic.version = 11 : i64} {
  func.func @_up_fused_kernel(%arg0: i32, %arg1: i32, %arg2: memref<1x4x64xbf16, #tpu.memory_space<vmem>>, %arg3: memref<1x1x64xbf16, #tpu.memory_space<vmem>>, %arg4: memref<1x4x256xbf16, #tpu.memory_space<vmem>>, %arg5: memref<64x256xbf16, #tpu.memory_space<vmem>>, %arg6: memref<1x256xf32, #tpu.memory_space<vmem>>, %arg7: memref<1x4x256xbf16, #tpu.memory_space<vmem>>) attributes {dimension_semantics = [#tpu.dimension_semantics<parallel>, #tpu.dimension_semantics<parallel>], iteration_bounds = array<i64: 2, 1>, scalar_prefetch = 0 : i64, scratch_operands = 0 : i64, tpu.core_type = #tpu.core_type<tc>, window_params = [{transform_indices = @transform_0, window_bounds = array<i64: 1, 4, 64>}, {transform_indices = @transform_1, window_bounds = array<i64: 1, 1, 64>}, {transform_indices = @transform_2, window_bounds = array<i64: 1, 4, 256>}, {pipeline_mode = #tpu.pipeline_mode<synchronous>, transform_indices = @transform_3, window_bounds = array<i64: 64, 256>}, {pipeline_mode = #tpu.pipeline_mode<synchronous>, transform_indices = @transform_4, window_bounds = array<i64: 1, 256>}, {transform_indices = @transform_5, window_bounds = array<i64: 1, 4, 256>}]} {
    %c0 = arith.constant 0 : index
    %c0_0 = arith.constant 0 : index
    %c0_1 = arith.constant 0 : index
    %0 = vector.load %arg2[%c0, %c0_0, %c0_1] : memref<1x4x64xbf16, #tpu.memory_space<vmem>>, vector<1x4x64xbf16>
    %1 = vector.shape_cast %0 : vector<1x4x64xbf16> to vector<4x64xbf16>
    %c0_2 = arith.constant 0 : index
    %c0_3 = arith.constant 0 : index
    %c0_4 = arith.constant 0 : index
    %2 = vector.load %arg3[%c0_2, %c0_3, %c0_4] : memref<1x1x64xbf16, #tpu.memory_space<vmem>>, vector<1x1x64xbf16>
    %3 = vector.shape_cast %2 : vector<1x1x64xbf16> to vector<1x64xbf16>
    %4 = vector.broadcast %3 : vector<1x64xbf16> to vector<4x64xbf16>
    %5 = arith.mulf %1, %4 : vector<4x64xbf16>
    %c0_5 = arith.constant 0 : index
    %c0_6 = arith.constant 0 : index
    %6 = vector.load %arg5[%c0_5, %c0_6] : memref<64x256xbf16, #tpu.memory_space<vmem>>, vector<64x256xbf16>
    %cst = arith.constant dense<0.000000e+00> : vector<4x256xf32>
    %7 = tpu.matmul %5, %6, %cst {dimension_numbers = #tpu.dot_dimension_numbers<[1], [0], [0], [1], [0, 0, 1, 1], [], []>} : vector<4x64xbf16>, vector<64x256xbf16>, vector<4x256xf32> -> vector<4x256xf32>
    %c0_7 = arith.constant 0 : index
    %c0_8 = arith.constant 0 : index
    %8 = vector.load %arg6[%c0_7, %c0_8] : memref<1x256xf32, #tpu.memory_space<vmem>>, vector<1x256xf32>
    %9 = vector.broadcast %8 : vector<1x256xf32> to vector<4x256xf32>
    %10 = arith.addf %7, %9 : vector<4x256xf32>
    %cst_9 = arith.constant 0.000000e+00 : f32
    %11 = vector.broadcast %cst_9 : f32 to vector<4x256xf32>
    %12 = arith.cmpf ogt, %10, %11 : vector<4x256xf32>
    %cst_10 = arith.constant 1.000000e-01 : f32
    %13 = vector.broadcast %cst_10 : f32 to vector<4x256xf32>
    %14 = arith.mulf %13, %10 : vector<4x256xf32>
    %15 = arith.select %12, %10, %14 : vector<4x256xi1>, vector<4x256xf32>
    %c0_11 = arith.constant 0 : index
    %c0_12 = arith.constant 0 : index
    %c0_13 = arith.constant 0 : index
    %16 = vector.load %arg4[%c0_11, %c0_12, %c0_13] : memref<1x4x256xbf16, #tpu.memory_space<vmem>>, vector<1x4x256xbf16>
    %17 = vector.shape_cast %16 : vector<1x4x256xbf16> to vector<4x256xbf16>
    %18 = arith.extf %17 : vector<4x256xbf16> to vector<4x256xf32>
    %19 = arith.addf %15, %18 : vector<4x256xf32>
    %20 = vector.shape_cast %19 : vector<4x256xf32> to vector<1x4x256xf32>
    %21 = arith.truncf %20 : vector<1x4x256xf32> to vector<1x4x256xbf16>
    %c0_14 = arith.constant 0 : index
    %c0_15 = arith.constant 0 : index
    %c0_16 = arith.constant 0 : index
    %22 = vector.load %arg7[%c0_14, %c0_15, %c0_16] : memref<1x4x256xbf16, #tpu.memory_space<vmem>>, vector<1x4x256xbf16>
    tpu.vector_store %arg7[%c0_14, %c0_15, %c0_16], %21 {strides = array<i32>} : memref<1x4x256xbf16, #tpu.memory_space<vmem>>, vector<1x4x256xbf16>,
    return
  }
  func.func @transform_0(%arg0: i32, %arg1: i32) -> (i32, i32, i32) {
    %c0_i32 = arith.constant 0 : i32
    %c0_i32_0 = arith.constant 0 : i32
    return %arg0, %arg1, %c0_i32 : i32, i32, i32
  }
  func.func @transform_1(%arg0: i32, %arg1: i32) -> (i32, i32, i32) {
    %c0_i32 = arith.constant 0 : i32
    %c0_i32_0 = arith.constant 0 : i32
    %c0_i32_1 = arith.constant 0 : i32
    return %arg0, %c0_i32, %c0_i32_0 : i32, i32, i32
  }
  func.func @transform_2(%arg0: i32, %arg1: i32) -> (i32, i32, i32) {
    %c0_i32 = arith.constant 0 : i32
    %c0_i32_0 = arith.constant 0 : i32
    return %arg0, %arg1, %c0_i32 : i32, i32, i32
  }
  func.func @transform_3(%arg0: i32, %arg1: i32) -> (i32, i32) {
    %c0_i32 = arith.constant 0 : i32
    %c0_i32_0 = arith.constant 0 : i32
    %c0_i32_1 = arith.constant 0 : i32
    return %c0_i32, %c0_i32_0 : i32, i32
  }
  func.func @transform_4(%arg0: i32, %arg1: i32) -> (i32, i32) {
    %c0_i32 = arith.constant 0 : i32
    %c0_i32_0 = arith.constant 0 : i32
    %c0_i32_1 = arith.constant 0 : i32
    return %c0_i32, %c0_i32_0 : i32, i32
  }
  func.func @transform_5(%arg0: i32, %arg1: i32) -> (i32, i32, i32) {
    %c0_i32 = arith.constant 0 : i32
    %c0_i32_0 = arith.constant 0 : i32
    return %arg0, %arg1, %c0_i32 : i32, i32, i32
  }
}

module attributes {stable_mosaic.version = 11 : i64} {
  func.func @_conv3x3_row_kernel(%arg0: i32, %arg1: i32, %arg2: memref<1x1x4x64xbf16, #tpu.memory_space<vmem>>, %arg3: memref<1x1x4x64xbf16, #tpu.memory_space<vmem>>, %arg4: memref<1x1x4x64xbf16, #tpu.memory_space<vmem>>, %arg5: memref<9x64x64xbf16, #tpu.memory_space<vmem>>, %arg6: memref<1x64xf32, #tpu.memory_space<vmem>>, %arg7: memref<1x1x2x64xbf16, #tpu.memory_space<vmem>>) attributes {dimension_semantics = [#tpu.dimension_semantics<parallel>, #tpu.dimension_semantics<parallel>], iteration_bounds = array<i64: 2, 2>, scalar_prefetch = 0 : i64, scratch_operands = 0 : i64, tpu.core_type = #tpu.core_type<tc>, window_params = [{transform_indices = @transform_0, window_bounds = array<i64: 1, 1, 4, 64>}, {transform_indices = @transform_1, window_bounds = array<i64: 1, 1, 4, 64>}, {transform_indices = @transform_2, window_bounds = array<i64: 1, 1, 4, 64>}, {pipeline_mode = #tpu.pipeline_mode<synchronous>, transform_indices = @transform_3, window_bounds = array<i64: 9, 64, 64>}, {pipeline_mode = #tpu.pipeline_mode<synchronous>, transform_indices = @transform_4, window_bounds = array<i64: 1, 64>}, {transform_indices = @transform_5, window_bounds = array<i64: 1, 1, 2, 64>}]} {
    %cst = arith.constant 0.000000e+00 : f32
    %0 = vector.broadcast %cst : f32 to vector<2x64xf32>
    %c0 = arith.constant 0 : index
    %c0_0 = arith.constant 0 : index
    %c0_1 = arith.constant 0 : index
    %c0_2 = arith.constant 0 : index
    %1 = vector.load %arg2[%c0, %c0_0, %c0_1, %c0_2] : memref<1x1x4x64xbf16, #tpu.memory_space<vmem>>, vector<1x1x4x64xbf16>
    %2 = vector.shape_cast %1 : vector<1x1x4x64xbf16> to vector<4x64xbf16>
    %c0_3 = arith.constant 0 : index
    %c0_4 = arith.constant 0 : index
    %c0_5 = arith.constant 0 : index
    %3 = vector.load %arg5[%c0_3, %c0_4, %c0_5] : memref<9x64x64xbf16, #tpu.memory_space<vmem>>, vector<1x64x64xbf16>
    %4 = vector.shape_cast %3 : vector<1x64x64xbf16> to vector<64x64xbf16>
    %cst_6 = arith.constant dense<0.000000e+00> : vector<4x64xf32>
    %5 = tpu.matmul %2, %4, %cst_6 {dimension_numbers = #tpu.dot_dimension_numbers<[1], [0], [0], [1], [0, 0, 1, 1], [], []>} : vector<4x64xbf16>, vector<64x64xbf16>, vector<4x64xf32> -> vector<4x64xf32>
    %6 = vector.extract_strided_slice %5 {offsets = [0, 0], sizes = [2, 64], strides = [1, 1]} : vector<4x64xf32> to vector<2x64xf32>
    %7 = arith.addf %0, %6 : vector<2x64xf32>
    %c1 = arith.constant 1 : index
    %c0_7 = arith.constant 0 : index
    %c0_8 = arith.constant 0 : index
    %8 = vector.load %arg5[%c1, %c0_7, %c0_8] : memref<9x64x64xbf16, #tpu.memory_space<vmem>>, vector<1x64x64xbf16>
    %9 = vector.shape_cast %8 : vector<1x64x64xbf16> to vector<64x64xbf16>
    %cst_9 = arith.constant dense<0.000000e+00> : vector<4x64xf32>
    %10 = tpu.matmul %2, %9, %cst_9 {dimension_numbers = #tpu.dot_dimension_numbers<[1], [0], [0], [1], [0, 0, 1, 1], [], []>} : vector<4x64xbf16>, vector<64x64xbf16>, vector<4x64xf32> -> vector<4x64xf32>
    %11 = vector.extract_strided_slice %10 {offsets = [1, 0], sizes = [2, 64], strides = [1, 1]} : vector<4x64xf32> to vector<2x64xf32>
    %12 = arith.addf %7, %11 : vector<2x64xf32>
    %c2 = arith.constant 2 : index
    %c0_10 = arith.constant 0 : index
    %c0_11 = arith.constant 0 : index
    %13 = vector.load %arg5[%c2, %c0_10, %c0_11] : memref<9x64x64xbf16, #tpu.memory_space<vmem>>, vector<1x64x64xbf16>
    %14 = vector.shape_cast %13 : vector<1x64x64xbf16> to vector<64x64xbf16>
    %cst_12 = arith.constant dense<0.000000e+00> : vector<4x64xf32>
    %15 = tpu.matmul %2, %14, %cst_12 {dimension_numbers = #tpu.dot_dimension_numbers<[1], [0], [0], [1], [0, 0, 1, 1], [], []>} : vector<4x64xbf16>, vector<64x64xbf16>, vector<4x64xf32> -> vector<4x64xf32>
    %16 = vector.extract_strided_slice %15 {offsets = [2, 0], sizes = [2, 64], strides = [1, 1]} : vector<4x64xf32> to vector<2x64xf32>
    %17 = arith.addf %12, %16 : vector<2x64xf32>
    %c0_13 = arith.constant 0 : index
    %c0_14 = arith.constant 0 : index
    %c0_15 = arith.constant 0 : index
    %c0_16 = arith.constant 0 : index
    %18 = vector.load %arg3[%c0_13, %c0_14, %c0_15, %c0_16] : memref<1x1x4x64xbf16, #tpu.memory_space<vmem>>, vector<1x1x4x64xbf16>
    %19 = vector.shape_cast %18 : vector<1x1x4x64xbf16> to vector<4x64xbf16>
    %c3 = arith.constant 3 : index
    %c0_17 = arith.constant 0 : index
    %c0_18 = arith.constant 0 : index
    %20 = vector.load %arg5[%c3, %c0_17, %c0_18] : memref<9x64x64xbf16, #tpu.memory_space<vmem>>, vector<1x64x64xbf16>
    %21 = vector.shape_cast %20 : vector<1x64x64xbf16> to vector<64x64xbf16>
    %cst_19 = arith.constant dense<0.000000e+00> : vector<4x64xf32>
    %22 = tpu.matmul %19, %21, %cst_19 {dimension_numbers = #tpu.dot_dimension_numbers<[1], [0], [0], [1], [0, 0, 1, 1], [], []>} : vector<4x64xbf16>, vector<64x64xbf16>, vector<4x64xf32> -> vector<4x64xf32>
    %23 = vector.extract_strided_slice %22 {offsets = [0, 0], sizes = [2, 64], strides = [1, 1]} : vector<4x64xf32> to vector<2x64xf32>
    %24 = arith.addf %17, %23 : vector<2x64xf32>
    %c4 = arith.constant 4 : index
    %c0_20 = arith.constant 0 : index
    %c0_21 = arith.constant 0 : index
    %25 = vector.load %arg5[%c4, %c0_20, %c0_21] : memref<9x64x64xbf16, #tpu.memory_space<vmem>>, vector<1x64x64xbf16>
    %26 = vector.shape_cast %25 : vector<1x64x64xbf16> to vector<64x64xbf16>
    %cst_22 = arith.constant dense<0.000000e+00> : vector<4x64xf32>
    %27 = tpu.matmul %19, %26, %cst_22 {dimension_numbers = #tpu.dot_dimension_numbers<[1], [0], [0], [1], [0, 0, 1, 1], [], []>} : vector<4x64xbf16>, vector<64x64xbf16>, vector<4x64xf32> -> vector<4x64xf32>
    %28 = vector.extract_strided_slice %27 {offsets = [1, 0], sizes = [2, 64], strides = [1, 1]} : vector<4x64xf32> to vector<2x64xf32>
    %29 = arith.addf %24, %28 : vector<2x64xf32>
    %c5 = arith.constant 5 : index
    %c0_23 = arith.constant 0 : index
    %c0_24 = arith.constant 0 : index
    %30 = vector.load %arg5[%c5, %c0_23, %c0_24] : memref<9x64x64xbf16, #tpu.memory_space<vmem>>, vector<1x64x64xbf16>
    %31 = vector.shape_cast %30 : vector<1x64x64xbf16> to vector<64x64xbf16>
    %cst_25 = arith.constant dense<0.000000e+00> : vector<4x64xf32>
    %32 = tpu.matmul %19, %31, %cst_25 {dimension_numbers = #tpu.dot_dimension_numbers<[1], [0], [0], [1], [0, 0, 1, 1], [], []>} : vector<4x64xbf16>, vector<64x64xbf16>, vector<4x64xf32> -> vector<4x64xf32>
    %33 = vector.extract_strided_slice %32 {offsets = [2, 0], sizes = [2, 64], strides = [1, 1]} : vector<4x64xf32> to vector<2x64xf32>
    %34 = arith.addf %29, %33 : vector<2x64xf32>
    %c0_26 = arith.constant 0 : index
    %c0_27 = arith.constant 0 : index
    %c0_28 = arith.constant 0 : index
    %c0_29 = arith.constant 0 : index
    %35 = vector.load %arg4[%c0_26, %c0_27, %c0_28, %c0_29] : memref<1x1x4x64xbf16, #tpu.memory_space<vmem>>, vector<1x1x4x64xbf16>
    %36 = vector.shape_cast %35 : vector<1x1x4x64xbf16> to vector<4x64xbf16>
    %c6 = arith.constant 6 : index
    %c0_30 = arith.constant 0 : index
    %c0_31 = arith.constant 0 : index
    %37 = vector.load %arg5[%c6, %c0_30, %c0_31] : memref<9x64x64xbf16, #tpu.memory_space<vmem>>, vector<1x64x64xbf16>
    %38 = vector.shape_cast %37 : vector<1x64x64xbf16> to vector<64x64xbf16>
    %cst_32 = arith.constant dense<0.000000e+00> : vector<4x64xf32>
    %39 = tpu.matmul %36, %38, %cst_32 {dimension_numbers = #tpu.dot_dimension_numbers<[1], [0], [0], [1], [0, 0, 1, 1], [], []>} : vector<4x64xbf16>, vector<64x64xbf16>, vector<4x64xf32> -> vector<4x64xf32>
    %40 = vector.extract_strided_slice %39 {offsets = [0, 0], sizes = [2, 64], strides = [1, 1]} : vector<4x64xf32> to vector<2x64xf32>
    %41 = arith.addf %34, %40 : vector<2x64xf32>
    %c7 = arith.constant 7 : index
    %c0_33 = arith.constant 0 : index
    %c0_34 = arith.constant 0 : index
    %42 = vector.load %arg5[%c7, %c0_33, %c0_34] : memref<9x64x64xbf16, #tpu.memory_space<vmem>>, vector<1x64x64xbf16>
    %43 = vector.shape_cast %42 : vector<1x64x64xbf16> to vector<64x64xbf16>
    %cst_35 = arith.constant dense<0.000000e+00> : vector<4x64xf32>
    %44 = tpu.matmul %36, %43, %cst_35 {dimension_numbers = #tpu.dot_dimension_numbers<[1], [0], [0], [1], [0, 0, 1, 1], [], []>} : vector<4x64xbf16>, vector<64x64xbf16>, vector<4x64xf32> -> vector<4x64xf32>
    %45 = vector.extract_strided_slice %44 {offsets = [1, 0], sizes = [2, 64], strides = [1, 1]} : vector<4x64xf32> to vector<2x64xf32>
    %46 = arith.addf %41, %45 : vector<2x64xf32>
    %c8 = arith.constant 8 : index
    %c0_36 = arith.constant 0 : index
    %c0_37 = arith.constant 0 : index
    %47 = vector.load %arg5[%c8, %c0_36, %c0_37] : memref<9x64x64xbf16, #tpu.memory_space<vmem>>, vector<1x64x64xbf16>
    %48 = vector.shape_cast %47 : vector<1x64x64xbf16> to vector<64x64xbf16>
    %cst_38 = arith.constant dense<0.000000e+00> : vector<4x64xf32>
    %49 = tpu.matmul %36, %48, %cst_38 {dimension_numbers = #tpu.dot_dimension_numbers<[1], [0], [0], [1], [0, 0, 1, 1], [], []>} : vector<4x64xbf16>, vector<64x64xbf16>, vector<4x64xf32> -> vector<4x64xf32>
    %50 = vector.extract_strided_slice %49 {offsets = [2, 0], sizes = [2, 64], strides = [1, 1]} : vector<4x64xf32> to vector<2x64xf32>
    %51 = arith.addf %46, %50 : vector<2x64xf32>
    %c0_39 = arith.constant 0 : index
    %c0_40 = arith.constant 0 : index
    %52 = vector.load %arg6[%c0_39, %c0_40] : memref<1x64xf32, #tpu.memory_space<vmem>>, vector<1x64xf32>
    %53 = vector.broadcast %52 : vector<1x64xf32> to vector<2x64xf32>
    %54 = arith.addf %51, %53 : vector<2x64xf32>
    %cst_41 = arith.constant 0.000000e+00 : f32
    %55 = vector.broadcast %cst_41 : f32 to vector<2x64xf32>
    %56 = arith.cmpf ogt, %54, %55 : vector<2x64xf32>
    %cst_42 = arith.constant 1.000000e-01 : f32
    %57 = vector.broadcast %cst_42 : f32 to vector<2x64xf32>
    %58 = arith.mulf %57, %54 : vector<2x64xf32>
    %59 = arith.select %56, %54, %58 : vector<2x64xi1>, vector<2x64xf32>
    %60 = vector.shape_cast %59 : vector<2x64xf32> to vector<1x1x2x64xf32>
    %61 = arith.truncf %60 : vector<1x1x2x64xf32> to vector<1x1x2x64xbf16>
    %c0_43 = arith.constant 0 : index
    %c0_44 = arith.constant 0 : index
    %c0_45 = arith.constant 0 : index
    %c0_46 = arith.constant 0 : index
    %62 = vector.load %arg7[%c0_43, %c0_44, %c0_45, %c0_46] : memref<1x1x2x64xbf16, #tpu.memory_space<vmem>>, vector<1x1x2x64xbf16>
    tpu.vector_store %arg7[%c0_43, %c0_44, %c0_45, %c0_46], %61 {strides = array<i32>} : memref<1x1x2x64xbf16, #tpu.memory_space<vmem>>, vector<1x1x2x64xbf16>,
    return
  }
  func.func @transform_0(%arg0: i32, %arg1: i32) -> (i32, i32, i32, i32) {
    %c0_i32 = arith.constant 0 : i32
    %c0_i32_0 = arith.constant 0 : i32
    %c0_i32_1 = arith.constant 0 : i32
    return %arg0, %arg1, %c0_i32, %c0_i32_0 : i32, i32, i32, i32
  }
  func.func @transform_1(%arg0: i32, %arg1: i32) -> (i32, i32, i32, i32) {
    %c1_i32 = arith.constant 1 : i32
    %0 = arith.addi %arg1, %c1_i32 : i32
    %c0_i32 = arith.constant 0 : i32
    %c0_i32_0 = arith.constant 0 : i32
    %c0_i32_1 = arith.constant 0 : i32
    return %arg0, %0, %c0_i32, %c0_i32_0 : i32, i32, i32, i32
  }
  func.func @transform_2(%arg0: i32, %arg1: i32) -> (i32, i32, i32, i32) {
    %c2_i32 = arith.constant 2 : i32
    %0 = arith.addi %arg1, %c2_i32 : i32
    %c0_i32 = arith.constant 0 : i32
    %c0_i32_0 = arith.constant 0 : i32
    %c0_i32_1 = arith.constant 0 : i32
    return %arg0, %0, %c0_i32, %c0_i32_0 : i32, i32, i32, i32
  }
  func.func @transform_3(%arg0: i32, %arg1: i32) -> (i32, i32, i32) {
    %c0_i32 = arith.constant 0 : i32
    %c0_i32_0 = arith.constant 0 : i32
    %c0_i32_1 = arith.constant 0 : i32
    %c0_i32_2 = arith.constant 0 : i32
    return %c0_i32, %c0_i32_0, %c0_i32_1 : i32, i32, i32
  }
  func.func @transform_4(%arg0: i32, %arg1: i32) -> (i32, i32) {
    %c0_i32 = arith.constant 0 : i32
    %c0_i32_0 = arith.constant 0 : i32
    %c0_i32_1 = arith.constant 0 : i32
    return %c0_i32, %c0_i32_0 : i32, i32
  }
  func.func @transform_5(%arg0: i32, %arg1: i32) -> (i32, i32, i32, i32) {
    %c0_i32 = arith.constant 0 : i32
    %c0_i32_0 = arith.constant 0 : i32
    %c0_i32_1 = arith.constant 0 : i32
    return %arg0, %arg1, %c0_i32, %c0_i32_0 : i32, i32, i32, i32
  }
}

module attributes {stable_mosaic.version = 11 : i64} {
  func.func @_mm_bias_act_kernel(%arg0: i32, %arg1: memref<8x64xbf16, #tpu.memory_space<vmem>>, %arg2: memref<64x128xbf16, #tpu.memory_space<vmem>>, %arg3: memref<1x128xf32, #tpu.memory_space<vmem>>, %arg4: memref<8x128xf32, #tpu.memory_space<vmem>>) attributes {dimension_semantics = [#tpu.dimension_semantics<parallel>], iteration_bounds = array<i64: 1>, scalar_prefetch = 0 : i64, scratch_operands = 0 : i64, tpu.core_type = #tpu.core_type<tc>, window_params = [{transform_indices = @transform_0, window_bounds = array<i64: 8, 64>}, {pipeline_mode = #tpu.pipeline_mode<synchronous>, transform_indices = @transform_1, window_bounds = array<i64: 64, 128>}, {pipeline_mode = #tpu.pipeline_mode<synchronous>, transform_indices = @transform_2, window_bounds = array<i64: 1, 128>}, {transform_indices = @transform_3, window_bounds = array<i64: 8, 128>}]} {
    %c0 = arith.constant 0 : index
    %c0_0 = arith.constant 0 : index
    %0 = vector.load %arg1[%c0, %c0_0] : memref<8x64xbf16, #tpu.memory_space<vmem>>, vector<8x64xbf16>
    %c0_1 = arith.constant 0 : index
    %c0_2 = arith.constant 0 : index
    %1 = vector.load %arg2[%c0_1, %c0_2] : memref<64x128xbf16, #tpu.memory_space<vmem>>, vector<64x128xbf16>
    %cst = arith.constant dense<0.000000e+00> : vector<8x128xf32>
    %2 = tpu.matmul %0, %1, %cst {dimension_numbers = #tpu.dot_dimension_numbers<[1], [0], [0], [1], [0, 0, 1, 1], [], []>} : vector<8x64xbf16>, vector<64x128xbf16>, vector<8x128xf32> -> vector<8x128xf32>
    %c0_3 = arith.constant 0 : index
    %c0_4 = arith.constant 0 : index
    %3 = vector.load %arg3[%c0_3, %c0_4] : memref<1x128xf32, #tpu.memory_space<vmem>>, vector<1x128xf32>
    %4 = vector.broadcast %3 : vector<1x128xf32> to vector<8x128xf32>
    %5 = arith.addf %2, %4 : vector<8x128xf32>
    %c0_5 = arith.constant 0 : index
    %c0_6 = arith.constant 0 : index
    %6 = vector.load %arg4[%c0_5, %c0_6] : memref<8x128xf32, #tpu.memory_space<vmem>>, vector<8x128xf32>
    tpu.vector_store %arg4[%c0_5, %c0_6], %5 {strides = array<i32>} : memref<8x128xf32, #tpu.memory_space<vmem>>, vector<8x128xf32>,
    return
  }
  func.func @transform_0(%arg0: i32) -> (i32, i32) {
    %c0_i32 = arith.constant 0 : i32
    %c0_i32_0 = arith.constant 0 : i32
    return %arg0, %c0_i32 : i32, i32
  }
  func.func @transform_1(%arg0: i32) -> (i32, i32) {
    %c0_i32 = arith.constant 0 : i32
    %c0_i32_0 = arith.constant 0 : i32
    %c0_i32_1 = arith.constant 0 : i32
    return %c0_i32, %c0_i32_0 : i32, i32
  }
  func.func @transform_2(%arg0: i32) -> (i32, i32) {
    %c0_i32 = arith.constant 0 : i32
    %c0_i32_0 = arith.constant 0 : i32
    %c0_i32_1 = arith.constant 0 : i32
    return %c0_i32, %c0_i32_0 : i32, i32
  }
  func.func @transform_3(%arg0: i32) -> (i32, i32) {
    %c0_i32 = arith.constant 0 : i32
    %c0_i32_0 = arith.constant 0 : i32
    return %arg0, %c0_i32 : i32, i32
  }
}

</mosaic_0001>

<bundles_post_ra>
// kernel: unet1x3_forward.9
= control target key start
LH: loop header
LB: loop body
LE: loop exit
PB: predicated region body
PF: predicated region fallthrough
CT: control target
= control target key end

     0   :  { %s1253_s18 = smov 0   ;;  %s1255_s19 = smov 0   ;;  %s1414_s0 = inlined_call_operand.vmem [shape: bf16[2,16,16,3], index: 0, kind: input, shape index: {}, may-alias: {0,1,2}]   ;;  %s1415_s1 = inlined_call_operand.vmem [shape: bf16[2,16,16,3], index: 1, kind: input, shape index: {}, may-alias: {0,1,2}]   ;;  %s1416_s2 = inlined_call_operand.vmem [shape: bf16[2,16,16,3], index: 2, kind: input, shape index: {}, may-alias: {0,1,2}]   ;;  %s1417_s3 = inlined_call_operand.vmem [shape: bf16[9,3,32], index: 3, kind: input, shape index: {}]   ;;  %s1418_s4 = inlined_call_operand.vmem [shape: f32[1,32], index: 4, kind: input, shape index: {}]   ;;  %s1419_s5 = inlined_call_operand.vmem [shape: bf16[2,14,14,32], index: 5, kind: output, shape index: {}]  }
   0x1   :  { %s1257_s20 = smov 0   ;;  %s1259_s21 = smov 0  }
   0x2   :  { %s1261_s22 = smov 0  }
   0x3 LB: > { %s24_s23 = sadd.s32 1, %s1210_s20  ;;  %s27_s24 = sadd.s32 1, %s1214_s21  ;;  %s1218_s22 = sphi %s1261_s22, %s15_s22   ;;  %s1214_s21 = sphi %s1259_s21, %s1423_s21   ;;  %s1210_s20 = sphi %s1257_s20, %s1422_s20   ;;  %s1206_s19 = sphi %s1255_s19, %s1421_s19   ;;  %s1202_s18 = sphi %s1253_s18, %s1420_s18  }
   0x4   : > { %p25_p0 = scmp.ge.s32.totalorder %s24_s23, 14  ;;  %p1022_p1 = scmp.ge.s32.totalorder %s1218_s22, 1 }
   0x5   : > { %p247_p2 = scmp.lt.s32.totalorder %s1218_s22, 29 }
   0x6   : > { %s1425_s23 = smov (%p25_p0, %s24_s23), 0  ;;  %s1427_s24 = smov (!%p25_p0, %s27_s24), %s1214_s21 }
   0x7   : > { %p248_p3 = pnand %p1022_p1, %p247_p2  ;;  %p29_p4 = scmp.ge.s32.totalorder %s1427_s24, 2 }
   0x8   : > { %v346_v0 = vld [vmem:[%s1417_s3] sm:$0x3] (!%p248_p3)  ;;  %vm356_vm0 = vcmask (!%p248_p3), 1040384   ;;  %vm357_vm1 = vcmask (!%p248_p3), 1041408   ;;  %v1220_v1 = vmov (!%p248_p3), 0.0   ;;  %v1221_v2 = vmov (!%p248_p3), 65535  }
   0x9   : > { %s1429_s24 = smov (%p29_p4, %s1427_s24), 0  ;;  %251 = sbr.rel (%p248_p3) target bundleno = 283 (0x11b), region = 40 }
   0xa   : > { %1079 = vmatprep.subr.bf16.mxu0 (!%p248_p3), %v1220_v1  ;;  %v358_v3 = vsel (!%p248_p3), %vm356_vm0, 4294967295, %v1221_v2  ;;  %1085 = vmatprep.subr.bf16.mxu1 (!%p248_p3), %v1220_v1  ;;  %v1036_v4 = vld [vmem:[%s1417_s3 + $0x2] sm:$0x3] (!%p248_p3)  ;;  %p303_p5 = scmp.lt.s32.totalorder (!%p248_p3), %s1206_s19, 1  ;;  %p305_p6 = scmp.lt.s32.totalorder (!%p248_p3), %s1202_s18, 15  ;;  %vm1222_vm2 = vmmov (!%p248_p3), 0  }
   0xb   : > { %v1297_v5 = vsel (!%p248_p3), %vm357_vm1, %v358_v3, 0  ;;  %1081 = vmatprep.mubr.msk.bf16.mxu0 (!%p248_p3), %vm1222_vm2, %v1220_v1  ;;  %1087 = vmatprep.mubr.msk.bf16.mxu1 (!%p248_p3), %vm1222_vm2, %v1220_v1  ;;  %v1038_v8 = vld [vmem:[%s1417_s3 + $0x4] sm:$0x3] (!%p248_p3)  ;;  %v1040_v9 = vld [vmem:[%s1417_s3 + $0x6] sm:$0x3] (!%p248_p3)  ;;  %s312_s11 = sadd.s32 (!%p248_p3), 1, %s1202_s18 }
   0xc   : > { %v361_v6 = vand.u32 (!%p248_p3), %v1297_v5, %v346_v0  ;;  %v409_v7 = vand.u32 (!%p248_p3), %v1036_v4, %v1297_v5  ;;  %p315_p7 = scmp.lt.s32.totalorder (!%p248_p3), %s312_s11, 15  ;;  %s323_s14 = sadd.s32 (!%p248_p3), 2, %s1202_s18  ;;  %vm352_vm3 = vcmask (!%p248_p3), 23552   ;;  %v465_v10 = vand.u32 (!%p248_p3), %v1038_v8, %v1297_v5  ;;  %v1043_v13 = vld [vmem:[%s1417_s3 + $0x8] sm:$0x3] (!%p248_p3) }
   0xd   : > { %v531_v11 = vand.u32 (!%p248_p3), %v1040_v9, %v1297_v5  ;;  %p326_p8 = scmp.lt.s32.totalorder (!%p248_p3), %s323_s14, 15  ;;  %v1045_v14 = vld [vmem:[%s1417_s3 + $0xa] sm:$0x3] (!%p248_p3)  ;;  %v579_v16 = vand.u32 (!%p248_p3), %v1043_v13, %v1297_v5  ;;  %v1047_v18 = vld [vmem:[%s1417_s3 + $0xc] sm:$0x3] (!%p248_p3)  ;;  %vm454_vm4 = vcmask (!%p248_p3), 1046528  }
   0xe   : > { %1080 = vmatpush3.bf16.msra.mxu0 (!%p248_p3), %v361_v6  ;;  %1086 = vmatpush3.bf16.msra.mxu1 (!%p248_p3), %v409_v7  ;;  %v634_v17 = vand.u32 (!%p248_p3), %v1045_v14, %v1297_v5  ;;  %v1050_v19 = vld [vmem:[%s1417_s3 + $0xe] sm:$0x3] (!%p248_p3)  ;;  %v699_v20 = vand.u32 (!%p248_p3), %v1047_v18, %v1297_v5  ;;  %v1052_v22 = vld [vmem:[%s1417_s3 + $0x10] sm:$0x3] (!%p248_p3)  ;;  %vm510_vm5 = vcmask (!%p248_p3), 1045504   ;;  %p336_p9 = scmp.lt.s32.totalorder (!%p248_p3), %s1202_s18, 13 }
   0xf   : > { %1091 = vmatprep.subr.bf16.mxu0 (!%p248_p3), %v1220_v1  ;;  %1097 = vmatprep.subr.bf16.mxu1 (!%p248_p3), %v1220_v1  ;;  %v747_v21 = vand.u32 (!%p248_p3), %v1050_v19, %v1297_v5  ;;  %v802_v24 = vand.u32 (!%p248_p3), %v1052_v22, %v1297_v5  ;;  %vm879_vm8 = vcmask (!%p248_p3), 256000   ;;  %vm877_vm9 = vcmask (!%p248_p3), 257024  }
  0x10   : > { %s1431_s19 = smov (!%p303_p5, %s1206_s19), 1  ;;  %s1433_s11 = smov (!%p315_p7, %s312_s11), 15 }
  0x11   : > { %s306_s29 = scalar_select %p305_p6, %s1202_s18, 15 }
  0x12   : > { %s1310_s30 = sshll.u32 %s1431_s19, 5  ;;  %s1435_s14 = smov (!%p326_p8, %s323_s14), 15 }
  0x13   : > { %s1023_s6 = sshll.u32 %s306_s29, 1  ;;  %s1026_s25 = sshll.u32 %s1433_s11, 1 }
  0x14   : > { %s309_s12 = sadd.s32 %s1310_s30, %s1023_s6  ;;  %s319_s26 = sadd.s32 %s1026_s25, %s1310_s30 }
  0x15   : > { %s1025_s13 = sshll.u32 %s309_s12, 2  ;;  %s1029_s27 = sshll.u32 %s1435_s14, 1 }
  0x16   : > { %s311_s17 = scalar_lea.vmem %s1414_s0, %s1025_s13  ;;  %s1028_s28 = sshll.u32 %s319_s26, 2 }
  0x17   : > { %v1177_v12 = vld [vmem:[%s311_s17] sm:$0xff]   ;;  %s330_s9 = sadd.s32 %s1029_s27, %s1310_s30  ;;  %s321_s12 = scalar_lea.vmem %s1415_s1, %s1028_s28 }
  0x18   : > { %1082 = vmatmul.mubr.msk.bf16.vlgmr.msra.gmra.mrb[0].mxu0 %vm352_vm3, %v1177_v12  ;;  %1088 = vmatmul.mubr.msk.bf16.vlgmr.msra.gmra.mrb[0].mxu1 %vm352_vm3, %v1177_v12  ;;  %s1031_s13 = sshll.u32 %s330_s9, 2  ;;  %v1178_v15 = vld [vmem:[%s321_s12] sm:$0xff]   ;;  %s1437_s18 = smov (!%p336_p9, %s1202_s18), 13 }
  0x19   : > { %1092 = vmatpush3.bf16.msra.mxu0 %v465_v10  ;;  %1098 = vmatpush3.bf16.msra.mxu1 %v531_v11  ;;  %s332_s16 = scalar_lea.vmem %s1416_s2, %s1031_s13  ;;  %s1133_s29 = smul.u32 28, %s1431_s19 }
  0x1a   : > { %1093 = vmatprep.mubr.msk.bf16.mxu0 %vm1222_vm2, %v1220_v1  ;;  %1099 = vmatprep.mubr.msk.bf16.mxu1 %vm1222_vm2, %v1220_v1  ;;  %v1179_v23 = vld [vmem:[%s332_s16] sm:$0xff]   ;;  %s1032_s6 = sshll.u32 %s1437_s18, 1 }
  0x1b   : > { %1103 = vmatprep.subr.bf16.mxu0 %v1220_v1  ;;  %1109 = vmatprep.subr.bf16.mxu1 %v1220_v1  ;;  %s340_s9 = sadd.s32 %s1133_s29, %s1032_s6 }
  0x1c   : > { %s1033_s10 = sshll.u32 %s340_s9, 2 }
  0x1d   : > { %s342_s11 = scalar_lea.vmem %s1419_s5, %s1033_s10 }
  0x20   : > { %1094 = vmatmul.mubr.msk.bf16.vlgmr.msra.gmra.mrb[4].mxu0 %vm352_vm3, %v1177_v12  ;;  %1100 = vmatmul.mubr.msk.bf16.vlgmr.msra.gmra.mrb[4].mxu1 %vm352_vm3, %v1178_v15 }
  0x21   : > { %1104 = vmatpush3.bf16.msra.mxu0 %v579_v16  ;;  %1110 = vmatpush3.bf16.msra.mxu1 %v634_v17 }
  0x22   : > { %1105 = vmatprep.mubr.msk.bf16.mxu0 %vm1222_vm2, %v1220_v1  ;;  %1111 = vmatprep.mubr.msk.bf16.mxu1 %vm1222_vm2, %v1220_v1 }
  0x23   : > { %1115 = vmatprep.subr.bf16.mxu0 %v1220_v1  ;;  %1121 = vmatprep.subr.bf16.mxu1 %v1220_v1 }
  0x28   : > { %1106 = vmatmul.mubr.msk.bf16.vlgmr.msra.gmra.mrb[8].mxu0 %vm352_vm3, %v1178_v15  ;;  %1112 = vmatmul.mubr.msk.bf16.vlgmr.msra.gmra.mrb[8].mxu1 %vm352_vm3, %v1178_v15 }
  0x29   : > { %1116 = vmatpush3.bf16.msra.mxu0 %v699_v20  ;;  %1122 = vmatpush3.bf16.msra.mxu1 %v747_v21 }
  0x2a   : > { %1117 = vmatprep.mubr.msk.bf16.mxu0 %vm1222_vm2, %v1220_v1  ;;  %1123 = vmatprep.mubr.msk.bf16.mxu1 %vm1222_vm2, %v1220_v1 }
  0x2b   : > { %1127 = vmatprep.subr.bf16.mxu0 %v1220_v1 }
  0x30   : > { %1118 = vmatmul.mubr.msk.bf16.vlgmr.msra.gmra.mrb[12].mxu0 %vm352_vm3, %v1179_v23  ;;  %1124 = vmatmul.mubr.msk.bf16.vlgmr.msra.gmra.mrb[12].mxu1 %vm352_vm3, %v1179_v23 }
  0x31   : > { %1128 = vmatpush3.bf16.msra.mxu0 %v802_v24  ;;  %1129 = vmatprep.mubr.msk.bf16.mxu0 %vm1222_vm2, %v1220_v1 }
  0x38   : > { %1130 = vmatmul.mubr.msk.bf16.vlgmr.msra.gmra.mrb[16].mxu0 %vm352_vm3, %v1179_v23 }
  0xeb   : > { %v397_v25 = vpop.f32.mrb[0].mxu0  ;;  %v445_v26 = vpop.f32.mrb[0].mxu1 }
  0xec   : > { %v455_v27 = vrot.slane %v445_v26, 1  ;;  %v1083_v28 = vpop.f32.mrb[1].mxu0  ;;  %v1089_v29 = vpop.f32.mrb[1].mxu1 }
  0xed   : > { %v400_v30 = vpop.f32.mrb[2].mxu0  ;;  %v448_v31 = vpop.f32.mrb[2].mxu1  ;;  %v1054_v28 = vld [vmem:[%s1418_s4] ss:$0 sm:$0xff] }
  0xee   : > { %v456_v32 = vrot.slane %v448_v31, 1  ;;  %v1084_v33 = vpop.f32.mrb[3].mxu0  ;;  %v1090_v34 = vpop.f32.mrb[3].mxu1 }
  0xf0   : > { %v457_v35 = vsel %vm454_vm4, %v455_v27, %v456_v32  ;;  %v461_v36 = vadd.f32 %v456_v32, %v400_v30 }
  0xf1   : > { %v460_v37 = vadd.f32 %v457_v35, %v397_v25 }
  0xf3   : > { %v501_v38 = vpop.f32.mrb[4].mxu0  ;;  %v567_v39 = vpop.f32.mrb[4].mxu1 }
  0xf4   : > { %v1095_v40 = vpop.f32.mrb[5].mxu0  ;;  %v1101_v41 = vpop.f32.mrb[5].mxu1  ;;  %v511_v44 = vrot.slane %v501_v38, 2 }
  0xf5   : > { %v504_v42 = vpop.f32.mrb[6].mxu0  ;;  %v570_v43 = vpop.f32.mrb[6].mxu1 }
  0xf6   : > { %v512_v45 = vrot.slane %v504_v42, 2  ;;  %v1096_v46 = vpop.f32.mrb[7].mxu0  ;;  %v1102_v47 = vpop.f32.mrb[7].mxu1 }
  0xf8   : > { %v513_v48 = vsel %vm510_vm5, %v511_v44, %v512_v45  ;;  %v517_v49 = vadd.f32 %v512_v45, %v461_v36 }
  0xf9   : > { %v516_v50 = vadd.f32 %v513_v48, %v460_v37 }
  0xfa   : > { %v575_v51 = vadd.f32 %v570_v43, %v517_v49 }
  0xfb   : > { %v574_v52 = vadd.f32 %v567_v39, %v516_v50  ;;  %v615_v53 = vpop.f32.mrb[8].mxu0  ;;  %v670_v54 = vpop.f32.mrb[8].mxu1 }
  0xfc   : > { %v1107_v55 = vpop.f32.mrb[9].mxu0  ;;  %v679_v56 = vrot.slane %v670_v54, 2  ;;  %v1113_v57 = vpop.f32.mrb[9].mxu1  ;;  %v624_v60 = vrot.slane %v615_v53, 1 }
  0xfd   : > { %v618_v58 = vpop.f32.mrb[10].mxu0  ;;  %v673_v59 = vpop.f32.mrb[10].mxu1 }
  0xfe   : > { %v625_v61 = vrot.slane %v618_v58, 1  ;;  %v1108_v62 = vpop.f32.mrb[11].mxu0  ;;  %v680_v63 = vrot.slane %v673_v59, 2  ;;  %v1114_v0 = vpop.f32.mrb[11].mxu1 }
 0x100   : > { %v626_v1 = vsel %vm454_vm4, %v624_v60, %v625_v61  ;;  %v630_v2 = vadd.f32 %v625_v61, %v575_v51  ;;  %v681_v3 = vsel %vm510_vm5, %v679_v56, %v680_v63 }
 0x101   : > { %v629_v4 = vadd.f32 %v626_v1, %v574_v52 }
 0x102   : > { %v685_v5 = vadd.f32 %v680_v63, %v630_v2 }
 0x103   : > { %v684_v6 = vadd.f32 %v681_v3, %v629_v4  ;;  %v735_v7 = vpop.f32.mrb[12].mxu0  ;;  %v783_v8 = vpop.f32.mrb[12].mxu1 }
 0x104   : > { %v792_v9 = vrot.slane %v783_v8, 1  ;;  %v1119_v10 = vpop.f32.mrb[13].mxu0  ;;  %v1125_v11 = vpop.f32.mrb[13].mxu1 }
 0x105   : > { %v742_v12 = vadd.f32 %v735_v7, %v684_v6  ;;  %v738_v13 = vpop.f32.mrb[14].mxu0  ;;  %v786_v14 = vpop.f32.mrb[14].mxu1 }
 0x106   : > { %v743_v15 = vadd.f32 %v738_v13, %v685_v5  ;;  %v793_v16 = vrot.slane %v786_v14, 1  ;;  %v1120_v17 = vpop.f32.mrb[15].mxu0  ;;  %v1126_v18 = vpop.f32.mrb[15].mxu1 }
 0x108   : > { %v794_v19 = vsel %vm454_vm4, %v792_v9, %v793_v16  ;;  %v798_v20 = vadd.f32 %v793_v16, %v743_v15 }
 0x109   : > { %v797_v21 = vadd.f32 %v794_v19, %v742_v12 }
 0x10b   : > { %v838_v22 = vpop.f32.mrb[16].mxu0 }
 0x10c   : > { %v1131_v23 = vpop.f32.mrb[17].mxu0  ;;  %v847_v25 = vrot.slane %v838_v22, 2 }
 0x10d   : > { %v841_v24 = vpop.f32.mrb[18].mxu0 }
 0x10e   : > { %v848_v26 = vrot.slane %v841_v24, 2  ;;  %v1132_v27 = vpop.f32.mrb[19].mxu0 }
 0x110   : > { %v849_v29 = vsel %vm510_vm5, %v847_v25, %v848_v26  ;;  %v853_v30 = vadd.f32 %v848_v26, %v798_v20 }
 0x111   : > { %v852_v31 = vadd.f32 %v849_v29, %v797_v21 }
 0x112   : > { %v862_v32 = vadd.f32 %v1054_v28, %v853_v30 }
 0x113   : > { %v861_v33 = vadd.f32 %v1054_v28, %v852_v31 }
 0x114   : > { %vm864_vm6 = vcmp.gt.f32.partialorder %v862_v32, 0.0  ;;  %v866_v34 = vmul.f32 0.1, %v862_v32 }
 0x115   : > { %vm863_vm7 = vcmp.gt.f32.partialorder %v861_v33, 0.0  ;;  %v865_v35 = vmul.f32 0.1, %v861_v33 }
 0x116   : > { %v868_v36 = vsel %vm864_vm6, %v862_v32, %v866_v34 }
 0x117   : > { %v867_v37 = vsel %vm863_vm7, %v861_v33, %v865_v35  ;;  %v1060_v38 = vpack.c.bf16 %v868_v36, %v868_v36 }
 0x118   : > { %v1059_v39 = vpack.c.bf16 %v867_v37, %v867_v37 }
 0x119   : > { %880 = vst.msk [vmem:[%s342_s11 + $0x4] sm:$0x7] %vm879_vm8, %v1060_v38 }
 0x11a   : > { %878 = vst.msk [vmem:[%s342_s11] sm:$0xf] %vm877_vm9, %v1059_v39 }
 0x11b PF: > { %s15_s22 = sadd.s32 1, %s1218_s22   ;;  %s1420_s18 = smov %s1210_s20 }
 0x11c   : > { %p12_p10 = scmp.ge.s32.totalorder %s15_s22, 30   ;;  %s1421_s19 = smov %s1214_s21 }
 0x11d   : > { %s1422_s20 = smov %s1425_s23  ;;  %s1423_s21 = smov %s1429_s24 }
 0x11e   :  { %14 = sbr.rel (!%p12_p10) target bundleno = 3 (0x3), region = 84 }

// kernel: unet1x3_forward.10
= control target key start
LH: loop header
LB: loop body
LE: loop exit
PB: predicated region body
PF: predicated region fallthrough
CT: control target
= control target key end

     0   :  { %s1440_s18 = smov 0   ;;  %s1442_s19 = smov 0   ;;  %s1626_s0 = inlined_call_operand.vmem [shape: bf16[2,14,14,32], index: 0, kind: input, shape index: {}, may-alias: {0,1,2}]   ;;  %s1627_s1 = inlined_call_operand.vmem [shape: bf16[2,14,14,32], index: 1, kind: input, shape index: {}, may-alias: {0,1,2}]   ;;  %s1628_s2 = inlined_call_operand.vmem [shape: bf16[2,14,14,32], index: 2, kind: input, shape index: {}, may-alias: {0,1,2}]   ;;  %s1629_s3 = inlined_call_operand.vmem [shape: bf16[9,32,64], index: 3, kind: input, shape index: {}]   ;;  %s1630_s4 = inlined_call_operand.vmem [shape: f32[1,64], index: 4, kind: input, shape index: {}]   ;;  %s1631_s5 = inlined_call_operand.vmem [shape: bf16[2,12,12,64], index: 5, kind: output, shape index: {}]  }
   0x1   :  { %s1444_s20 = smov 0   ;;  %s1446_s21 = smov 0  }
   0x2   :  { %s1448_s22 = smov 0  }
   0x3 LB: > { %s24_s23 = sadd.s32 1, %s1398_s20  ;;  %s27_s24 = sadd.s32 1, %s1402_s21  ;;  %s1406_s22 = sphi %s1448_s22, %s15_s22   ;;  %s1402_s21 = sphi %s1446_s21, %s1635_s21   ;;  %s1398_s20 = sphi %s1444_s20, %s1634_s20   ;;  %s1394_s19 = sphi %s1442_s19, %s1633_s19   ;;  %s1390_s18 = sphi %s1440_s18, %s1632_s18  }
   0x4   : > { %p25_p0 = scmp.ge.s32.totalorder %s24_s23, 12  ;;  %p1126_p1 = scmp.ge.s32.totalorder %s1406_s22, 1 }
   0x5   : > { %p247_p2 = scmp.lt.s32.totalorder %s1406_s22, 25 }
   0x6   : > { %s1637_s23 = smov (%p25_p0, %s24_s23), 0  ;;  %s1639_s24 = smov (!%p25_p0, %s27_s24), %s1402_s21 }
   0x7   : > { %p248_p3 = pnand %p1126_p1, %p247_p2  ;;  %p29_p4 = scmp.ge.s32.totalorder %s1639_s24, 2 }
   0x8   : > { %v1347_v0 = vld [vmem:[%s1629_s3] sm:$0xff] (!%p248_p3)   ;;  %v1408_v1 = vmov (!%p248_p3), 0.0   ;;  %v1348_v2 = vld [vmem:[%s1629_s3 + $0x10] sm:$0xff] (!%p248_p3)   ;;  %v1349_v3 = vld [vmem:[%s1629_s3 + $0x8] sm:$0xff] (!%p248_p3)   ;;  %vm1409_vm0 = vmmov (!%p248_p3), 0   ;;  %p303_p5 = scmp.lt.s32.totalorder (!%p248_p3), %s1394_s19, 1 }
   0x9   : > { %s1641_s24 = smov (%p29_p4, %s1639_s24), 0  ;;  %251 = sbr.rel (%p248_p3) target bundleno = 283 (0x11b), region = 40 }
   0xa   : > { %1231 = vmatprep.subr.bf16.mxu0 (!%p248_p3), %v1408_v1  ;;  %1239 = vmatprep.subr.bf16.mxu1 (!%p248_p3), %v1408_v1  ;;  %v1350_v4 = vld [vmem:[%s1629_s3 + $0x18] sm:$0xff] (!%p248_p3)   ;;  %p305_p6 = scmp.lt.s32.totalorder (!%p248_p3), %s1390_s18, 13  ;;  %vm367_vm1 = vcmask (!%p248_p3), 261120   ;;  %s312_s12 = sadd.s32 (!%p248_p3), 1, %s1390_s18  ;;  %v1352_v5 = vld [vmem:[%s1629_s3 + $0x20] sm:$0xff] (!%p248_p3)   ;;  %v1353_v6 = vld [vmem:[%s1629_s3 + $0x30] sm:$0xff] (!%p248_p3)  }
   0xb   : > { %1232 = vmatpush3.bf16.msra.mxu0 (!%p248_p3), %v1347_v0  ;;  %1235 = vmatprep.mubr.msk.bf16.mxu0 (!%p248_p3), %vm1409_vm0, %v1408_v1  ;;  %p315_p7 = scmp.lt.s32.totalorder (!%p248_p3), %s312_s12, 13  ;;  %v1354_v8 = vld [vmem:[%s1629_s3 + $0x28] sm:$0xff] (!%p248_p3)   ;;  %s323_s30 = sadd.s32 (!%p248_p3), 2, %s1390_s18  ;;  %v1355_v9 = vld [vmem:[%s1629_s3 + $0x38] sm:$0xff] (!%p248_p3)   ;;  %v1357_v10 = vld [vmem:[%s1629_s3 + $0x40] sm:$0xff] (!%p248_p3)   ;;  %vm474_vm2 = vcmask (!%p248_p3), 1046528  }
   0xc   : > { %1240 = vmatpush3.bf16.msra.mxu1 (!%p248_p3), %v1348_v2  ;;  %1233 = vmatprep.subr.bf16.mxu0 (!%p248_p3), %v1408_v1  ;;  %p326_p8 = scmp.lt.s32.totalorder (!%p248_p3), %s323_s30, 13  ;;  %v1358_v11 = vld [vmem:[%s1629_s3 + $0x50] sm:$0xff] (!%p248_p3)   ;;  %v1359_v13 = vld [vmem:[%s1629_s3 + $0x48] sm:$0xff] (!%p248_p3)   ;;  %v1360_v14 = vld [vmem:[%s1629_s3 + $0x58] sm:$0xff] (!%p248_p3)   ;;  %vm542_vm3 = vcmask (!%p248_p3), 1045504   ;;  %p336_p9 = scmp.lt.s32.totalorder (!%p248_p3), %s1390_s18, 11 }
   0xd   : > { %1241 = vmatprep.subr.bf16.mxu1 (!%p248_p3), %v1408_v1  ;;  %1243 = vmatprep.mubr.msk.bf16.mxu1 (!%p248_p3), %vm1409_vm0, %v1408_v1  ;;  %v1361_v15 = vld [vmem:[%s1629_s3 + $0x60] sm:$0xff] (!%p248_p3)   ;;  %v1362_v16 = vld [vmem:[%s1629_s3 + $0x70] sm:$0xff] (!%p248_p3)   ;;  %v1363_v17 = vld [vmem:[%s1629_s3 + $0x68] sm:$0xff] (!%p248_p3)   ;;  %vm983_vm6 = vcmask (!%p248_p3), 517120   ;;  %vm981_vm7 = vcmask (!%p248_p3), 519168  }
   0xe   : > { %v1364_v18 = vld [vmem:[%s1629_s3 + $0x78] sm:$0xff] (!%p248_p3)   ;;  %v1366_v20 = vld [vmem:[%s1629_s3 + $0x80] sm:$0xff] (!%p248_p3)   ;;  %v1367_v21 = vld [vmem:[%s1629_s3 + $0x88] sm:$0xff] (!%p248_p3)  }
   0xf   : > { %1234 = vmatpush3.bf16.msra.mxu0 (!%p248_p3), %v1349_v3 }
  0x10   : > { %s1643_s19 = smov (!%p303_p5, %s1394_s19), 1  ;;  %1242 = vmatpush3.bf16.msra.mxu1 %v1350_v4  ;;  %1247 = vmatprep.subr.bf16.mxu0 %v1408_v1  ;;  %s1645_s12 = smov (!%p315_p7, %s312_s12), 13 }
  0x11   : > { %s306_s8 = scalar_select %p305_p6, %s1390_s18, 13  ;;  %1255 = vmatprep.subr.bf16.mxu1 %v1408_v1 }
  0x12   : > { %s1501_s9 = smul.u32 28, %s1643_s19  ;;  %s1647_s30 = smov (!%p326_p8, %s323_s30), 13 }
  0x13   : > { %s1127_s10 = sshll.u32 %s306_s8, 1  ;;  %s1129_s8 = sshll.u32 %s1645_s12, 1 }
  0x14   : > { %s309_s11 = sadd.s32 %s1501_s9, %s1127_s10  ;;  %s319_s10 = sadd.s32 %s1501_s9, %s1129_s8 }
  0x15   : > { %s1128_s13 = sshll.u32 %s309_s11, 2  ;;  %s1130_s11 = sshll.u32 %s319_s10, 2 }
  0x16   : > { %s311_s27 = scalar_lea.vmem %s1626_s0, %s1128_s13  ;;  %s321_s12 = scalar_lea.vmem %s1627_s1, %s1130_s11 }
  0x17   : > { %v1351_v7 = vld [vmem:[%s311_s27] sm:$0x7f]   ;;  %s1131_s26 = sshll.u32 %s1647_s30, 1  ;;  %s1649_s18 = smov (!%p336_p9, %s1390_s18), 11 }
  0x18   : > { %1236 = vmatmul.mubr.msk.bf16.vlgmr.msra.gmra.mrb[0].mxu0 %vm367_vm1, %v1351_v7  ;;  %1244 = vmatmul.mubr.msk.bf16.vlgmr.msra.gmra.mrb[0].mxu1 %vm367_vm1, %v1351_v7  ;;  %v1356_v12 = vld [vmem:[%s321_s12] sm:$0x7f]   ;;  %s330_s7 = sadd.s32 %s1501_s9, %s1131_s26  ;;  %s1304_s6 = smul.u32 24, %s1643_s19 }
  0x19   : > { %1248 = vmatpush3.bf16.msra.mxu0 %v1352_v5  ;;  %1256 = vmatpush3.bf16.msra.mxu1 %v1353_v6  ;;  %s1132_s8 = sshll.u32 %s330_s7, 2  ;;  %s1133_s7 = sshll.u32 %s1649_s18, 1 }
  0x1a   : > { %1249 = vmatprep.subr.bf16.mxu0 %v1408_v1  ;;  %1257 = vmatprep.subr.bf16.mxu1 %v1408_v1  ;;  %s332_s11 = scalar_lea.vmem %s1628_s2, %s1132_s8  ;;  %s340_s10 = sadd.s32 %s1304_s6, %s1133_s7 }
  0x1b   : > { %1251 = vmatprep.mubr.msk.bf16.mxu0 %vm1409_vm0, %v1408_v1  ;;  %1259 = vmatprep.mubr.msk.bf16.mxu1 %vm1409_vm0, %v1408_v1  ;;  %v1365_v19 = vld [vmem:[%s332_s11] sm:$0x7f]   ;;  %s1134_s11 = sshll.u32 %s340_s10, 2 }
  0x1c   : > { %s342_s13 = scalar_lea.vmem %s1631_s5, %s1134_s11 }
  0x1d   : > { %1250 = vmatpush3.bf16.msra.mxu0 %v1354_v8  ;;  %1258 = vmatpush3.bf16.msra.mxu1 %v1355_v9 }
  0x1e   : > { %1263 = vmatprep.subr.bf16.mxu0 %v1408_v1  ;;  %1271 = vmatprep.subr.bf16.mxu1 %v1408_v1 }
  0x20   : > { %1252 = vmatmul.mubr.msk.bf16.vlgmr.msra.gmra.mrb[4].mxu0 %vm367_vm1, %v1351_v7  ;;  %1260 = vmatmul.mubr.msk.bf16.vlgmr.msra.gmra.mrb[4].mxu1 %vm367_vm1, %v1356_v12 }
  0x21   : > { %1264 = vmatpush3.bf16.msra.mxu0 %v1357_v10  ;;  %1272 = vmatpush3.bf16.msra.mxu1 %v1358_v11 }
  0x22   : > { %1265 = vmatprep.subr.bf16.mxu0 %v1408_v1  ;;  %1273 = vmatprep.subr.bf16.mxu1 %v1408_v1 }
  0x23   : > { %1267 = vmatprep.mubr.msk.bf16.mxu0 %vm1409_vm0, %v1408_v1  ;;  %1275 = vmatprep.mubr.msk.bf16.mxu1 %vm1409_vm0, %v1408_v1 }
  0x25   : > { %1266 = vmatpush3.bf16.msra.mxu0 %v1359_v13  ;;  %1274 = vmatpush3.bf16.msra.mxu1 %v1360_v14 }
  0x26   : > { %1279 = vmatprep.subr.bf16.mxu0 %v1408_v1  ;;  %1287 = vmatprep.subr.bf16.mxu1 %v1408_v1 }
  0x28   : > { %1268 = vmatmul.mubr.msk.bf16.vlgmr.msra.gmra.mrb[8].mxu0 %vm367_vm1, %v1356_v12  ;;  %1276 = vmatmul.mubr.msk.bf16.vlgmr.msra.gmra.mrb[8].mxu1 %vm367_vm1, %v1356_v12 }
  0x29   : > { %1280 = vmatpush3.bf16.msra.mxu0 %v1361_v15  ;;  %1288 = vmatpush3.bf16.msra.mxu1 %v1362_v16 }
  0x2a   : > { %1281 = vmatprep.subr.bf16.mxu0 %v1408_v1  ;;  %1289 = vmatprep.subr.bf16.mxu1 %v1408_v1 }
  0x2b   : > { %1283 = vmatprep.mubr.msk.bf16.mxu0 %vm1409_vm0, %v1408_v1  ;;  %1291 = vmatprep.mubr.msk.bf16.mxu1 %vm1409_vm0, %v1408_v1 }
  0x2d   : > { %1282 = vmatpush3.bf16.msra.mxu0 %v1363_v17  ;;  %1290 = vmatpush3.bf16.msra.mxu1 %v1364_v18 }
  0x2e   : > { %1295 = vmatprep.subr.bf16.mxu0 %v1408_v1 }
  0x30   : > { %1284 = vmatmul.mubr.msk.bf16.vlgmr.msra.gmra.mrb[12].mxu0 %vm367_vm1, %v1365_v19  ;;  %1292 = vmatmul.mubr.msk.bf16.vlgmr.msra.gmra.mrb[12].mxu1 %vm367_vm1, %v1365_v19 }
  0x31   : > { %1296 = vmatpush3.bf16.msra.mxu0 %v1366_v20  ;;  %1299 = vmatprep.mubr.msk.bf16.mxu0 %vm1409_vm0, %v1408_v1 }
  0x32   : > { %1297 = vmatprep.subr.bf16.mxu0 %v1408_v1 }
  0x35   : > { %1298 = vmatpush3.bf16.msra.mxu0 %v1367_v21 }
  0x38   : > { %1300 = vmatmul.mubr.msk.bf16.vlgmr.msra.gmra.mrb[16].mxu0 %vm367_vm1, %v1365_v19 }
  0xeb   : > { %v405_v22 = vpop.f32.mrb[0].mxu0  ;;  %v465_v23 = vpop.f32.mrb[0].mxu1 }
  0xec   : > { %v475_v24 = vrot.slane %v465_v23, 1  ;;  %v1237_v25 = vpop.f32.mrb[1].mxu0  ;;  %v1245_v26 = vpop.f32.mrb[1].mxu1 }
  0xed   : > { %v408_v27 = vpop.f32.mrb[2].mxu0  ;;  %v468_v28 = vpop.f32.mrb[2].mxu1  ;;  %v1197_v25 = vld [vmem:[%s1630_s4] ss:$0 sm:$0xff] }
  0xee   : > { %v476_v29 = vrot.slane %v468_v28, 1  ;;  %v1238_v30 = vpop.f32.mrb[3].mxu0  ;;  %v1246_v31 = vpop.f32.mrb[3].mxu1 }
  0xf0   : > { %v477_v32 = vsel %vm474_vm2, %v475_v24, %v476_v29  ;;  %v481_v33 = vadd.f32 %v476_v29, %v408_v27 }
  0xf1   : > { %v480_v34 = vadd.f32 %v477_v32, %v405_v22 }
  0xf3   : > { %v533_v35 = vpop.f32.mrb[4].mxu0  ;;  %v611_v36 = vpop.f32.mrb[4].mxu1 }
  0xf4   : > { %v1253_v37 = vpop.f32.mrb[5].mxu0  ;;  %v1261_v38 = vpop.f32.mrb[5].mxu1  ;;  %v543_v41 = vrot.slane %v533_v35, 2 }
  0xf5   : > { %v536_v39 = vpop.f32.mrb[6].mxu0  ;;  %v614_v40 = vpop.f32.mrb[6].mxu1 }
  0xf6   : > { %v544_v42 = vrot.slane %v536_v39, 2  ;;  %v1254_v43 = vpop.f32.mrb[7].mxu0  ;;  %v1262_v44 = vpop.f32.mrb[7].mxu1 }
  0xf8   : > { %v545_v45 = vsel %vm542_vm3, %v543_v41, %v544_v42  ;;  %v549_v46 = vadd.f32 %v544_v42, %v481_v33 }
  0xf9   : > { %v548_v47 = vadd.f32 %v545_v45, %v480_v34 }
  0xfa   : > { %v619_v48 = vadd.f32 %v614_v40, %v549_v46 }
  0xfb   : > { %v618_v49 = vadd.f32 %v611_v36, %v548_v47  ;;  %v671_v50 = vpop.f32.mrb[8].mxu0  ;;  %v738_v51 = vpop.f32.mrb[8].mxu1 }
  0xfc   : > { %v1269_v52 = vpop.f32.mrb[9].mxu0  ;;  %v747_v53 = vrot.slane %v738_v51, 2  ;;  %v1277_v54 = vpop.f32.mrb[9].mxu1  ;;  %v680_v57 = vrot.slane %v671_v50, 1 }
  0xfd   : > { %v674_v55 = vpop.f32.mrb[10].mxu0  ;;  %v741_v56 = vpop.f32.mrb[10].mxu1 }
  0xfe   : > { %v681_v58 = vrot.slane %v674_v55, 1  ;;  %v1270_v59 = vpop.f32.mrb[11].mxu0  ;;  %v748_v60 = vrot.slane %v741_v56, 2  ;;  %v1278_v61 = vpop.f32.mrb[11].mxu1 }
 0x100   : > { %v682_v62 = vsel %vm474_vm2, %v680_v57, %v681_v58  ;;  %v686_v63 = vadd.f32 %v681_v58, %v619_v48  ;;  %v749_v0 = vsel %vm542_vm3, %v747_v53, %v748_v60 }
 0x101   : > { %v685_v1 = vadd.f32 %v682_v62, %v618_v49 }
 0x102   : > { %v753_v2 = vadd.f32 %v748_v60, %v686_v63 }
 0x103   : > { %v752_v3 = vadd.f32 %v749_v0, %v685_v1  ;;  %v815_v4 = vpop.f32.mrb[12].mxu0  ;;  %v875_v5 = vpop.f32.mrb[12].mxu1 }
 0x104   : > { %v884_v6 = vrot.slane %v875_v5, 1  ;;  %v1285_v7 = vpop.f32.mrb[13].mxu0  ;;  %v1293_v8 = vpop.f32.mrb[13].mxu1 }
 0x105   : > { %v822_v9 = vadd.f32 %v815_v4, %v752_v3  ;;  %v818_v10 = vpop.f32.mrb[14].mxu0  ;;  %v878_v11 = vpop.f32.mrb[14].mxu1 }
 0x106   : > { %v823_v12 = vadd.f32 %v818_v10, %v753_v2  ;;  %v885_v13 = vrot.slane %v878_v11, 1  ;;  %v1286_v14 = vpop.f32.mrb[15].mxu0  ;;  %v1294_v15 = vpop.f32.mrb[15].mxu1 }
 0x108   : > { %v886_v16 = vsel %vm474_vm2, %v884_v6, %v885_v13  ;;  %v890_v17 = vadd.f32 %v885_v13, %v823_v12 }
 0x109   : > { %v889_v18 = vadd.f32 %v886_v16, %v822_v9 }
 0x10b   : > { %v942_v19 = vpop.f32.mrb[16].mxu0 }
 0x10c   : > { %v1301_v20 = vpop.f32.mrb[17].mxu0  ;;  %v951_v22 = vrot.slane %v942_v19, 2 }
 0x10d   : > { %v945_v21 = vpop.f32.mrb[18].mxu0 }
 0x10e   : > { %v952_v23 = vrot.slane %v945_v21, 2  ;;  %v1302_v24 = vpop.f32.mrb[19].mxu0 }
 0x110   : > { %v953_v26 = vsel %vm542_vm3, %v951_v22, %v952_v23  ;;  %v957_v27 = vadd.f32 %v952_v23, %v890_v17 }
 0x111   : > { %v956_v28 = vadd.f32 %v953_v26, %v889_v18 }
 0x112   : > { %v966_v29 = vadd.f32 %v1197_v25, %v957_v27 }
 0x113   : > { %v965_v30 = vadd.f32 %v1197_v25, %v956_v28 }
 0x114   : > { %vm968_vm4 = vcmp.gt.f32.partialorder %v966_v29, 0.0  ;;  %v970_v31 = vmul.f32 0.1, %v966_v29 }
 0x115   : > { %vm967_vm5 = vcmp.gt.f32.partialorder %v965_v30, 0.0  ;;  %v969_v32 = vmul.f32 0.1, %v965_v30 }
 0x116   : > { %v972_v33 = vsel %vm968_vm4, %v966_v29, %v970_v31 }
 0x117   : > { %v971_v34 = vsel %vm967_vm5, %v965_v30, %v969_v32  ;;  %v1203_v35 = vpack.c.bf16 %v972_v33, %v972_v33 }
 0x118   : > { %v1202_v36 = vpack.c.bf16 %v971_v34, %v971_v34 }
 0x119   : > { %984 = vst.msk [vmem:[%s342_s13 + $0x4] sm:$0x3] %vm983_vm6, %v1203_v35 }
 0x11a   : > { %982 = vst.msk [vmem:[%s342_s13] sm:$0xf] %vm981_vm7, %v1202_v36 }
 0x11b PF: > { %s15_s22 = sadd.s32 1, %s1406_s22   ;;  %s1632_s18 = smov %s1398_s20 }
 0x11c   : > { %p12_p10 = scmp.ge.s32.totalorder %s15_s22, 26   ;;  %s1633_s19 = smov %s1402_s21 }
 0x11d   : > { %s1634_s20 = smov %s1637_s23  ;;  %s1635_s21 = smov %s1641_s24 }
 0x11e   :  { %14 = sbr.rel (!%p12_p10) target bundleno = 3 (0x3), region = 84 }

// kernel: unet1x3_forward.11
= control target key start
LH: loop header
LB: loop body
LE: loop exit
PB: predicated region body
PF: predicated region fallthrough
CT: control target
= control target key end

     0   :  { %vm342_vm2 = vcmask 519168   ;;  %s638_s1 = inlined_call_operand.vmem [shape: bf16[256,64], index: 1, kind: input, shape index: {}]   ;;  %s639_s0 = inlined_call_operand.vmem [shape: bf16[72,256], index: 0, kind: input, shape index: {}]   ;;  %s640_s2 = inlined_call_operand.vmem [shape: f32[1,64], index: 2, kind: input, shape index: {}]   ;;  %s641_s3 = inlined_call_operand.vmem [shape: bf16[72,64], index: 3, kind: output, shape index: {}]  }
   0x1   :  { %v463_v0 = vld [vmem:[%s638_s1 + $0x40] sm:$0xff]   ;;  %v465_v2 = vld [vmem:[%s638_s1 + $0x48] sm:$0xff]   ;;  %v467_v4 = vld [vmem:[%s638_s1 + $0x50] sm:$0xff]  }
   0x2   :  { %v464_v1 = vld [vmem:[%s638_s1] sm:$0xff]   ;;  %401 = vmatprep.subr.bf16.mxu0 %v463_v0  ;;  %447 = vmatprep.subr.bf16.mxu1 %v463_v0  ;;  %v466_v3 = vld [vmem:[%s638_s1 + $0x8] sm:$0xff]   ;;  %v468_v5 = vld [vmem:[%s638_s1 + $0x10] sm:$0xff]  }
   0x3   :  { %402 = vmatpush3.bf16.msra.mxu0 %v464_v1  ;;  %455 = vmatpush3.bf16.msra.mxu1 %v464_v1  ;;  %v469_v6 = vld [vmem:[%s638_s1 + $0x58] sm:$0xff]   ;;  %v471_v8 = vld [vmem:[%s638_s1 + $0x60] sm:$0xff]   ;;  %v473_v10 = vld [vmem:[%s638_s1 + $0x68] sm:$0xff]  }
   0x4   :  { %403 = vmatprep.subr.bf16.mxu0 %v465_v2  ;;  %448 = vmatprep.subr.bf16.mxu1 %v465_v2  ;;  %v470_v7 = vld [vmem:[%s638_s1 + $0x18] sm:$0xff]   ;;  %v472_v9 = vld [vmem:[%s638_s1 + $0x20] sm:$0xff]   ;;  %v474_v13 = vld [vmem:[%s638_s1 + $0x28] sm:$0xff]  }
   0x5   :  { %v481_v11 = vld [vmem:[%s639_s0 + $0x4] ss:$8 sps:$4 sm:$0xff]   ;;  %v484_v12 = vld [vmem:[%s639_s0 + $0x34] ss:$8 sps:$4 sm:$0xff]   ;;  %v479_v19 = vld [vmem:[%s639_s0] ss:$8 sps:$4 sm:$0xff]  }
   0x6   :  { %v475_v14 = vld [vmem:[%s638_s1 + $0x70] sm:$0xff]   ;;  %238 = vmatprep.mubr.bf16.mxu0 %v481_v11  ;;  %262 = vmatprep.mubr.bf16.mxu1 %v484_v12  ;;  %v477_v16 = vld [vmem:[%s638_s1 + $0x78] sm:$0xff]   ;;  %v23_v18 = vld [vmem:[%s639_s0 + $0x40] sm:$0xff] }
   0x7   :  { %404 = vmatpush3.bf16.msra.mxu0 %v466_v3  ;;  %456 = vmatpush3.bf16.msra.mxu1 %v466_v3  ;;  %v476_v15 = vld [vmem:[%s638_s1 + $0x30] sm:$0xff]   ;;  %v478_v17 = vld [vmem:[%s638_s1 + $0x38] sm:$0xff]   ;;  %v366_v22 = vcombine.high %v23_v18, %v23_v18  ;;  %v365_v24 = vcombine.low %v23_v18, %v23_v18  ;;  %v489_v25 = vld [vmem:[%s639_s0 + $0x24] ss:$8 sps:$4 sm:$0xff]  }
   0x8   :  { %405 = vmatprep.subr.bf16.mxu0 %v467_v4  ;;  %449 = vmatprep.subr.bf16.mxu1 %v467_v4  ;;  %v482_v20 = vld [vmem:[%s639_s0 + $0x30] ss:$8 sps:$4 sm:$0xff]   ;;  %v485_v21 = vld [vmem:[%s639_s0 + $0x14] ss:$8 sps:$4 sm:$0xff]   ;;  %v492_v26 = vld [vmem:[%s639_s0 + $0x20] ss:$8 sps:$4 sm:$0xff]  }
   0x9   :  { %v487_v23 = vld [vmem:[%s639_s0 + $0x10] ss:$8 sps:$4 sm:$0xff]   ;;  %v591_v29 = vld [vmem:[%s640_s2] ss:$0 sm:$0xff] }
   0xb   :  { %406 = vmatpush3.bf16.msra.mxu0 %v468_v5  ;;  %457 = vmatpush3.bf16.msra.mxu1 %v468_v5 }
   0xc   :  { %407 = vmatprep.subr.bf16.mxu0 %v469_v6  ;;  %450 = vmatprep.subr.bf16.mxu1 %v469_v6 }
   0xf   :  { %408 = vmatpush3.bf16.msra.mxu0 %v470_v7  ;;  %458 = vmatpush3.bf16.msra.mxu1 %v470_v7 }
  0x10   :  { %409 = vmatprep.subr.bf16.mxu0 %v471_v8  ;;  %451 = vmatprep.subr.bf16.mxu1 %v471_v8 }
  0x13   :  { %410 = vmatpush3.bf16.msra.mxu0 %v472_v9  ;;  %459 = vmatpush3.bf16.msra.mxu1 %v472_v9 }
  0x14   :  { %411 = vmatprep.subr.bf16.mxu0 %v473_v10  ;;  %452 = vmatprep.subr.bf16.mxu1 %v473_v10 }
  0x17   :  { %412 = vmatpush3.bf16.msra.mxu0 %v474_v13  ;;  %460 = vmatpush3.bf16.msra.mxu1 %v474_v13 }
  0x18   :  { %413 = vmatprep.subr.bf16.mxu0 %v475_v14  ;;  %453 = vmatprep.subr.bf16.mxu1 %v475_v14 }
  0x1b   :  { %414 = vmatpush3.bf16.msra.mxu0 %v476_v15  ;;  %461 = vmatpush3.bf16.msra.mxu1 %v476_v15 }
  0x1c   :  { %415 = vmatprep.subr.bf16.mxu0 %v477_v16  ;;  %454 = vmatprep.subr.bf16.mxu1 %v477_v16 }
  0x1f   :  { %416 = vmatpush3.bf16.msra.mxu0 %v478_v17  ;;  %462 = vmatpush3.bf16.msra.mxu1 %v478_v17 }
  0x22   :  { %239 = vmatmul.mubr.bf16.vlgmr.msra.gmra.mrb[0].mxu0 %v479_v19  ;;  %263 = vmatmul.mubr.bf16.vlgmr.msra.gmra.mrb[0].mxu1 %v482_v20 }
  0x23   :  { %246 = vmatprep.mubr.bf16.mxu0 %v485_v21  ;;  %270 = vmatprep.mubr.bf16.mxu1 %v366_v22 }
  0x2a   :  { %247 = vmatmul.mubr.bf16.gmra.mrb[4].mxu0 %v487_v23  ;;  %271 = vmatmul.mubr.bf16.gmra.mrb[4].mxu1 %v365_v24 }
  0x2b   :  { %254 = vmatprep.mubr.bf16.mxu0 %v489_v25 }
  0x32   :  { %255 = vmatmul.mubr.bf16.gmra.mrb[8].mxu0 %v492_v26 }
  0xf5   :  { %v417_v27 = vpop.f32.mrb[0].mxu0  ;;  %v435_v28 = vpop.f32.mrb[0].mxu1 }
  0xf6   :  { %v418_v30 = vpop.f32.mrb[1].mxu0  ;;  %v436_v31 = vpop.f32.mrb[1].mxu1 }
  0xf7   :  { %v419_v32 = vadd.f32 %v418_v30, %v417_v27  ;;  %v420_v33 = vpop.f32.mrb[2].mxu0  ;;  %v437_v34 = vadd.f32 %v436_v31, %v435_v28  ;;  %v438_v35 = vpop.f32.mrb[2].mxu1 }
  0xf8   :  { %v421_v36 = vpop.f32.mrb[3].mxu0  ;;  %v439_v37 = vpop.f32.mrb[3].mxu1 }
  0xf9   :  { %v241_v38 = vadd.f32 %v419_v32, %v591_v29  ;;  %v422_v39 = vadd.f32 %v421_v36, %v420_v33  ;;  %v265_v40 = vadd.f32 %v437_v34, %v591_v29  ;;  %v440_v41 = vadd.f32 %v439_v37, %v438_v35 }
  0xfb   :  { %vm278_vm0 = vcmp.gt.f32.partialorder %v241_v38, 0.0  ;;  %v287_v42 = vmul.f32 0.1, %v241_v38  ;;  %v244_v43 = vadd.f32 %v422_v39, %v591_v29  ;;  %vm284_vm1 = vcmp.gt.f32.partialorder %v265_v40, 0.0 }
  0xfc   :  { %v293_v44 = vmul.f32 0.1, %v265_v40  ;;  %v268_v45 = vadd.f32 %v440_v41, %v591_v29 }
  0xfd   :  { %v296_v46 = vsel %vm278_vm0, %v241_v38, %v287_v42  ;;  %vm279_vm3 = vcmp.gt.f32.partialorder %v244_v43, 0.0  ;;  %v288_v47 = vmul.f32 0.1, %v244_v43  ;;  %v423_v48 = vpop.f32.mrb[4].mxu0  ;;  %v441_v49 = vpop.f32.mrb[4].mxu1 }
  0xfe   :  { %v392_v50 = vpack.c.bf16 %v296_v46, %v296_v46  ;;  %v302_v51 = vsel %vm284_vm1, %v265_v40, %v293_v44  ;;  %vm285_vm4 = vcmp.gt.f32.partialorder %v268_v45, 0.0  ;;  %v294_v52 = vmul.f32 0.1, %v268_v45  ;;  %v424_v53 = vpop.f32.mrb[5].mxu0  ;;  %v442_v54 = vpop.f32.mrb[5].mxu1 }
  0xff   :  { %v297_v55 = vsel %vm279_vm3, %v244_v43, %v288_v47  ;;  %v398_v56 = vpack.c.bf16 %v302_v51, %v302_v51  ;;  %v425_v57 = vadd.f32 %v424_v53, %v423_v48  ;;  %v426_v58 = vpop.f32.mrb[6].mxu0  ;;  %v443_v59 = vadd.f32 %v442_v54, %v441_v49  ;;  %v444_v60 = vpop.f32.mrb[6].mxu1 }
 0x100   :  { %343 = vst.msk [vmem:[%s641_s3] sm:$0xf] %vm342_vm2, %v392_v50  ;;  %v393_v61 = vpack.c.bf16 %v297_v55, %v297_v55  ;;  %v303_v62 = vsel %vm285_vm4, %v268_v45, %v294_v52  ;;  %v427_v63 = vpop.f32.mrb[7].mxu0  ;;  %v445_v0 = vpop.f32.mrb[7].mxu1 }
 0x101   :  { %349 = vst.msk [vmem:[%s641_s3 + $0x18] sm:$0xf] %vm342_vm2, %v398_v56  ;;  %v399_v1 = vpack.c.bf16 %v303_v62, %v303_v62  ;;  %v249_v2 = vadd.f32 %v425_v57, %v591_v29  ;;  %v428_v3 = vadd.f32 %v427_v63, %v426_v58  ;;  %v273_v4 = vadd.f32 %v443_v59, %v591_v29 }
 0x102   :  { %344 = vst.msk [vmem:[%s641_s3 + $0x4] sm:$0xf] %vm342_vm2, %v393_v61 }
 0x103   :  { %350 = vst.msk [vmem:[%s641_s3 + $0x1c] sm:$0xf] %vm342_vm2, %v399_v1  ;;  %vm280_vm5 = vcmp.gt.f32.partialorder %v249_v2, 0.0  ;;  %v289_v5 = vmul.f32 0.1, %v249_v2  ;;  %v252_v6 = vadd.f32 %v428_v3, %v591_v29  ;;  %vm286_vm6 = vcmp.gt.f32.partialorder %v273_v4, 0.0 }
 0x104   :  { %v295_v7 = vmul.f32 0.1, %v273_v4 }
 0x105   :  { %v298_v8 = vsel %vm280_vm5, %v249_v2, %v289_v5  ;;  %vm281_vm7 = vcmp.gt.f32.partialorder %v252_v6, 0.0  ;;  %v290_v9 = vmul.f32 0.1, %v252_v6  ;;  %v429_v10 = vpop.f32.mrb[8].mxu0 }
 0x106   :  { %v394_v11 = vpack.c.bf16 %v298_v8, %v298_v8  ;;  %v304_v12 = vsel %vm286_vm6, %v273_v4, %v295_v7  ;;  %v430_v13 = vpop.f32.mrb[9].mxu0 }
 0x107   :  { %v299_v14 = vsel %vm281_vm7, %v252_v6, %v290_v9  ;;  %v400_v15 = vpack.c.bf16 %v304_v12, %v304_v12  ;;  %v431_v16 = vadd.f32 %v430_v13, %v429_v10  ;;  %v432_v17 = vpop.f32.mrb[10].mxu0 }
 0x108   :  { %345 = vst.msk [vmem:[%s641_s3 + $0x8] sm:$0xf] %vm342_vm2, %v394_v11  ;;  %v395_v18 = vpack.c.bf16 %v299_v14, %v299_v14  ;;  %v433_v19 = vpop.f32.mrb[11].mxu0 }
 0x109   :  { %351 = vst.msk [vmem:[%s641_s3 + $0x20] sm:$0xf] %vm342_vm2, %v400_v15  ;;  %v257_v20 = vadd.f32 %v431_v16, %v591_v29  ;;  %v434_v21 = vadd.f32 %v433_v19, %v432_v17 }
 0x10a   :  { %346 = vst.msk [vmem:[%s641_s3 + $0xc] sm:$0xf] %vm342_vm2, %v395_v18 }
 0x10b   :  { %vm282_vm8 = vcmp.gt.f32.partialorder %v257_v20, 0.0  ;;  %v291_v22 = vmul.f32 0.1, %v257_v20  ;;  %v260_v23 = vadd.f32 %v434_v21, %v591_v29 }
 0x10d   :  { %v300_v24 = vsel %vm282_vm8, %v257_v20, %v291_v22  ;;  %vm283_vm9 = vcmp.gt.f32.partialorder %v260_v23, 0.0  ;;  %v292_v25 = vmul.f32 0.1, %v260_v23 }
 0x10e   :  { %v396_v26 = vpack.c.bf16 %v300_v24, %v300_v24 }
 0x10f   :  { %v301_v27 = vsel %vm283_vm9, %v260_v23, %v292_v25 }
 0x110   :  { %347 = vst.msk [vmem:[%s641_s3 + $0x10] sm:$0xf] %vm342_vm2, %v396_v26  ;;  %v397_v28 = vpack.c.bf16 %v301_v27, %v301_v27 }
 0x112   :  { %348 = vst.msk [vmem:[%s641_s3 + $0x14] sm:$0xf] %vm342_vm2, %v397_v28 }

// kernel: unet1x3_forward.14
= control target key start
LH: loop header
LB: loop body
LE: loop exit
PB: predicated region body
PF: predicated region fallthrough
CT: control target
= control target key end

     0   :  { %v264_v0 = vmov 0.0|0.0   ;;  %vm265_vm0 = vmmov 0   ;;  %v266_v4 = vmov 0.0   ;;  %vm36_vm1 = vcmask 523264   ;;  %s336_s1 = inlined_call_operand.vmem [shape: f32[64,8], index: 1, kind: input, shape index: {}]   ;;  %s337_s0 = inlined_call_operand.vmem [shape: f32[2,64], index: 0, kind: input, shape index: {}]   ;;  %s338_s3 = inlined_call_operand.vmem [shape: f32[8,64], index: 3, kind: input, shape index: {}]   ;;  %s339_s2 = inlined_call_operand.vmem [shape: f32[1,8], index: 2, kind: input, shape index: {}]   ;;  %s340_s4 = inlined_call_operand.vmem [shape: f32[1,64], index: 4, kind: input, shape index: {}]   ;;  %s341_s5 = inlined_call_operand.vmem [shape: f32[2,64], index: 5, kind: output, shape index: {}]  }
   0x1   :  { %245 = vmatprep.subr.bf16.mxu0 %v264_v0  ;;  %v21_v1 = vld [vmem:[%s336_s1] sm:$0xff]  ;;  %v22_v2 = vld [vmem:[%s336_s1 + $0x8] sm:$0xff]  ;;  %v23_v3 = vld [vmem:[%s336_s1 + $0x10] sm:$0xff]  ;;  %237 = vmatprep.mubr.msk.f32.mxu0 %vm265_vm0, %v266_v4  ;;  %vm119_vm2 = vcmask 64512   ;;  %vm199_vm3 = vcmask 517120  }
   0x2   :  { %v246_v5 = vpack.c.bf16 %v22_v2, %v21_v1  ;;  %v24_v6 = vld [vmem:[%s336_s1 + $0x18] sm:$0xff]  ;;  %240 = vmatprep.subr.mxu1 %v266_v4  ;;  %242 = vmatprep.mubr.msk.f32.mxu1 %vm265_vm0, %v266_v4  ;;  %v25_v8 = vld [vmem:[%s336_s1 + $0x20] sm:$0xff]  ;;  %v26_v9 = vld [vmem:[%s336_s1 + $0x28] sm:$0xff] }
   0x3   :  { %v249_v7 = vpack.c.bf16 %v24_v6, %v23_v3  ;;  %v252_v10 = vpack.c.bf16 %v26_v9, %v25_v8  ;;  %v27_v11 = vld [vmem:[%s336_s1 + $0x30] sm:$0xff]  ;;  %v28_v12 = vld [vmem:[%s336_s1 + $0x38] sm:$0xff]  ;;  %v20_v14 = vld [vmem:[%s337_s0] sm:$0x3] }
   0x4   :  { %247 = vmatpush3.bf16.msra.mxu0 %v246_v5  ;;  %v255_v13 = vpack.c.bf16 %v28_v12, %v27_v11  ;;  %v111_v15 = vld [vmem:[%s338_s3] sm:$0xff] }
   0x5   :  { %248 = vmatprep.subr.bf16.mxu0 %v264_v0  ;;  %241 = vmatpush3.msra.mxu1 %v111_v15  ;;  %v205_v16 = vld [vmem:[%s339_s2] ss:$0 sm:$0xff] }
   0x6   :  { %v207_v21 = vld [vmem:[%s340_s4] ss:$0 sm:$0xff] }
   0x8   :  { %250 = vmatpush3.bf16.msra.mxu0 %v249_v7 }
   0x9   :  { %251 = vmatprep.subr.bf16.mxu0 %v264_v0 }
   0xc   :  { %253 = vmatpush3.bf16.msra.mxu0 %v252_v10 }
   0xd   :  { %254 = vmatprep.subr.bf16.mxu0 %v264_v0 }
  0x10   :  { %256 = vmatpush3.bf16.msra.mxu0 %v255_v13 }
  0x13   :  { %238 = vmatmul.mubr.msk.f32.vlgmr.msra.gmra.mrb[0].mxu0 %vm36_vm1, %v20_v14 }
  0xe6   :  { %v106_v17 = vpop.f32.mrb[0].mxu0 }
  0xe7   :  { %v107_v18 = vadd.f32 %v205_v16, %v106_v17  ;;  %v239_v19 = vpop.f32.mrb[1].mxu0 }
  0xe9   :  { %v110_v20 = vmax.f32 %v107_v18, 0.0 }
  0xeb   :  { %243 = vmatmul.mubr.msk.f32.vlgmr.msra.gmra.mrb[0].mxu1 %vm119_vm2, %v110_v20 }
 0x1be   :  { %v189_v22 = vpop.f32.mrb[0].mxu1 }
 0x1bf   :  { %v190_v23 = vadd.f32 %v207_v21, %v189_v22  ;;  %v244_v24 = vpop.f32.mrb[1].mxu1 }
 0x1c1   :  { %v209_v25 = vmul.f32 -1.442695, %v190_v23 }
 0x1c3   :  { %260 = vpow2.f32 %v209_v25 }
 0x1cd   :  { %v261_v26 = vpop.eup %260 }
 0x1ce   :  { %v196_v27 = vadd.f32 1.0, %v261_v26 }
 0x1d0   :  { %262 = vrcp.f32 %v196_v27 }
 0x1da   :  { %v263_v28 = vpop.eup %262 }
 0x1db   :  { %200 = vst.msk [vmem:[%s341_s5] sm:$0x3] %vm199_vm3, %v263_v28 }

// kernel: unet1x3_forward.12
= control target key start
LH: loop header
LB: loop body
LE: loop exit
PB: predicated region body
PF: predicated region fallthrough
CT: control target
= control target key end

     0   :  { %s1590_s18 = smov 0   ;;  %s1592_s19 = smov 0   ;;  %s1842_s0 = inlined_call_operand.vmem [shape: bf16[2,6,6,64], index: 0, kind: input, shape index: {}, may-alias: {0,1,2}]   ;;  %s1843_s1 = inlined_call_operand.vmem [shape: bf16[2,6,6,64], index: 1, kind: input, shape index: {}, may-alias: {0,1,2}]   ;;  %s1844_s2 = inlined_call_operand.vmem [shape: bf16[2,6,6,64], index: 2, kind: input, shape index: {}, may-alias: {0,1,2}]   ;;  %s1845_s3 = inlined_call_operand.vmem [shape: bf16[9,64,128], index: 3, kind: input, shape index: {}]   ;;  %s1846_s4 = inlined_call_operand.vmem [shape: f32[1,128], index: 4, kind: input, shape index: {}]   ;;  %s1847_s5 = inlined_call_operand.vmem [shape: bf16[2,4,4,128], index: 5, kind: output, shape index: {}]  }
   0x1   :  { %s1594_s20 = smov 0   ;;  %s1596_s21 = smov 0  }
   0x2   :  { %s1598_s22 = smov 0  }
   0x3 LB: > { %s24_s23 = sadd.s32 1, %s1548_s20  ;;  %s27_s24 = sadd.s32 1, %s1552_s21  ;;  %s1556_s22 = sphi %s1598_s22, %s15_s22   ;;  %s1552_s21 = sphi %s1596_s21, %s1851_s21   ;;  %s1548_s20 = sphi %s1594_s20, %s1850_s20   ;;  %s1544_s19 = sphi %s1592_s19, %s1849_s19   ;;  %s1540_s18 = sphi %s1590_s18, %s1848_s18  }
   0x4   : > { %p25_p0 = scmp.ge.s32.totalorder %s24_s23, 4  ;;  %p1168_p1 = scmp.ge.s32.totalorder %s1556_s22, 1 }
   0x5   : > { %p244_p2 = scmp.lt.s32.totalorder %s1556_s22, 9 }
   0x6   : > { %s1853_s23 = smov (%p25_p0, %s24_s23), 0  ;;  %s1855_s24 = smov (!%p25_p0, %s27_s24), %s1552_s21 }
   0x7   : > { %p245_p3 = pnand %p1168_p1, %p244_p2  ;;  %p29_p4 = scmp.ge.s32.totalorder %s1855_s24, 2 }
   0x8   : > { %v1482_v0 = vld [vmem:[%s1845_s3] sm:$0xff] (!%p245_p3)   ;;  %v1558_v1 = vmov (!%p245_p3), 0.0   ;;  %v1484_v3 = vld [vmem:[%s1845_s3 + $0x8] sm:$0xff] (!%p245_p3)   ;;  %vm1559_vm0 = vmmov (!%p245_p3), 0   ;;  %p296_p5 = scmp.lt.s32.totalorder (!%p245_p3), %s1544_s19, 1  ;;  %p298_p6 = scmp.lt.s32.totalorder (!%p245_p3), %s1540_s18, 5 }
   0x9   : > { %s1857_s24 = smov (%p29_p4, %s1855_s24), 0  ;;  %248 = sbr.rel (%p245_p3) target bundleno = 314 (0x13a), region = 40 }
   0xa   : > { %1331 = vmatprep.subr.bf16.mxu0 (!%p245_p3), %v1558_v1  ;;  %1343 = vmatprep.subr.bf16.mxu1 (!%p245_p3), %v1558_v1  ;;  %v1483_v2 = vld [vmem:[%s1845_s3 + $0x20] sm:$0xff] (!%p245_p3)   ;;  %v1485_v4 = vld [vmem:[%s1845_s3 + $0x28] sm:$0xff] (!%p245_p3)   ;;  %v1486_v5 = vld [vmem:[%s1845_s3 + $0x10] sm:$0xff] (!%p245_p3)   ;;  %s304_s30 = sadd.s32 (!%p245_p3), 1, %s1540_s18  ;;  %vm366_vm1 = vcmask (!%p245_p3), 523264   ;;  %s314_s7 = sadd.s32 (!%p245_p3), 2, %s1540_s18 }
   0xb   : > { %1332 = vmatpush3.bf16.msra.mxu0 (!%p245_p3), %v1482_v0  ;;  %1339 = vmatprep.mubr.msk.bf16.mxu0 (!%p245_p3), %vm1559_vm0, %v1558_v1  ;;  %v1487_v6 = vld [vmem:[%s1845_s3 + $0x30] sm:$0xff] (!%p245_p3)   ;;  %v1488_v7 = vld [vmem:[%s1845_s3 + $0x18] sm:$0xff] (!%p245_p3)   ;;  %v1490_v10 = vld [vmem:[%s1845_s3 + $0x40] sm:$0xff] (!%p245_p3)   ;;  %p307_p7 = scmp.lt.s32.totalorder (!%p245_p3), %s304_s30, 5  ;;  %p317_p8 = scmp.lt.s32.totalorder (!%p245_p3), %s314_s7, 5 }
   0xc   : > { %1344 = vmatpush3.bf16.msra.mxu1 (!%p245_p3), %v1483_v2  ;;  %1333 = vmatprep.subr.bf16.mxu0 (!%p245_p3), %v1558_v1  ;;  %v1489_v8 = vld [vmem:[%s1845_s3 + $0x38] sm:$0xff] (!%p245_p3)   ;;  %v1491_v11 = vld [vmem:[%s1845_s3 + $0x60] sm:$0xff] (!%p245_p3)   ;;  %v1492_v12 = vld [vmem:[%s1845_s3 + $0x48] sm:$0xff] (!%p245_p3)   ;;  %p326_p9 = scmp.lt.s32.totalorder (!%p245_p3), %s1540_s18, 3 }
   0xd   : > { %1345 = vmatprep.subr.bf16.mxu1 (!%p245_p3), %v1558_v1  ;;  %1351 = vmatprep.mubr.msk.bf16.mxu1 (!%p245_p3), %vm1559_vm0, %v1558_v1  ;;  %v1493_v13 = vld [vmem:[%s1845_s3 + $0x68] sm:$0xff] (!%p245_p3)   ;;  %v1494_v14 = vld [vmem:[%s1845_s3 + $0x50] sm:$0xff] (!%p245_p3)   ;;  %v1496_v16 = vld [vmem:[%s1845_s3 + $0x58] sm:$0xff] (!%p245_p3)  }
   0xe   : > { %v1495_v15 = vld [vmem:[%s1845_s3 + $0x70] sm:$0xff] (!%p245_p3)   ;;  %v1497_v17 = vld [vmem:[%s1845_s3 + $0x78] sm:$0xff] (!%p245_p3)   ;;  %v1498_v18 = vld [vmem:[%s1845_s3 + $0x80] sm:$0xff] (!%p245_p3)  }
   0xf   : > { %1334 = vmatpush3.bf16.msra.mxu0 (!%p245_p3), %v1484_v3  ;;  %v1499_v19 = vld [vmem:[%s1845_s3 + $0xa0] sm:$0xff] (!%p245_p3)   ;;  %v1500_v21 = vld [vmem:[%s1845_s3 + $0x88] sm:$0xff] (!%p245_p3)   ;;  %v1502_v23 = vld [vmem:[%s1845_s3 + $0x90] sm:$0xff] (!%p245_p3)  }
  0x10   : > { %s1859_s19 = smov (!%p296_p5, %s1544_s19), 1  ;;  %1346 = vmatpush3.bf16.msra.mxu1 %v1485_v4  ;;  %1335 = vmatprep.subr.bf16.mxu0 %v1558_v1  ;;  %s1861_s30 = smov (!%p307_p7, %s304_s30), 5  ;;  %v1501_v22 = vld [vmem:[%s1845_s3 + $0xa8] sm:$0xff]   ;;  %v1503_v24 = vld [vmem:[%s1845_s3 + $0xb0] sm:$0xff]   ;;  %v1504_v25 = vld [vmem:[%s1845_s3 + $0x98] sm:$0xff]  }
  0x11   : > { %s299_s8 = scalar_select %p298_p6, %s1540_s18, 5  ;;  %1347 = vmatprep.subr.bf16.mxu1 %v1558_v1  ;;  %v1505_v26 = vld [vmem:[%s1845_s3 + $0xb8] sm:$0xff]   ;;  %v1506_v27 = vld [vmem:[%s1845_s3 + $0xc0] sm:$0xff]   ;;  %v1508_v29 = vld [vmem:[%s1845_s3 + $0xc8] sm:$0xff]  }
  0x12   : > { %s1654_s11 = smul.u32 6, %s1859_s19  ;;  %v1507_v28 = vld [vmem:[%s1845_s3 + $0xe0] sm:$0xff]   ;;  %s1863_s7 = smov (!%p317_p8, %s314_s7), 5  ;;  %v1509_v30 = vld [vmem:[%s1845_s3 + $0xe8] sm:$0xff]   ;;  %v1510_v31 = vld [vmem:[%s1845_s3 + $0xd0] sm:$0xff]  }
  0x13   : > { %1336 = vmatpush3.bf16.msra.mxu0 %v1486_v5  ;;  %v1511_v32 = vld [vmem:[%s1845_s3 + $0xf0] sm:$0xff]   ;;  %v1512_v33 = vld [vmem:[%s1845_s3 + $0xd8] sm:$0xff]   ;;  %v1514_v36 = vld [vmem:[%s1845_s3 + $0x100] sm:$0xff]   ;;  %s1865_s18 = smov (!%p326_p9, %s1540_s18), 3  ;;  %s1172_s29 = sshll.u32 %s1859_s19, 2 }
  0x14   : > { %s301_s14 = sadd.s32 %s1654_s11, %s299_s8  ;;  %1348 = vmatpush3.bf16.msra.mxu1 %v1487_v6  ;;  %1337 = vmatprep.subr.bf16.mxu0 %v1558_v1  ;;  %s310_s17 = sadd.s32 %s1654_s11, %s1861_s30  ;;  %v1513_v34 = vld [vmem:[%s1845_s3 + $0xf8] sm:$0xff]   ;;  %v1515_v37 = vld [vmem:[%s1845_s3 + $0x108] sm:$0xff]   ;;  %v1516_v38 = vld [vmem:[%s1845_s3 + $0x110] sm:$0xff]  }
  0x15   : > { %s1169_s15 = sshll.u32 %s301_s14, 2  ;;  %1349 = vmatprep.subr.bf16.mxu1 %v1558_v1  ;;  %s320_s26 = sadd.s32 %s1654_s11, %s1863_s7  ;;  %v1517_v39 = vld [vmem:[%s1845_s3 + $0x118] sm:$0xff]  }
  0x16   : > { %s303_s27 = scalar_lea.vmem %s1842_s0, %s1169_s15  ;;  %s1171_s30 = sshll.u32 %s320_s26, 2 }
  0x17   : > { %v333_v9 = vld [vmem:[%s303_s27] sm:$0x7]  ;;  %1338 = vmatpush3.bf16.msra.mxu0 %v1488_v7  ;;  %s1170_s27 = sshll.u32 %s310_s17, 2  ;;  %s322_s13 = scalar_lea.vmem %s1844_s2, %s1171_s30 }
  0x18   : > { %1350 = vmatpush3.bf16.msra.mxu1 %v1489_v8  ;;  %1355 = vmatprep.subr.bf16.mxu0 %v1558_v1  ;;  %s312_s9 = scalar_lea.vmem %s1843_s1, %s1170_s27  ;;  %v797_v35 = vld [vmem:[%s322_s13] sm:$0x7]  ;;  %s329_s8 = sadd.s32 %s1172_s29, %s1865_s18 }
  0x19   : > { %1367 = vmatprep.subr.bf16.mxu1 %v1558_v1  ;;  %v565_v20 = vld [vmem:[%s312_s9] sm:$0x7]  ;;  %s1173_s9 = sshll.u32 %s329_s8, 1 }
  0x1a   : > { %1340 = vmatmul.mubr.msk.bf16.vlgmr.msra.gmra.mrb[0].mxu0 %vm366_vm1, %v333_v9  ;;  %s331_s10 = scalar_lea.vmem %s1847_s5, %s1173_s9 }
  0x1b   : > { %1352 = vmatmul.mubr.msk.bf16.vlgmr.msra.gmra.mrb[0].mxu1 %vm366_vm1, %v333_v9  ;;  %1356 = vmatpush3.bf16.msra.mxu0 %v1490_v10 }
  0x1c   : > { %1368 = vmatpush3.bf16.msra.mxu1 %v1491_v11  ;;  %1357 = vmatprep.subr.bf16.mxu0 %v1558_v1 }
  0x1d   : > { %1369 = vmatprep.subr.bf16.mxu1 %v1558_v1  ;;  %1363 = vmatprep.mubr.msk.bf16.mxu0 %vm1559_vm0, %v1558_v1 }
  0x1e   : > { %1375 = vmatprep.mubr.msk.bf16.mxu1 %vm1559_vm0, %v1558_v1 }
  0x1f   : > { %1358 = vmatpush3.bf16.msra.mxu0 %v1492_v12 }
  0x20   : > { %1370 = vmatpush3.bf16.msra.mxu1 %v1493_v13  ;;  %1359 = vmatprep.subr.bf16.mxu0 %v1558_v1 }
  0x21   : > { %1371 = vmatprep.subr.bf16.mxu1 %v1558_v1 }
  0x23   : > { %1360 = vmatpush3.bf16.msra.mxu0 %v1494_v14 }
  0x24   : > { %1372 = vmatpush3.bf16.msra.mxu1 %v1495_v15  ;;  %1361 = vmatprep.subr.bf16.mxu0 %v1558_v1 }
  0x25   : > { %1373 = vmatprep.subr.bf16.mxu1 %v1558_v1 }
  0x27   : > { %1362 = vmatpush3.bf16.msra.mxu0 %v1496_v16 }
  0x28   : > { %1374 = vmatpush3.bf16.msra.mxu1 %v1497_v17  ;;  %1379 = vmatprep.subr.bf16.mxu0 %v1558_v1 }
  0x29   : > { %1391 = vmatprep.subr.bf16.mxu1 %v1558_v1 }
  0x2a   : > { %1364 = vmatmul.mubr.msk.bf16.vlgmr.msra.gmra.mrb[4].mxu0 %vm366_vm1, %v333_v9 }
  0x2b   : > { %1376 = vmatmul.mubr.msk.bf16.vlgmr.msra.gmra.mrb[4].mxu1 %vm366_vm1, %v565_v20  ;;  %1380 = vmatpush3.bf16.msra.mxu0 %v1498_v18 }
  0x2c   : > { %1392 = vmatpush3.bf16.msra.mxu1 %v1499_v19  ;;  %1381 = vmatprep.subr.bf16.mxu0 %v1558_v1 }
  0x2d   : > { %1393 = vmatprep.subr.bf16.mxu1 %v1558_v1  ;;  %1387 = vmatprep.mubr.msk.bf16.mxu0 %vm1559_vm0, %v1558_v1 }
  0x2e   : > { %1399 = vmatprep.mubr.msk.bf16.mxu1 %vm1559_vm0, %v1558_v1 }
  0x2f   : > { %1382 = vmatpush3.bf16.msra.mxu0 %v1500_v21 }
  0x30   : > { %1394 = vmatpush3.bf16.msra.mxu1 %v1501_v22  ;;  %1383 = vmatprep.subr.bf16.mxu0 %v1558_v1 }
  0x31   : > { %1395 = vmatprep.subr.bf16.mxu1 %v1558_v1 }
  0x33   : > { %1384 = vmatpush3.bf16.msra.mxu0 %v1502_v23  ;;  %v1283_v23 = vld [vmem:[%s1846_s4] ss:$0 sm:$0xff] }
  0x34   : > { %1396 = vmatpush3.bf16.msra.mxu1 %v1503_v24  ;;  %1385 = vmatprep.subr.bf16.mxu0 %v1558_v1 }
  0x35   : > { %1397 = vmatprep.subr.bf16.mxu1 %v1558_v1 }
  0x37   : > { %1386 = vmatpush3.bf16.msra.mxu0 %v1504_v25 }
  0x38   : > { %1398 = vmatpush3.bf16.msra.mxu1 %v1505_v26  ;;  %1403 = vmatprep.subr.bf16.mxu0 %v1558_v1 }
  0x39   : > { %1415 = vmatprep.subr.bf16.mxu1 %v1558_v1 }
  0x3a   : > { %1388 = vmatmul.mubr.msk.bf16.vlgmr.msra.gmra.mrb[8].mxu0 %vm366_vm1, %v565_v20 }
  0x3b   : > { %1400 = vmatmul.mubr.msk.bf16.vlgmr.msra.gmra.mrb[8].mxu1 %vm366_vm1, %v565_v20  ;;  %1404 = vmatpush3.bf16.msra.mxu0 %v1506_v27 }
  0x3c   : > { %1416 = vmatpush3.bf16.msra.mxu1 %v1507_v28  ;;  %1405 = vmatprep.subr.bf16.mxu0 %v1558_v1 }
  0x3d   : > { %1417 = vmatprep.subr.bf16.mxu1 %v1558_v1  ;;  %1411 = vmatprep.mubr.msk.bf16.mxu0 %vm1559_vm0, %v1558_v1 }
  0x3e   : > { %1423 = vmatprep.mubr.msk.bf16.mxu1 %vm1559_vm0, %v1558_v1 }
  0x3f   : > { %1406 = vmatpush3.bf16.msra.mxu0 %v1508_v29 }
  0x40   : > { %1418 = vmatpush3.bf16.msra.mxu1 %v1509_v30  ;;  %1407 = vmatprep.subr.bf16.mxu0 %v1558_v1 }
  0x41   : > { %1419 = vmatprep.subr.bf16.mxu1 %v1558_v1 }
  0x43   : > { %1408 = vmatpush3.bf16.msra.mxu0 %v1510_v31 }
  0x44   : > { %1420 = vmatpush3.bf16.msra.mxu1 %v1511_v32  ;;  %1409 = vmatprep.subr.bf16.mxu0 %v1558_v1 }
  0x45   : > { %1421 = vmatprep.subr.bf16.mxu1 %v1558_v1 }
  0x47   : > { %1410 = vmatpush3.bf16.msra.mxu0 %v1512_v33 }
  0x48   : > { %1422 = vmatpush3.bf16.msra.mxu1 %v1513_v34  ;;  %1427 = vmatprep.subr.bf16.mxu0 %v1558_v1 }
  0x4a   : > { %1412 = vmatmul.mubr.msk.bf16.vlgmr.msra.gmra.mrb[12].mxu0 %vm366_vm1, %v797_v35 }
  0x4b   : > { %1424 = vmatmul.mubr.msk.bf16.vlgmr.msra.gmra.mrb[12].mxu1 %vm366_vm1, %v797_v35  ;;  %1428 = vmatpush3.bf16.msra.mxu0 %v1514_v36 }
  0x4c   : > { %1429 = vmatprep.subr.bf16.mxu0 %v1558_v1  ;;  %1435 = vmatprep.mubr.msk.bf16.mxu0 %vm1559_vm0, %v1558_v1 }
  0x4f   : > { %1430 = vmatpush3.bf16.msra.mxu0 %v1515_v37 }
  0x50   : > { %1431 = vmatprep.subr.bf16.mxu0 %v1558_v1 }
  0x53   : > { %1432 = vmatpush3.bf16.msra.mxu0 %v1516_v38 }
  0x54   : > { %1433 = vmatprep.subr.bf16.mxu0 %v1558_v1 }
  0x57   : > { %1434 = vmatpush3.bf16.msra.mxu0 %v1517_v39 }
  0x5a   : > { %1436 = vmatmul.mubr.msk.bf16.vlgmr.msra.gmra.mrb[16].mxu0 %vm366_vm1, %v797_v35 }
  0xed   : > { %v404_v40 = vpop.f32.mrb[0].mxu0 }
  0xee   : > { %v478_v41 = vpop.f32.mrb[0].mxu1  ;;  %v1341_v42 = vpop.f32.mrb[1].mxu0 }
  0xef   : > { %v485_v43 = vrot.slane %v478_v41, 1  ;;  %v407_v44 = vpop.f32.mrb[2].mxu0  ;;  %v1353_v45 = vpop.f32.mrb[1].mxu1 }
  0xf0   : > { %v1342_v46 = vpop.f32.mrb[3].mxu0  ;;  %v481_v47 = vpop.f32.mrb[2].mxu1 }
  0xf1   : > { %v487_v48 = vadd.f32 %v485_v43, %v404_v40  ;;  %v1354_v49 = vpop.f32.mrb[3].mxu1 }
  0xfd   : > { %v555_v50 = vpop.f32.mrb[4].mxu0 }
  0xfe   : > { %v562_v51 = vrot.slane %v555_v50, 2  ;;  %v1365_v52 = vpop.f32.mrb[5].mxu0  ;;  %v636_v53 = vpop.f32.mrb[4].mxu1 }
  0xff   : > { %v558_v54 = vpop.f32.mrb[6].mxu0  ;;  %v1377_v55 = vpop.f32.mrb[5].mxu1 }
 0x100   : > { %v1366_v56 = vpop.f32.mrb[7].mxu0  ;;  %v564_v57 = vadd.f32 %v562_v51, %v487_v48  ;;  %v639_v58 = vpop.f32.mrb[6].mxu1 }
 0x101   : > { %v1378_v59 = vpop.f32.mrb[7].mxu1 }
 0x102   : > { %v642_v60 = vadd.f32 %v636_v53, %v564_v57 }
 0x10d   : > { %v710_v61 = vpop.f32.mrb[8].mxu0 }
 0x10e   : > { %v717_v62 = vrot.slane %v710_v61, 1  ;;  %v1389_v63 = vpop.f32.mrb[9].mxu0  ;;  %v787_v0 = vpop.f32.mrb[8].mxu1 }
 0x10f   : > { %v713_v1 = vpop.f32.mrb[10].mxu0  ;;  %v794_v2 = vrot.slane %v787_v0, 2  ;;  %v1401_v3 = vpop.f32.mrb[9].mxu1 }
 0x110   : > { %v719_v4 = vadd.f32 %v717_v62, %v642_v60  ;;  %v1390_v5 = vpop.f32.mrb[11].mxu0  ;;  %v790_v6 = vpop.f32.mrb[10].mxu1 }
 0x111   : > { %v1402_v7 = vpop.f32.mrb[11].mxu1 }
 0x112   : > { %v796_v8 = vadd.f32 %v794_v2, %v719_v4 }
 0x11d   : > { %v868_v9 = vpop.f32.mrb[12].mxu0 }
 0x11e   : > { %v874_v10 = vadd.f32 %v868_v9, %v796_v8  ;;  %v942_v11 = vpop.f32.mrb[12].mxu1  ;;  %v1413_v12 = vpop.f32.mrb[13].mxu0 }
 0x11f   : > { %v949_v13 = vrot.slane %v942_v11, 1  ;;  %v871_v14 = vpop.f32.mrb[14].mxu0  ;;  %v1425_v15 = vpop.f32.mrb[13].mxu1 }
 0x120   : > { %v1414_v16 = vpop.f32.mrb[15].mxu0  ;;  %v945_v17 = vpop.f32.mrb[14].mxu1 }
 0x121   : > { %v951_v18 = vadd.f32 %v949_v13, %v874_v10  ;;  %v1426_v19 = vpop.f32.mrb[15].mxu1 }
 0x12d   : > { %v1019_v20 = vpop.f32.mrb[16].mxu0 }
 0x12e   : > { %v1026_v21 = vrot.slane %v1019_v20, 2  ;;  %v1437_v22 = vpop.f32.mrb[17].mxu0 }
 0x12f   : > { %v1022_v24 = vpop.f32.mrb[18].mxu0 }
 0x130   : > { %v1028_v25 = vadd.f32 %v1026_v21, %v951_v18  ;;  %v1438_v26 = vpop.f32.mrb[19].mxu0 }
 0x132   : > { %v1036_v27 = vadd.f32 %v1283_v23, %v1028_v25 }
 0x134   : > { %vm1037_vm2 = vcmp.gt.f32.partialorder %v1036_v27, 0.0  ;;  %v1038_v28 = vmul.f32 0.1, %v1036_v27 }
 0x136   : > { %v1039_v29 = vsel %vm1037_vm2, %v1036_v27, %v1038_v28 }
 0x137   : > { %v1040_v30 = vpack.c.bf16 %v1039_v29, %v1039_v29 }
 0x139   : > { %1041 = vst [vmem:[%s331_s10] sm:$0x3] %v1040_v30 }
 0x13a PF: > { %s15_s22 = sadd.s32 1, %s1556_s22   ;;  %s1848_s18 = smov %s1548_s20 }
 0x13b   : > { %p12_p10 = scmp.ge.s32.totalorder %s15_s22, 10   ;;  %s1849_s19 = smov %s1552_s21 }
 0x13c   : > { %s1850_s20 = smov %s1853_s23  ;;  %s1851_s21 = smov %s1857_s24 }
 0x13d   :  { %14 = sbr.rel (!%p12_p10) target bundleno = 3 (0x3), region = 84 }

// kernel: unet1x3_forward.15
= control target key start
LH: loop header
LB: loop body
LE: loop exit
PB: predicated region body
PF: predicated region fallthrough
CT: control target
= control target key end

     0   :  { %s679_s18 = smov 0   ;;  %s681_s19 = smov 0   ;;  %s750_s0 = inlined_call_operand.vmem [shape: bf16[2,4,64], index: 0, kind: input, shape index: {}]   ;;  %s751_s1 = inlined_call_operand.vmem [shape: bf16[2,1,64], index: 1, kind: input, shape index: {}]   ;;  %s752_s2 = inlined_call_operand.vmem [shape: bf16[2,4,256], index: 2, kind: input, shape index: {}]   ;;  %s753_s3 = inlined_call_operand.vmem [shape: bf16[64,256], index: 3, kind: input, shape index: {}]   ;;  %s754_s4 = inlined_call_operand.vmem [shape: f32[1,256], index: 4, kind: input, shape index: {}]   ;;  %s755_s5 = inlined_call_operand.vmem [shape: bf16[2,4,256], index: 5, kind: output, shape index: {}]  }
   0x1   :  { %s683_s20 = smov 0  }
   0x2 LB: > { %s27_s21 = sadd.s32 1, %s642_s19  ;;  %p566_p0 = scmp.ge.s32.totalorder %s646_s20, 1  ;;  %s646_s20 = sphi %s683_s20, %s15_s20   ;;  %s642_s19 = sphi %s681_s19, %s757_s19   ;;  %s638_s18 = sphi %s679_s18, %s756_s18  }
   0x3   : > { %p29_p1 = scmp.ge.s32.totalorder %s27_s21, 2  ;;  %p229_p2 = scmp.lt.s32.totalorder %s646_s20, 3 }
   0x5   : > { %s759_s21 = smov (%p29_p1, %s27_s21), 0  ;;  %p230_p3 = pnand %p566_p0, %p229_p2 }
   0x6   : > { %v612_v0 = vld [vmem:[%s753_s3 + $0x4] ss:$8 sps:$4 sm:$0xff] (!%p230_p3)   ;;  %p275_p4 = scmp.lt.s32.totalorder (!%p230_p3), %s638_s18, 1  ;;  %v309_v1 = vlaneseq (!%p230_p3)  ;;  %v614_v2 = vld [vmem:[%s753_s3] ss:$8 sps:$4 sm:$0xff] (!%p230_p3)   ;;  %v648_v3 = vmov (!%p230_p3), 0  }
   0x7   : > { %233 = sbr.rel (%p230_p3) target bundleno = 246 (0xf6), region = 40  ;;  %410 = vmatprep.mubr.bf16.mxu0 (!%p230_p3), %v648_v3  ;;  %378 = vmatprep.subr.bf16.mxu0 (!%p230_p3), %v612_v0  ;;  %v615_v4 = vld [vmem:[%s753_s3 + $0x14] ss:$8 sps:$4 sm:$0xff] (!%p230_p3)   ;;  %v617_v5 = vld [vmem:[%s753_s3 + $0x10] ss:$8 sps:$4 sm:$0xff] (!%p230_p3)   ;;  %vm374_vm0 = vcmask (!%p230_p3), 523264  }
   0x8   : > { %379 = vmatpush1.bf16.msra.mxu0 (!%p230_p3), %v614_v2  ;;  %v310_v6 = vshrl.u32 (!%p230_p3), %v309_v1, 7  ;;  %v618_v7 = vld [vmem:[%s753_s3 + $0x24] ss:$8 sps:$4 sm:$0xff] (!%p230_p3)   ;;  %v620_v11 = vld [vmem:[%s753_s3 + $0x20] ss:$8 sps:$4 sm:$0xff] (!%p230_p3)  }
   0x9   : > { %380 = vmatprep.subr.bf16.mxu0 (!%p230_p3), %v615_v4  ;;  %v621_v12 = vld [vmem:[%s753_s3 + $0x34] ss:$8 sps:$4 sm:$0xff] (!%p230_p3)   ;;  %v623_v14 = vld [vmem:[%s753_s3 + $0x30] ss:$8 sps:$4 sm:$0xff] (!%p230_p3)   ;;  %v322_v17 = vld [vmem:[%s754_s4] sm:$0x3] (!%p230_p3) }
   0xa   : > { %v311_v10 = vsub.s32 (!%p230_p3), 0, %v310_v6  ;;  %v330_v18 = vsub.s32 (!%p230_p3), 1, %v310_v6 }
   0xc   : > { %381 = vmatpush1.bf16.msra.mxu0 (!%p230_p3), %v617_v5  ;;  %v327_v20 = vrot.slane (!%p230_p3), %v322_v17, %v311_v10  ;;  %v331_v21 = vrot.slane (!%p230_p3), %v322_v17, %v330_v18 }
   0xd   : > { %382 = vmatprep.subr.bf16.mxu0 (!%p230_p3), %v618_v7 }
   0xe   : > { %s761_s18 = smov (!%p275_p4, %s638_s18), 1 }
   0xf   : > { %s284_s9 = scalar_lea.vmem %s751_s1, %s761_s18  ;;  %s567_s10 = sshll.u32 %s761_s18, 1 }
  0x10   : > { %v305_v8 = vld [vmem:[%s284_s9] sm:$0x1]  ;;  %s281_s17 = scalar_lea.vmem %s750_s0, %s567_s10  ;;  %383 = vmatpush1.bf16.msra.mxu0 %v620_v11  ;;  %s585_s24 = sshll.u32 %s761_s18, 2 }
  0x11   : > { %v307_v9 = vpack.i.b16 %v305_v8, %v305_v8  ;;  %v304_v15 = vld [vmem:[%s281_s17] sm:$0x3]  ;;  %384 = vmatprep.subr.bf16.mxu0 %v621_v12  ;;  %s293_s27 = scalar_lea.vmem %s752_s2, %s585_s24  ;;  %s302_s6 = scalar_lea.vmem %s755_s5, %s585_s24 }
  0x12   : > { %v425_v19 = vld [vmem:[%s293_s27] sm:$0xf] }
  0x13   : > { %v312_v13 = vrot.slane %v307_v9, %v311_v10  ;;  %v426_v22 = vunpack.c.l.bf16 %v425_v19 }
  0x14   : > { %385 = vmatpush1.bf16.msra.mxu0 %v623_v14 }
  0x15   : > { %v313_v16 = vmul.bf16 %v312_v13, %v304_v15  ;;  %v428_v29 = vcombine.high %v426_v22, %v426_v22 }
  0x17   : > { %580 = vmatmul.mubr.msk.bf16.vlgmr.msra.gmra.mrb[0].mxu0 %vm374_vm0, %v313_v16 }
  0xea   : > { %v412_v23 = vpop.f32.mrb[0].mxu0 }
  0xeb   : > { %v413_v24 = vadd.f32 %v412_v23, %v327_v20  ;;  %v414_v25 = vpop.f32.mrb[1].mxu0 }
  0xec   : > { %v415_v26 = vadd.f32 %v414_v25, %v331_v21  ;;  %v416_v27 = vpop.f32.mrb[2].mxu0 }
  0xed   : > { %vm419_vm1 = vcmp.gt.f32.partialorder %v413_v24, 0.0  ;;  %v421_v28 = vmul.f32 0.1, %v413_v24  ;;  %v417_v30 = vpop.f32.mrb[3].mxu0 }
  0xee   : > { %vm420_vm2 = vcmp.gt.f32.partialorder %v415_v26, 0.0  ;;  %v422_v31 = vmul.f32 0.1, %v415_v26 }
  0xef   : > { %v423_v32 = vsel %vm419_vm1, %v413_v24, %v421_v28 }
  0xf0   : > { %v430_v33 = vadd.f32 %v426_v22, %v423_v32  ;;  %v424_v34 = vsel %vm420_vm2, %v415_v26, %v422_v31 }
  0xf1   : > { %v431_v35 = vadd.f32 %v428_v29, %v424_v34 }
  0xf3   : > { %v581_v36 = vpack.c.bf16 %v431_v35, %v430_v33 }
  0xf5   : > { %582 = vst.sshfl [vmem:[%s302_s6] sm:$0x33 pattern:$0x76325410] %v581_v36 }
  0xf6 PF: > { %s15_s20 = sadd.s32 1, %s646_s20   ;;  %s756_s18 = smov %s642_s19 }
  0xf7   : > { %p12_p5 = scmp.ge.s32.totalorder %s15_s20, 4   ;;  %s757_s19 = smov %s759_s21 }
  0xf9   :  { %14 = sbr.rel (!%p12_p5) target bundleno = 2 (0x2), region = 76 }

// kernel: unet1x3_forward.13
= control target key start
LH: loop header
LB: loop body
LE: loop exit
PB: predicated region body
PF: predicated region fallthrough
CT: control target
= control target key end

     0   :  { %s2097_s18 = smov 0   ;;  %s2099_s19 = smov 0   ;;  %s2489_s0 = inlined_call_operand.vmem [shape: bf16[2,4,4,128], index: 0, kind: input, shape index: {}, may-alias: {0,1,2}]   ;;  %s2490_s1 = inlined_call_operand.vmem [shape: bf16[2,4,4,128], index: 1, kind: input, shape index: {}, may-alias: {0,1,2}]   ;;  %s2491_s2 = inlined_call_operand.vmem [shape: bf16[2,4,4,128], index: 2, kind: input, shape index: {}, may-alias: {0,1,2}]   ;;  %s2492_s3 = inlined_call_operand.vmem [shape: bf16[9,128,64], index: 3, kind: input, shape index: {}]   ;;  %s2493_s4 = inlined_call_operand.vmem [shape: f32[1,64], index: 4, kind: input, shape index: {}]   ;;  %s2494_s5 = inlined_call_operand.vmem [shape: bf16[2,2,2,64], index: 5, kind: output, shape index: {}]  }
   0x1   :  { %s2101_s20 = smov 0   ;;  %s2103_s21 = smov 0  }
   0x2   :  { %s2105_s22 = smov 0  }
   0x3 LB: > { %s24_s23 = sadd.s32 1, %s2055_s20  ;;  %s27_s24 = sadd.s32 1, %s2059_s21  ;;  %s2063_s22 = sphi %s2105_s22, %s15_s22   ;;  %s2059_s21 = sphi %s2103_s21, %s2498_s21   ;;  %s2055_s20 = sphi %s2101_s20, %s2497_s20   ;;  %s2051_s19 = sphi %s2099_s19, %s2496_s19   ;;  %s2047_s18 = sphi %s2097_s18, %s2495_s18  }
   0x4   : > { %p25_p0 = scmp.ge.s32.totalorder %s24_s23, 2  ;;  %p1439_p1 = scmp.ge.s32.totalorder %s2063_s22, 1 }
   0x5   : > { %p244_p2 = scmp.lt.s32.totalorder %s2063_s22, 5 }
   0x6   : > { %s2500_s23 = smov (%p25_p0, %s24_s23), 0  ;;  %s2502_s24 = smov (!%p25_p0, %s27_s24), %s2059_s21 }
   0x7   : > { %p245_p3 = pnand %p1439_p1, %p244_p2  ;;  %p29_p4 = scmp.ge.s32.totalorder %s2502_s24, 2 }
   0x8   : > { %v1953_v0 = vld [vmem:[%s2492_s3] sm:$0xff] (!%p245_p3)   ;;  %v2065_v1 = vmov (!%p245_p3), 0.0   ;;  %v1955_v3 = vld [vmem:[%s2492_s3 + $0x8] sm:$0xff] (!%p245_p3)   ;;  %vm2066_vm0 = vmmov (!%p245_p3), 0   ;;  %v1957_v5 = vld [vmem:[%s2492_s3 + $0x10] sm:$0xff] (!%p245_p3)   ;;  %p295_p5 = scmp.lt.s32.totalorder (!%p245_p3), %s2051_s19, 1 }
   0x9   : > { %s2504_s24 = smov (%p29_p4, %s2502_s24), 0  ;;  %248 = sbr.rel (%p245_p3) target bundleno = 394 (0x18a), region = 40 }
   0xa   : > { %1731 = vmatprep.subr.bf16.mxu0 (!%p245_p3), %v2065_v1  ;;  %1751 = vmatprep.subr.bf16.mxu1 (!%p245_p3), %v2065_v1  ;;  %v1954_v2 = vld [vmem:[%s2492_s3 + $0x40] sm:$0xff] (!%p245_p3)   ;;  %v1956_v4 = vld [vmem:[%s2492_s3 + $0x48] sm:$0xff] (!%p245_p3)   ;;  %v1958_v6 = vld [vmem:[%s2492_s3 + $0x50] sm:$0xff] (!%p245_p3)   ;;  %p297_p6 = scmp.lt.s32.totalorder (!%p245_p3), %s2047_s18, 3  ;;  %s303_s16 = sadd.s32 (!%p245_p3), 1, %s2047_s18  ;;  %vm1317_vm2 = vcmask (!%p245_p3), 516096  }
   0xb   : > { %1732 = vmatpush3.bf16.msra.mxu0 (!%p245_p3), %v1953_v0  ;;  %1747 = vmatprep.mubr.msk.bf16.mxu0 (!%p245_p3), %vm2066_vm0, %v2065_v1  ;;  %v1959_v7 = vld [vmem:[%s2492_s3 + $0x18] sm:$0xff] (!%p245_p3)   ;;  %v1961_v9 = vld [vmem:[%s2492_s3 + $0x20] sm:$0xff] (!%p245_p3)   ;;  %v1963_v11 = vld [vmem:[%s2492_s3 + $0x28] sm:$0xff] (!%p245_p3)   ;;  %p306_p7 = scmp.lt.s32.totalorder (!%p245_p3), %s303_s16, 3  ;;  %p325_p9 = scmp.lt.s32.totalorder (!%p245_p3), %s2047_s18, 1 }
   0xc   : > { %1752 = vmatpush3.bf16.msra.mxu1 (!%p245_p3), %v1954_v2  ;;  %1733 = vmatprep.subr.bf16.mxu0 (!%p245_p3), %v2065_v1  ;;  %v1960_v8 = vld [vmem:[%s2492_s3 + $0x58] sm:$0xff] (!%p245_p3)   ;;  %v1962_v10 = vld [vmem:[%s2492_s3 + $0x60] sm:$0xff] (!%p245_p3)   ;;  %v1964_v12 = vld [vmem:[%s2492_s3 + $0x68] sm:$0xff] (!%p245_p3)  }
   0xd   : > { %1753 = vmatprep.subr.bf16.mxu1 (!%p245_p3), %v2065_v1  ;;  %1767 = vmatprep.mubr.msk.bf16.mxu1 (!%p245_p3), %vm2066_vm0, %v2065_v1  ;;  %v1965_v13 = vld [vmem:[%s2492_s3 + $0x30] sm:$0xff] (!%p245_p3)   ;;  %v1967_v15 = vld [vmem:[%s2492_s3 + $0x38] sm:$0xff] (!%p245_p3)   ;;  %v1969_v18 = vld [vmem:[%s2492_s3 + $0x80] sm:$0xff] (!%p245_p3)  }
   0xe   : > { %v1966_v14 = vld [vmem:[%s2492_s3 + $0x70] sm:$0xff] (!%p245_p3)   ;;  %v1968_v16 = vld [vmem:[%s2492_s3 + $0x78] sm:$0xff] (!%p245_p3)   ;;  %v1970_v19 = vld [vmem:[%s2492_s3 + $0xc0] sm:$0xff] (!%p245_p3)  }
   0xf   : > { %1734 = vmatpush3.bf16.msra.mxu0 (!%p245_p3), %v1955_v3  ;;  %v1971_v20 = vld [vmem:[%s2492_s3 + $0x88] sm:$0xff] (!%p245_p3)   ;;  %v1973_v22 = vld [vmem:[%s2492_s3 + $0x90] sm:$0xff] (!%p245_p3)   ;;  %v1975_v24 = vld [vmem:[%s2492_s3 + $0x98] sm:$0xff] (!%p245_p3)  }
  0x10   : > { %1754 = vmatpush3.bf16.msra.mxu1 %v1956_v4  ;;  %1735 = vmatprep.subr.bf16.mxu0 %v2065_v1  ;;  %s2506_s19 = smov (!%p295_p5, %s2051_s19), 1  ;;  %v1972_v21 = vld [vmem:[%s2492_s3 + $0xc8] sm:$0xff]   ;;  %v1974_v23 = vld [vmem:[%s2492_s3 + $0xd0] sm:$0xff]   ;;  %v1976_v25 = vld [vmem:[%s2492_s3 + $0xd8] sm:$0xff]   ;;  %s2508_s16 = smov (!%p306_p7, %s303_s16), 3 }
  0x11   : > { %1755 = vmatprep.subr.bf16.mxu1 %v2065_v1  ;;  %s298_s27 = scalar_select %p297_p6, %s2047_s18, 3  ;;  %v1977_v26 = vld [vmem:[%s2492_s3 + $0xa0] sm:$0xff]   ;;  %v1979_v28 = vld [vmem:[%s2492_s3 + $0xa8] sm:$0xff]   ;;  %v1981_v30 = vld [vmem:[%s2492_s3 + $0xb0] sm:$0xff]  }
  0x12   : > { %s2182_s28 = sshll.u32 %s2506_s19, 2  ;;  %v1978_v27 = vld [vmem:[%s2492_s3 + $0xe0] sm:$0xff]   ;;  %v1980_v29 = vld [vmem:[%s2492_s3 + $0xe8] sm:$0xff]   ;;  %v1982_v31 = vld [vmem:[%s2492_s3 + $0xf0] sm:$0xff]   ;;  %s1446_s9 = sshll.u32 %s2506_s19, 1 }
  0x13   : > { %1736 = vmatpush3.bf16.msra.mxu0 %v1957_v5  ;;  %s300_s8 = sadd.s32 %s2182_s28, %s298_s27  ;;  %s309_s12 = sadd.s32 %s2182_s28, %s2508_s16  ;;  %v1983_v32 = vld [vmem:[%s2492_s3 + $0xb8] sm:$0xff]   ;;  %v1985_v35 = vld [vmem:[%s2492_s3 + $0x100] sm:$0xff]   ;;  %v1987_v37 = vld [vmem:[%s2492_s3 + $0x108] sm:$0xff]  }
  0x14   : > { %1756 = vmatpush3.bf16.msra.mxu1 %v1958_v6  ;;  %1737 = vmatprep.subr.bf16.mxu0 %v2065_v1  ;;  %s1441_s13 = sshll.u32 %s300_s8, 1  ;;  %v1984_v33 = vld [vmem:[%s2492_s3 + $0xf8] sm:$0xff]   ;;  %v1986_v36 = vld [vmem:[%s2492_s3 + $0x140] sm:$0xff]   ;;  %v1988_v38 = vld [vmem:[%s2492_s3 + $0x148] sm:$0xff]   ;;  %s313_s16 = sadd.s32 2, %s2047_s18 }
  0x15   : > { %1757 = vmatprep.subr.bf16.mxu1 %v2065_v1  ;;  %s302_s25 = scalar_lea.vmem %s2489_s0, %s1441_s13  ;;  %v1989_v39 = vld [vmem:[%s2492_s3 + $0x110] sm:$0xff]   ;;  %v1991_v41 = vld [vmem:[%s2492_s3 + $0x118] sm:$0xff]   ;;  %v1993_v43 = vld [vmem:[%s2492_s3 + $0x120] sm:$0xff]   ;;  %p316_p8 = scmp.lt.s32.totalorder %s313_s16, 3 }
  0x16   : > { %v2212_v17 = vld [vmem:[%s302_s25] sm:$0x3]  ;;  %s1443_s25 = sshll.u32 %s309_s12, 1  ;;  %v1990_v40 = vld [vmem:[%s2492_s3 + $0x150] sm:$0xff]   ;;  %v1992_v42 = vld [vmem:[%s2492_s3 + $0x158] sm:$0xff]   ;;  %s2512_s18 = smov (!%p325_p9, %s2047_s18), 1 }
  0x17   : > { %1738 = vmatpush3.bf16.msra.mxu0 %v1959_v7  ;;  %s311_s30 = scalar_lea.vmem %s2490_s1, %s1443_s25  ;;  %v1994_v44 = vld [vmem:[%s2492_s3 + $0x160] sm:$0xff]   ;;  %v1995_v45 = vld [vmem:[%s2492_s3 + $0x128] sm:$0xff]   ;;  %v1997_v47 = vld [vmem:[%s2492_s3 + $0x130] sm:$0xff]   ;;  %s2510_s16 = smov (!%p316_p8, %s313_s16), 3 }
  0x18   : > { %1758 = vmatpush3.bf16.msra.mxu1 %v1960_v8  ;;  %1739 = vmatprep.subr.bf16.mxu0 %v2065_v1  ;;  %v655_v34 = vld [vmem:[%s311_s30] sm:$0x3]  ;;  %v1996_v46 = vld [vmem:[%s2492_s3 + $0x168] sm:$0xff]   ;;  %v1998_v48 = vld [vmem:[%s2492_s3 + $0x170] sm:$0xff]   ;;  %s319_s14 = sadd.s32 %s2182_s28, %s2510_s16  ;;  %s328_s10 = sadd.s32 %s1446_s9, %s2512_s18 }
  0x19   : > { %1759 = vmatprep.subr.bf16.mxu1 %v2065_v1  ;;  %v1999_v49 = vld [vmem:[%s2492_s3 + $0x138] sm:$0xff]   ;;  %v2001_v51 = vld [vmem:[%s2492_s3 + $0x180] sm:$0xff]   ;;  %v2003_v53 = vld [vmem:[%s2492_s3 + $0x188] sm:$0xff]   ;;  %s1445_s27 = sshll.u32 %s319_s14, 1  ;;  %s329_s13 = scalar_lea.vmem %s2494_s5, %s328_s10 }
  0x1a   : > { %v2000_v50 = vld [vmem:[%s2492_s3 + $0x178] sm:$0xff]   ;;  %v2002_v52 = vld [vmem:[%s2492_s3 + $0x1c0] sm:$0xff]   ;;  %v2004_v54 = vld [vmem:[%s2492_s3 + $0x1c8] sm:$0xff]   ;;  %s321_s8 = scalar_lea.vmem %s2491_s2, %s1445_s27 }
  0x1b   : > { %1740 = vmatpush3.bf16.msra.mxu0 %v1961_v9  ;;  %v2005_v55 = vld [vmem:[%s2492_s3 + $0x190] sm:$0xff]   ;;  %v2007_v57 = vld [vmem:[%s2492_s3 + $0x198] sm:$0xff]   ;;  %v2009_v59 = vld [vmem:[%s2492_s3 + $0x1a0] sm:$0xff]  }
  0x1c   : > { %1760 = vmatpush3.bf16.msra.mxu1 %v1962_v10  ;;  %1741 = vmatprep.subr.bf16.mxu0 %v2065_v1  ;;  %v2006_v56 = vld [vmem:[%s2492_s3 + $0x1d0] sm:$0xff]   ;;  %v2008_v58 = vld [vmem:[%s2492_s3 + $0x1d8] sm:$0xff]   ;;  %v2010_v60 = vld [vmem:[%s2492_s3 + $0x1e0] sm:$0xff]  }
  0x1d   : > { %1761 = vmatprep.subr.bf16.mxu1 %v2065_v1  ;;  %v2011_v61 = vld [vmem:[%s2492_s3 + $0x1a8] sm:$0xff]   ;;  %v2013_v63 = vld [vmem:[%s2492_s3 + $0x1b0] sm:$0xff]   ;;  %v2015_v2 = vld [vmem:[%s2492_s3 + $0x1b8] sm:$0xff]  }
  0x1e   : > { %v2012_v62 = vld [vmem:[%s2492_s3 + $0x1e8] sm:$0xff]   ;;  %v2014_v0 = vld [vmem:[%s2492_s3 + $0x1f0] sm:$0xff]   ;;  %v2016_v3 = vld [vmem:[%s2492_s3 + $0x1f8] sm:$0xff]  }
  0x1f   : > { %1742 = vmatpush3.bf16.msra.mxu0 %v1963_v11  ;;  %v980_v4 = vld [vmem:[%s321_s8] sm:$0x3]  ;;  %v2018_v6 = vld [vmem:[%s2492_s3 + $0x208] sm:$0xff]   ;;  %v2019_v7 = vld [vmem:[%s2492_s3 + $0x210] sm:$0xff]  }
  0x20   : > { %1762 = vmatpush3.bf16.msra.mxu1 %v1964_v12  ;;  %1743 = vmatprep.subr.bf16.mxu0 %v2065_v1  ;;  %v2017_v5 = vld [vmem:[%s2492_s3 + $0x200] sm:$0xff]   ;;  %v2020_v8 = vld [vmem:[%s2492_s3 + $0x218] sm:$0xff]   ;;  %v2022_v10 = vld [vmem:[%s2492_s3 + $0x228] sm:$0xff]  }
  0x21   : > { %1763 = vmatprep.subr.bf16.mxu1 %v2065_v1  ;;  %v2021_v9 = vld [vmem:[%s2492_s3 + $0x220] sm:$0xff]   ;;  %v2023_v11 = vld [vmem:[%s2492_s3 + $0x230] sm:$0xff]   ;;  %v2024_v12 = vld [vmem:[%s2492_s3 + $0x238] sm:$0xff]  }
  0x23   : > { %1744 = vmatpush3.bf16.msra.mxu0 %v1965_v13 }
  0x24   : > { %1764 = vmatpush3.bf16.msra.mxu1 %v1966_v14  ;;  %1745 = vmatprep.subr.bf16.mxu0 %v2065_v1 }
  0x25   : > { %1765 = vmatprep.subr.bf16.mxu1 %v2065_v1 }
  0x27   : > { %1746 = vmatpush3.bf16.msra.mxu0 %v1967_v15 }
  0x28   : > { %1766 = vmatpush3.bf16.msra.mxu1 %v1968_v16  ;;  %1771 = vmatprep.subr.bf16.mxu0 %v2065_v1 }
  0x29   : > { %1791 = vmatprep.subr.bf16.mxu1 %v2065_v1 }
  0x2a   : > { %1748 = vmatmul.mubr.bf16.vlgmr.msra.gmra.mrb[0].mxu0 %v2212_v17 }
  0x2b   : > { %1768 = vmatmul.mubr.bf16.vlgmr.msra.gmra.mrb[0].mxu1 %v2212_v17  ;;  %1772 = vmatpush3.bf16.msra.mxu0 %v1969_v18 }
  0x2c   : > { %1792 = vmatpush3.bf16.msra.mxu1 %v1970_v19  ;;  %1773 = vmatprep.subr.bf16.mxu0 %v2065_v1 }
  0x2d   : > { %1793 = vmatprep.subr.bf16.mxu1 %v2065_v1  ;;  %1787 = vmatprep.mubr.msk.bf16.mxu0 %vm2066_vm0, %v2065_v1 }
  0x2e   : > { %1807 = vmatprep.mubr.msk.bf16.mxu1 %vm2066_vm0, %v2065_v1 }
  0x2f   : > { %1774 = vmatpush3.bf16.msra.mxu0 %v1971_v20 }
  0x30   : > { %1794 = vmatpush3.bf16.msra.mxu1 %v1972_v21  ;;  %1775 = vmatprep.subr.bf16.mxu0 %v2065_v1 }
  0x31   : > { %1795 = vmatprep.subr.bf16.mxu1 %v2065_v1 }
  0x33   : > { %1776 = vmatpush3.bf16.msra.mxu0 %v1973_v22 }
  0x34   : > { %1796 = vmatpush3.bf16.msra.mxu1 %v1974_v23  ;;  %1777 = vmatprep.subr.bf16.mxu0 %v2065_v1 }
  0x35   : > { %1797 = vmatprep.subr.bf16.mxu1 %v2065_v1 }
  0x37   : > { %1778 = vmatpush3.bf16.msra.mxu0 %v1975_v24 }
  0x38   : > { %1798 = vmatpush3.bf16.msra.mxu1 %v1976_v25  ;;  %1779 = vmatprep.subr.bf16.mxu0 %v2065_v1 }
  0x39   : > { %1799 = vmatprep.subr.bf16.mxu1 %v2065_v1 }
  0x3b   : > { %1780 = vmatpush3.bf16.msra.mxu0 %v1977_v26 }
  0x3c   : > { %1800 = vmatpush3.bf16.msra.mxu1 %v1978_v27  ;;  %1781 = vmatprep.subr.bf16.mxu0 %v2065_v1 }
  0x3d   : > { %1801 = vmatprep.subr.bf16.mxu1 %v2065_v1 }
  0x3f   : > { %1782 = vmatpush3.bf16.msra.mxu0 %v1979_v28 }
  0x40   : > { %1802 = vmatpush3.bf16.msra.mxu1 %v1980_v29  ;;  %1783 = vmatprep.subr.bf16.mxu0 %v2065_v1 }
  0x41   : > { %1803 = vmatprep.subr.bf16.mxu1 %v2065_v1 }
  0x43   : > { %1784 = vmatpush3.bf16.msra.mxu0 %v1981_v30 }
  0x44   : > { %1804 = vmatpush3.bf16.msra.mxu1 %v1982_v31  ;;  %1785 = vmatprep.subr.bf16.mxu0 %v2065_v1 }
  0x45   : > { %1805 = vmatprep.subr.bf16.mxu1 %v2065_v1 }
  0x47   : > { %1786 = vmatpush3.bf16.msra.mxu0 %v1983_v32 }
  0x48   : > { %1806 = vmatpush3.bf16.msra.mxu1 %v1984_v33  ;;  %1811 = vmatprep.subr.bf16.mxu0 %v2065_v1 }
  0x49   : > { %1831 = vmatprep.subr.bf16.mxu1 %v2065_v1 }
  0x4a   : > { %1788 = vmatmul.mubr.bf16.vlgmr.msra.gmra.mrb[4].mxu0 %v2212_v17 }
  0x4b   : > { %1808 = vmatmul.mubr.bf16.vlgmr.msra.gmra.mrb[4].mxu1 %v655_v34  ;;  %1812 = vmatpush3.bf16.msra.mxu0 %v1985_v35 }
  0x4c   : > { %1832 = vmatpush3.bf16.msra.mxu1 %v1986_v36  ;;  %1813 = vmatprep.subr.bf16.mxu0 %v2065_v1 }
  0x4d   : > { %1833 = vmatprep.subr.bf16.mxu1 %v2065_v1  ;;  %1827 = vmatprep.mubr.msk.bf16.mxu0 %vm2066_vm0, %v2065_v1 }
  0x4e   : > { %1847 = vmatprep.mubr.msk.bf16.mxu1 %vm2066_vm0, %v2065_v1 }
  0x4f   : > { %1814 = vmatpush3.bf16.msra.mxu0 %v1987_v37 }
  0x50   : > { %1834 = vmatpush3.bf16.msra.mxu1 %v1988_v38  ;;  %1815 = vmatprep.subr.bf16.mxu0 %v2065_v1 }
  0x51   : > { %1835 = vmatprep.subr.bf16.mxu1 %v2065_v1 }
  0x53   : > { %1816 = vmatpush3.bf16.msra.mxu0 %v1989_v39 }
  0x54   : > { %1836 = vmatpush3.bf16.msra.mxu1 %v1990_v40  ;;  %1817 = vmatprep.subr.bf16.mxu0 %v2065_v1 }
  0x55   : > { %1837 = vmatprep.subr.bf16.mxu1 %v2065_v1 }
  0x57   : > { %1818 = vmatpush3.bf16.msra.mxu0 %v1991_v41 }
  0x58   : > { %1838 = vmatpush3.bf16.msra.mxu1 %v1992_v42  ;;  %1819 = vmatprep.subr.bf16.mxu0 %v2065_v1 }
  0x59   : > { %1839 = vmatprep.subr.bf16.mxu1 %v2065_v1 }
  0x5b   : > { %1820 = vmatpush3.bf16.msra.mxu0 %v1993_v43 }
  0x5c   : > { %1840 = vmatpush3.bf16.msra.mxu1 %v1994_v44  ;;  %1821 = vmatprep.subr.bf16.mxu0 %v2065_v1 }
  0x5d   : > { %1841 = vmatprep.subr.bf16.mxu1 %v2065_v1 }
  0x5f   : > { %1822 = vmatpush3.bf16.msra.mxu0 %v1995_v45 }
  0x60   : > { %1842 = vmatpush3.bf16.msra.mxu1 %v1996_v46  ;;  %1823 = vmatprep.subr.bf16.mxu0 %v2065_v1 }
  0x61   : > { %1843 = vmatprep.subr.bf16.mxu1 %v2065_v1 }
  0x63   : > { %1824 = vmatpush3.bf16.msra.mxu0 %v1997_v47 }
  0x64   : > { %1844 = vmatpush3.bf16.msra.mxu1 %v1998_v48  ;;  %1825 = vmatprep.subr.bf16.mxu0 %v2065_v1 }
  0x65   : > { %1845 = vmatprep.subr.bf16.mxu1 %v2065_v1 }
  0x67   : > { %1826 = vmatpush3.bf16.msra.mxu0 %v1999_v49 }
  0x68   : > { %1846 = vmatpush3.bf16.msra.mxu1 %v2000_v50  ;;  %1851 = vmatprep.subr.bf16.mxu0 %v2065_v1 }
  0x69   : > { %1871 = vmatprep.subr.bf16.mxu1 %v2065_v1 }
  0x6a   : > { %1828 = vmatmul.mubr.bf16.vlgmr.msra.gmra.mrb[8].mxu0 %v655_v34 }
  0x6b   : > { %1848 = vmatmul.mubr.bf16.vlgmr.msra.gmra.mrb[8].mxu1 %v655_v34  ;;  %1852 = vmatpush3.bf16.msra.mxu0 %v2001_v51 }
  0x6c   : > { %1872 = vmatpush3.bf16.msra.mxu1 %v2002_v52  ;;  %1853 = vmatprep.subr.bf16.mxu0 %v2065_v1 }
  0x6d   : > { %1873 = vmatprep.subr.bf16.mxu1 %v2065_v1  ;;  %1867 = vmatprep.mubr.msk.bf16.mxu0 %vm2066_vm0, %v2065_v1 }
  0x6e   : > { %1887 = vmatprep.mubr.msk.bf16.mxu1 %vm2066_vm0, %v2065_v1 }
  0x6f   : > { %1854 = vmatpush3.bf16.msra.mxu0 %v2003_v53 }
  0x70   : > { %1874 = vmatpush3.bf16.msra.mxu1 %v2004_v54  ;;  %1855 = vmatprep.subr.bf16.mxu0 %v2065_v1 }
  0x71   : > { %1875 = vmatprep.subr.bf16.mxu1 %v2065_v1 }
  0x73   : > { %1856 = vmatpush3.bf16.msra.mxu0 %v2005_v55 }
  0x74   : > { %1876 = vmatpush3.bf16.msra.mxu1 %v2006_v56  ;;  %1857 = vmatprep.subr.bf16.mxu0 %v2065_v1 }
  0x75   : > { %1877 = vmatprep.subr.bf16.mxu1 %v2065_v1 }
  0x77   : > { %1858 = vmatpush3.bf16.msra.mxu0 %v2007_v57 }
  0x78   : > { %1878 = vmatpush3.bf16.msra.mxu1 %v2008_v58  ;;  %1859 = vmatprep.subr.bf16.mxu0 %v2065_v1 }
  0x79   : > { %1879 = vmatprep.subr.bf16.mxu1 %v2065_v1 }
  0x7b   : > { %1860 = vmatpush3.bf16.msra.mxu0 %v2009_v59  ;;  %v1647_v59 = vld [vmem:[%s2493_s4] ss:$0 sm:$0xff] }
  0x7c   : > { %1880 = vmatpush3.bf16.msra.mxu1 %v2010_v60  ;;  %1861 = vmatprep.subr.bf16.mxu0 %v2065_v1 }
  0x7d   : > { %1881 = vmatprep.subr.bf16.mxu1 %v2065_v1 }
  0x7f   : > { %1862 = vmatpush3.bf16.msra.mxu0 %v2011_v61 }
  0x80   : > { %1882 = vmatpush3.bf16.msra.mxu1 %v2012_v62  ;;  %1863 = vmatprep.subr.bf16.mxu0 %v2065_v1 }
  0x81   : > { %1883 = vmatprep.subr.bf16.mxu1 %v2065_v1 }
  0x83   : > { %1864 = vmatpush3.bf16.msra.mxu0 %v2013_v63 }
  0x84   : > { %1884 = vmatpush3.bf16.msra.mxu1 %v2014_v0  ;;  %1865 = vmatprep.subr.bf16.mxu0 %v2065_v1 }
  0x85   : > { %1885 = vmatprep.subr.bf16.mxu1 %v2065_v1 }
  0x87   : > { %1866 = vmatpush3.bf16.msra.mxu0 %v2015_v2 }
  0x88   : > { %1886 = vmatpush3.bf16.msra.mxu1 %v2016_v3  ;;  %1891 = vmatprep.subr.bf16.mxu0 %v2065_v1 }
  0x8a   : > { %1868 = vmatmul.mubr.bf16.vlgmr.msra.gmra.mrb[12].mxu0 %v980_v4 }
  0x8b   : > { %1888 = vmatmul.mubr.bf16.vlgmr.msra.gmra.mrb[12].mxu1 %v980_v4  ;;  %1892 = vmatpush3.bf16.msra.mxu0 %v2017_v5 }
  0x8c   : > { %1893 = vmatprep.subr.bf16.mxu0 %v2065_v1  ;;  %1907 = vmatprep.mubr.msk.bf16.mxu0 %vm2066_vm0, %v2065_v1 }
  0x8f   : > { %1894 = vmatpush3.bf16.msra.mxu0 %v2018_v6 }
  0x90   : > { %1895 = vmatprep.subr.bf16.mxu0 %v2065_v1 }
  0x93   : > { %1896 = vmatpush3.bf16.msra.mxu0 %v2019_v7 }
  0x94   : > { %1897 = vmatprep.subr.bf16.mxu0 %v2065_v1 }
  0x97   : > { %1898 = vmatpush3.bf16.msra.mxu0 %v2020_v8 }
  0x98   : > { %1899 = vmatprep.subr.bf16.mxu0 %v2065_v1 }
  0x9b   : > { %1900 = vmatpush3.bf16.msra.mxu0 %v2021_v9 }
  0x9c   : > { %1901 = vmatprep.subr.bf16.mxu0 %v2065_v1 }
  0x9f   : > { %1902 = vmatpush3.bf16.msra.mxu0 %v2022_v10 }
  0xa0   : > { %1903 = vmatprep.subr.bf16.mxu0 %v2065_v1 }
  0xa3   : > { %1904 = vmatpush3.bf16.msra.mxu0 %v2023_v11 }
  0xa4   : > { %1905 = vmatprep.subr.bf16.mxu0 %v2065_v1 }
  0xa7   : > { %1906 = vmatpush3.bf16.msra.mxu0 %v2024_v12 }
  0xaa   : > { %1908 = vmatmul.mubr.bf16.vlgmr.msra.gmra.mrb[16].mxu0 %v980_v4 }
  0xfd   : > { %v430_v13 = vpop.f32.mrb[0].mxu0 }
  0xfe   : > { %v536_v14 = vpop.f32.mrb[0].mxu1  ;;  %v1749_v15 = vpop.f32.mrb[1].mxu0 }
  0xff   : > { %v543_v16 = vrot.slane %v536_v14, 1  ;;  %v433_v17 = vpop.f32.mrb[2].mxu0  ;;  %v1769_v18 = vpop.f32.mrb[1].mxu1 }
 0x100   : > { %v1750_v19 = vpop.f32.mrb[3].mxu0  ;;  %v539_v20 = vpop.f32.mrb[2].mxu1 }
 0x101   : > { %v545_v21 = vadd.f32 %v543_v16, %v430_v13  ;;  %v1770_v22 = vpop.f32.mrb[3].mxu1 }
 0x11d   : > { %v645_v23 = vpop.f32.mrb[4].mxu0 }
 0x11e   : > { %v652_v24 = vrot.slane %v645_v23, 2  ;;  %v1789_v25 = vpop.f32.mrb[5].mxu0  ;;  %v755_v26 = vpop.f32.mrb[4].mxu1 }
 0x11f   : > { %v648_v27 = vpop.f32.mrb[6].mxu0  ;;  %v1809_v28 = vpop.f32.mrb[5].mxu1 }
 0x120   : > { %v1790_v29 = vpop.f32.mrb[7].mxu0  ;;  %v654_v1 = vadd.f32 %v652_v24, %v545_v21  ;;  %v758_v30 = vpop.f32.mrb[6].mxu1 }
 0x121   : > { %v1810_v31 = vpop.f32.mrb[7].mxu1 }
 0x122   : > { %v761_v32 = vadd.f32 %v755_v26, %v654_v1 }
 0x13d   : > { %v861_v33 = vpop.f32.mrb[8].mxu0 }
 0x13e   : > { %v868_v34 = vrot.slane %v861_v33, 1  ;;  %v1829_v35 = vpop.f32.mrb[9].mxu0  ;;  %v970_v36 = vpop.f32.mrb[8].mxu1 }
 0x13f   : > { %v864_v37 = vpop.f32.mrb[10].mxu0  ;;  %v977_v38 = vrot.slane %v970_v36, 2  ;;  %v1849_v39 = vpop.f32.mrb[9].mxu1 }
 0x140   : > { %v870_v40 = vadd.f32 %v868_v34, %v761_v32  ;;  %v1830_v41 = vpop.f32.mrb[11].mxu0  ;;  %v973_v42 = vpop.f32.mrb[10].mxu1 }
 0x141   : > { %v1850_v43 = vpop.f32.mrb[11].mxu1 }
 0x142   : > { %v979_v44 = vadd.f32 %v977_v38, %v870_v40 }
 0x15d   : > { %v1080_v45 = vpop.f32.mrb[12].mxu0 }
 0x15e   : > { %v1086_v46 = vadd.f32 %v1080_v45, %v979_v44  ;;  %v1186_v47 = vpop.f32.mrb[12].mxu1  ;;  %v1869_v48 = vpop.f32.mrb[13].mxu0 }
 0x15f   : > { %v1193_v49 = vrot.slane %v1186_v47, 1  ;;  %v1083_v50 = vpop.f32.mrb[14].mxu0  ;;  %v1889_v51 = vpop.f32.mrb[13].mxu1 }
 0x160   : > { %v1870_v52 = vpop.f32.mrb[15].mxu0  ;;  %v1189_v53 = vpop.f32.mrb[14].mxu1 }
 0x161   : > { %v1195_v54 = vadd.f32 %v1193_v49, %v1086_v46  ;;  %v1890_v55 = vpop.f32.mrb[15].mxu1 }
 0x17d   : > { %v1295_v56 = vpop.f32.mrb[16].mxu0 }
 0x17e   : > { %v1302_v57 = vrot.slane %v1295_v56, 2  ;;  %v1909_v58 = vpop.f32.mrb[17].mxu0 }
 0x17f   : > { %v1298_v60 = vpop.f32.mrb[18].mxu0 }
 0x180   : > { %v1304_v61 = vadd.f32 %v1302_v57, %v1195_v54  ;;  %v1910_v62 = vpop.f32.mrb[19].mxu0 }
 0x182   : > { %v1312_v63 = vadd.f32 %v1647_v59, %v1304_v61 }
 0x184   : > { %vm1313_vm1 = vcmp.gt.f32.partialorder %v1312_v63, 0.0  ;;  %v1314_v0 = vmul.f32 0.1, %v1312_v63 }
 0x186   : > { %v1315_v2 = vsel %vm1313_vm1, %v1312_v63, %v1314_v0 }
 0x187   : > { %v1316_v3 = vpack.c.bf16 %v1315_v2, %v1315_v2 }
 0x189   : > { %1318 = vst.msk [vmem:[%s329_s13] sm:$0x1] %vm1317_vm2, %v1316_v3 }
 0x18a PF: > { %s15_s22 = sadd.s32 1, %s2063_s22   ;;  %s2495_s18 = smov %s2055_s20 }
 0x18b   : > { %p12_p10 = scmp.ge.s32.totalorder %s15_s22, 6   ;;  %s2496_s19 = smov %s2059_s21 }
 0x18c   : > { %s2497_s20 = smov %s2500_s23  ;;  %s2498_s21 = smov %s2504_s24 }
 0x18d   :  { %14 = sbr.rel (!%p12_p10) target bundleno = 3 (0x3), region = 84 }

// kernel: unet1x3_forward.17
= control target key start
LH: loop header
LB: loop body
LE: loop exit
PB: predicated region body
PF: predicated region fallthrough
CT: control target
= control target key end

     0   :  { %v133_v0 = vmov 0.0   ;;  %vm134_vm0 = vmmov 0   ;;  %vm55_vm1 = vcmask 523264   ;;  %s176_s1 = inlined_call_operand.vmem [shape: bf16[64,128], index: 1, kind: input, shape index: {}]   ;;  %s177_s0 = inlined_call_operand.vmem [shape: bf16[8,64], index: 0, kind: input, shape index: {}]   ;;  %s178_s2 = inlined_call_operand.vmem [shape: f32[1,128], index: 2, kind: input, shape index: {}]   ;;  %s179_s3 = inlined_call_operand.vmem [shape: f32[8,128], index: 3, kind: output, shape index: {}]  }
   0x1   :  { %115 = vmatprep.subr.bf16.mxu0 %v133_v0  ;;  %v129_v1 = vld [vmem:[%s176_s1] sm:$0xff]   ;;  %123 = vmatprep.mubr.msk.bf16.mxu0 %vm134_vm0, %v133_v0  ;;  %v130_v2 = vld [vmem:[%s176_s1 + $0x8] sm:$0xff]   ;;  %v131_v3 = vld [vmem:[%s176_s1 + $0x10] sm:$0xff]  }
   0x2   :  { %116 = vmatpush3.bf16.msra.mxu0 %v129_v1  ;;  %v132_v4 = vld [vmem:[%s176_s1 + $0x18] sm:$0xff]   ;;  %v15_v5 = vld [vmem:[%s177_s0] sm:$0xf] }
   0x3   :  { %117 = vmatprep.subr.bf16.mxu0 %v133_v0  ;;  %v104_v6 = vld [vmem:[%s178_s2] ss:$0 sm:$0xff] }
   0x6   :  { %118 = vmatpush3.bf16.msra.mxu0 %v130_v2 }
   0x7   :  { %119 = vmatprep.subr.bf16.mxu0 %v133_v0 }
   0xa   :  { %120 = vmatpush3.bf16.msra.mxu0 %v131_v3 }
   0xb   :  { %121 = vmatprep.subr.bf16.mxu0 %v133_v0 }
   0xe   :  { %122 = vmatpush3.bf16.msra.mxu0 %v132_v4 }
  0x11   :  { %124 = vmatmul.mubr.msk.bf16.vlgmr.msra.gmra.mrb[0].mxu0 %vm55_vm1, %v15_v5 }
  0xe4   :  { %v93_v7 = vpop.f32.mrb[0].mxu0 }
  0xe5   :  { %v94_v8 = vadd.f32 %v104_v6, %v93_v7  ;;  %v125_v9 = vpop.f32.mrb[1].mxu0 }
  0xe6   :  { %v96_v10 = vpop.f32.mrb[2].mxu0 }
  0xe7   :  { %99 = vst [vmem:[%s179_s3] sm:$0xff] %v94_v8  ;;  %v126_v11 = vpop.f32.mrb[3].mxu0 }

// kernel: unet1x3_forward.16
= control target key start
LH: loop header
LB: loop body
LE: loop exit
PB: predicated region body
PF: predicated region fallthrough
CT: control target
= control target key end

     0   :  { %s1584_s18 = smov 0   ;;  %s1586_s19 = smov 0   ;;  %s1836_s0 = inlined_call_operand.vmem [shape: bf16[2,4,4,64], index: 0, kind: input, shape index: {}, may-alias: {0,1,2}]   ;;  %s1837_s1 = inlined_call_operand.vmem [shape: bf16[2,4,4,64], index: 1, kind: input, shape index: {}, may-alias: {0,1,2}]   ;;  %s1838_s2 = inlined_call_operand.vmem [shape: bf16[2,4,4,64], index: 2, kind: input, shape index: {}, may-alias: {0,1,2}]   ;;  %s1839_s3 = inlined_call_operand.vmem [shape: bf16[9,64,64], index: 3, kind: input, shape index: {}]   ;;  %s1840_s4 = inlined_call_operand.vmem [shape: f32[1,64], index: 4, kind: input, shape index: {}]   ;;  %s1841_s5 = inlined_call_operand.vmem [shape: bf16[2,2,2,64], index: 5, kind: output, shape index: {}]  }
   0x1   :  { %s1588_s20 = smov 0   ;;  %s1590_s21 = smov 0  }
   0x2   :  { %s1592_s22 = smov 0  }
   0x3 LB: > { %s24_s23 = sadd.s32 1, %s1542_s20  ;;  %s27_s24 = sadd.s32 1, %s1546_s21  ;;  %s1550_s22 = sphi %s1592_s22, %s15_s22   ;;  %s1546_s21 = sphi %s1590_s21, %s1845_s21   ;;  %s1542_s20 = sphi %s1588_s20, %s1844_s20   ;;  %s1538_s19 = sphi %s1586_s19, %s1843_s19   ;;  %s1534_s18 = sphi %s1584_s18, %s1842_s18  }
   0x4   : > { %p25_p0 = scmp.ge.s32.totalorder %s24_s23, 2  ;;  %p1161_p1 = scmp.ge.s32.totalorder %s1550_s22, 1 }
   0x5   : > { %p244_p2 = scmp.lt.s32.totalorder %s1550_s22, 5 }
   0x6   : > { %s1847_s23 = smov (%p25_p0, %s24_s23), 0  ;;  %s1849_s24 = smov (!%p25_p0, %s27_s24), %s1546_s21 }
   0x7   : > { %p245_p3 = pnand %p1161_p1, %p244_p2  ;;  %p29_p4 = scmp.ge.s32.totalorder %s1849_s24, 2 }
   0x8   : > { %v1476_v0 = vld [vmem:[%s1839_s3] sm:$0xff] (!%p245_p3)   ;;  %v1552_v1 = vmov (!%p245_p3), 0.0   ;;  %v1478_v3 = vld [vmem:[%s1839_s3 + $0x8] sm:$0xff] (!%p245_p3)   ;;  %vm1553_vm0 = vmmov (!%p245_p3), 0   ;;  %p295_p5 = scmp.lt.s32.totalorder (!%p245_p3), %s1538_s19, 1  ;;  %p297_p6 = scmp.lt.s32.totalorder (!%p245_p3), %s1534_s18, 3 }
   0x9   : > { %s1851_s24 = smov (%p29_p4, %s1849_s24), 0  ;;  %248 = sbr.rel (%p245_p3) target bundleno = 314 (0x13a), region = 40 }
   0xa   : > { %1326 = vmatprep.subr.bf16.mxu0 (!%p245_p3), %v1552_v1  ;;  %1338 = vmatprep.subr.bf16.mxu1 (!%p245_p3), %v1552_v1  ;;  %v1477_v2 = vld [vmem:[%s1839_s3 + $0x20] sm:$0xff] (!%p245_p3)   ;;  %v1479_v4 = vld [vmem:[%s1839_s3 + $0x28] sm:$0xff] (!%p245_p3)   ;;  %v1480_v5 = vld [vmem:[%s1839_s3 + $0x10] sm:$0xff] (!%p245_p3)   ;;  %s303_s30 = sadd.s32 (!%p245_p3), 1, %s1534_s18  ;;  %vm364_vm1 = vcmask (!%p245_p3), 523264   ;;  %s313_s7 = sadd.s32 (!%p245_p3), 2, %s1534_s18 }
   0xb   : > { %1327 = vmatpush3.bf16.msra.mxu0 (!%p245_p3), %v1476_v0  ;;  %1334 = vmatprep.mubr.msk.bf16.mxu0 (!%p245_p3), %vm1553_vm0, %v1552_v1  ;;  %v1481_v6 = vld [vmem:[%s1839_s3 + $0x30] sm:$0xff] (!%p245_p3)   ;;  %v1482_v7 = vld [vmem:[%s1839_s3 + $0x18] sm:$0xff] (!%p245_p3)   ;;  %v1484_v10 = vld [vmem:[%s1839_s3 + $0x40] sm:$0xff] (!%p245_p3)   ;;  %p306_p7 = scmp.lt.s32.totalorder (!%p245_p3), %s303_s30, 3  ;;  %p316_p8 = scmp.lt.s32.totalorder (!%p245_p3), %s313_s7, 3  ;;  %vm1039_vm3 = vcmask (!%p245_p3), 516096  }
   0xc   : > { %1339 = vmatpush3.bf16.msra.mxu1 (!%p245_p3), %v1477_v2  ;;  %1328 = vmatprep.subr.bf16.mxu0 (!%p245_p3), %v1552_v1  ;;  %v1483_v8 = vld [vmem:[%s1839_s3 + $0x38] sm:$0xff] (!%p245_p3)   ;;  %v1485_v11 = vld [vmem:[%s1839_s3 + $0x60] sm:$0xff] (!%p245_p3)   ;;  %v1486_v12 = vld [vmem:[%s1839_s3 + $0x48] sm:$0xff] (!%p245_p3)   ;;  %p325_p9 = scmp.lt.s32.totalorder (!%p245_p3), %s1534_s18, 1 }
   0xd   : > { %1340 = vmatprep.subr.bf16.mxu1 (!%p245_p3), %v1552_v1  ;;  %1346 = vmatprep.mubr.msk.bf16.mxu1 (!%p245_p3), %vm1553_vm0, %v1552_v1  ;;  %v1487_v13 = vld [vmem:[%s1839_s3 + $0x68] sm:$0xff] (!%p245_p3)   ;;  %v1488_v14 = vld [vmem:[%s1839_s3 + $0x50] sm:$0xff] (!%p245_p3)   ;;  %v1490_v16 = vld [vmem:[%s1839_s3 + $0x58] sm:$0xff] (!%p245_p3)  }
   0xe   : > { %v1489_v15 = vld [vmem:[%s1839_s3 + $0x70] sm:$0xff] (!%p245_p3)   ;;  %v1491_v17 = vld [vmem:[%s1839_s3 + $0x78] sm:$0xff] (!%p245_p3)   ;;  %v1492_v18 = vld [vmem:[%s1839_s3 + $0x80] sm:$0xff] (!%p245_p3)  }
   0xf   : > { %1329 = vmatpush3.bf16.msra.mxu0 (!%p245_p3), %v1478_v3  ;;  %v1493_v19 = vld [vmem:[%s1839_s3 + $0xa0] sm:$0xff] (!%p245_p3)   ;;  %v1494_v21 = vld [vmem:[%s1839_s3 + $0x88] sm:$0xff] (!%p245_p3)   ;;  %v1496_v23 = vld [vmem:[%s1839_s3 + $0x90] sm:$0xff] (!%p245_p3)  }
  0x10   : > { %s1853_s19 = smov (!%p295_p5, %s1538_s19), 1  ;;  %1341 = vmatpush3.bf16.msra.mxu1 %v1479_v4  ;;  %1330 = vmatprep.subr.bf16.mxu0 %v1552_v1  ;;  %s1855_s30 = smov (!%p306_p7, %s303_s30), 3  ;;  %v1495_v22 = vld [vmem:[%s1839_s3 + $0xa8] sm:$0xff]   ;;  %v1497_v24 = vld [vmem:[%s1839_s3 + $0xb0] sm:$0xff]   ;;  %v1498_v25 = vld [vmem:[%s1839_s3 + $0x98] sm:$0xff]  }
  0x11   : > { %s298_s8 = scalar_select %p297_p6, %s1534_s18, 3  ;;  %1342 = vmatprep.subr.bf16.mxu1 %v1552_v1  ;;  %v1499_v26 = vld [vmem:[%s1839_s3 + $0xb8] sm:$0xff]   ;;  %v1500_v27 = vld [vmem:[%s1839_s3 + $0xc0] sm:$0xff]   ;;  %v1502_v29 = vld [vmem:[%s1839_s3 + $0xc8] sm:$0xff]  }
  0x12   : > { %s1648_s11 = sshll.u32 %s1853_s19, 2  ;;  %v1501_v28 = vld [vmem:[%s1839_s3 + $0xe0] sm:$0xff]   ;;  %s1857_s7 = smov (!%p316_p8, %s313_s7), 3  ;;  %v1503_v30 = vld [vmem:[%s1839_s3 + $0xe8] sm:$0xff]   ;;  %v1504_v31 = vld [vmem:[%s1839_s3 + $0xd0] sm:$0xff]  }
  0x13   : > { %s300_s14 = sadd.s32 %s1648_s11, %s298_s8  ;;  %1331 = vmatpush3.bf16.msra.mxu0 %v1480_v5  ;;  %s309_s17 = sadd.s32 %s1648_s11, %s1855_s30  ;;  %v1505_v32 = vld [vmem:[%s1839_s3 + $0xf0] sm:$0xff]   ;;  %v1506_v33 = vld [vmem:[%s1839_s3 + $0xd8] sm:$0xff]   ;;  %v1508_v36 = vld [vmem:[%s1839_s3 + $0x100] sm:$0xff]  }
  0x14   : > { %s1163_s15 = sshll.u32 %s300_s14, 1  ;;  %1343 = vmatpush3.bf16.msra.mxu1 %v1481_v6  ;;  %1332 = vmatprep.subr.bf16.mxu0 %v1552_v1  ;;  %s319_s26 = sadd.s32 %s1648_s11, %s1857_s7  ;;  %v1507_v34 = vld [vmem:[%s1839_s3 + $0xf8] sm:$0xff]   ;;  %v1509_v37 = vld [vmem:[%s1839_s3 + $0x108] sm:$0xff]   ;;  %v1510_v38 = vld [vmem:[%s1839_s3 + $0x110] sm:$0xff]  }
  0x15   : > { %s302_s27 = scalar_lea.vmem %s1836_s0, %s1163_s15  ;;  %1344 = vmatprep.subr.bf16.mxu1 %v1552_v1  ;;  %s1167_s30 = sshll.u32 %s319_s26, 1  ;;  %v1511_v39 = vld [vmem:[%s1839_s3 + $0x118] sm:$0xff]  }
  0x16   : > { %v331_v9 = vld [vmem:[%s302_s27] sm:$0x3]  ;;  %s1165_s27 = sshll.u32 %s309_s17, 1  ;;  %s321_s13 = scalar_lea.vmem %s1838_s2, %s1167_s30 }
  0x17   : > { %1333 = vmatpush3.bf16.msra.mxu0 %v1482_v7  ;;  %s311_s9 = scalar_lea.vmem %s1837_s1, %s1165_s27  ;;  %v795_v35 = vld [vmem:[%s321_s13] sm:$0x3]  ;;  %s1859_s18 = smov (!%p325_p9, %s1534_s18), 1 }
  0x18   : > { %1345 = vmatpush3.bf16.msra.mxu1 %v1483_v8  ;;  %1350 = vmatprep.subr.bf16.mxu0 %v1552_v1  ;;  %v563_v20 = vld [vmem:[%s311_s9] sm:$0x3]  ;;  %s1168_s30 = sshll.u32 %s1853_s19, 1 }
  0x19   : > { %1362 = vmatprep.subr.bf16.mxu1 %v1552_v1  ;;  %s328_s8 = sadd.s32 %s1168_s30, %s1859_s18 }
  0x1a   : > { %1335 = vmatmul.mubr.msk.bf16.vlgmr.msra.gmra.mrb[0].mxu0 %vm364_vm1, %v331_v9  ;;  %s329_s7 = scalar_lea.vmem %s1841_s5, %s328_s8 }
  0x1b   : > { %1347 = vmatmul.mubr.msk.bf16.vlgmr.msra.gmra.mrb[0].mxu1 %vm364_vm1, %v331_v9  ;;  %1351 = vmatpush3.bf16.msra.mxu0 %v1484_v10 }
  0x1c   : > { %1363 = vmatpush3.bf16.msra.mxu1 %v1485_v11  ;;  %1352 = vmatprep.subr.bf16.mxu0 %v1552_v1 }
  0x1d   : > { %1364 = vmatprep.subr.bf16.mxu1 %v1552_v1  ;;  %1358 = vmatprep.mubr.msk.bf16.mxu0 %vm1553_vm0, %v1552_v1 }
  0x1e   : > { %1370 = vmatprep.mubr.msk.bf16.mxu1 %vm1553_vm0, %v1552_v1 }
  0x1f   : > { %1353 = vmatpush3.bf16.msra.mxu0 %v1486_v12 }
  0x20   : > { %1365 = vmatpush3.bf16.msra.mxu1 %v1487_v13  ;;  %1354 = vmatprep.subr.bf16.mxu0 %v1552_v1 }
  0x21   : > { %1366 = vmatprep.subr.bf16.mxu1 %v1552_v1 }
  0x23   : > { %1355 = vmatpush3.bf16.msra.mxu0 %v1488_v14 }
  0x24   : > { %1367 = vmatpush3.bf16.msra.mxu1 %v1489_v15  ;;  %1356 = vmatprep.subr.bf16.mxu0 %v1552_v1 }
  0x25   : > { %1368 = vmatprep.subr.bf16.mxu1 %v1552_v1 }
  0x27   : > { %1357 = vmatpush3.bf16.msra.mxu0 %v1490_v16 }
  0x28   : > { %1369 = vmatpush3.bf16.msra.mxu1 %v1491_v17  ;;  %1374 = vmatprep.subr.bf16.mxu0 %v1552_v1 }
  0x29   : > { %1386 = vmatprep.subr.bf16.mxu1 %v1552_v1 }
  0x2a   : > { %1359 = vmatmul.mubr.msk.bf16.vlgmr.msra.gmra.mrb[4].mxu0 %vm364_vm1, %v331_v9 }
  0x2b   : > { %1371 = vmatmul.mubr.msk.bf16.vlgmr.msra.gmra.mrb[4].mxu1 %vm364_vm1, %v563_v20  ;;  %1375 = vmatpush3.bf16.msra.mxu0 %v1492_v18 }
  0x2c   : > { %1387 = vmatpush3.bf16.msra.mxu1 %v1493_v19  ;;  %1376 = vmatprep.subr.bf16.mxu0 %v1552_v1 }
  0x2d   : > { %1388 = vmatprep.subr.bf16.mxu1 %v1552_v1  ;;  %1382 = vmatprep.mubr.msk.bf16.mxu0 %vm1553_vm0, %v1552_v1 }
  0x2e   : > { %1394 = vmatprep.mubr.msk.bf16.mxu1 %vm1553_vm0, %v1552_v1 }
  0x2f   : > { %1377 = vmatpush3.bf16.msra.mxu0 %v1494_v21 }
  0x30   : > { %1389 = vmatpush3.bf16.msra.mxu1 %v1495_v22  ;;  %1378 = vmatprep.subr.bf16.mxu0 %v1552_v1 }
  0x31   : > { %1390 = vmatprep.subr.bf16.mxu1 %v1552_v1 }
  0x33   : > { %1379 = vmatpush3.bf16.msra.mxu0 %v1496_v23  ;;  %v1278_v23 = vld [vmem:[%s1840_s4] ss:$0 sm:$0xff] }
  0x34   : > { %1391 = vmatpush3.bf16.msra.mxu1 %v1497_v24  ;;  %1380 = vmatprep.subr.bf16.mxu0 %v1552_v1 }
  0x35   : > { %1392 = vmatprep.subr.bf16.mxu1 %v1552_v1 }
  0x37   : > { %1381 = vmatpush3.bf16.msra.mxu0 %v1498_v25 }
  0x38   : > { %1393 = vmatpush3.bf16.msra.mxu1 %v1499_v26  ;;  %1398 = vmatprep.subr.bf16.mxu0 %v1552_v1 }
  0x39   : > { %1410 = vmatprep.subr.bf16.mxu1 %v1552_v1 }
  0x3a   : > { %1383 = vmatmul.mubr.msk.bf16.vlgmr.msra.gmra.mrb[8].mxu0 %vm364_vm1, %v563_v20 }
  0x3b   : > { %1395 = vmatmul.mubr.msk.bf16.vlgmr.msra.gmra.mrb[8].mxu1 %vm364_vm1, %v563_v20  ;;  %1399 = vmatpush3.bf16.msra.mxu0 %v1500_v27 }
  0x3c   : > { %1411 = vmatpush3.bf16.msra.mxu1 %v1501_v28  ;;  %1400 = vmatprep.subr.bf16.mxu0 %v1552_v1 }
  0x3d   : > { %1412 = vmatprep.subr.bf16.mxu1 %v1552_v1  ;;  %1406 = vmatprep.mubr.msk.bf16.mxu0 %vm1553_vm0, %v1552_v1 }
  0x3e   : > { %1418 = vmatprep.mubr.msk.bf16.mxu1 %vm1553_vm0, %v1552_v1 }
  0x3f   : > { %1401 = vmatpush3.bf16.msra.mxu0 %v1502_v29 }
  0x40   : > { %1413 = vmatpush3.bf16.msra.mxu1 %v1503_v30  ;;  %1402 = vmatprep.subr.bf16.mxu0 %v1552_v1 }
  0x41   : > { %1414 = vmatprep.subr.bf16.mxu1 %v1552_v1 }
  0x43   : > { %1403 = vmatpush3.bf16.msra.mxu0 %v1504_v31 }
  0x44   : > { %1415 = vmatpush3.bf16.msra.mxu1 %v1505_v32  ;;  %1404 = vmatprep.subr.bf16.mxu0 %v1552_v1 }
  0x45   : > { %1416 = vmatprep.subr.bf16.mxu1 %v1552_v1 }
  0x47   : > { %1405 = vmatpush3.bf16.msra.mxu0 %v1506_v33 }
  0x48   : > { %1417 = vmatpush3.bf16.msra.mxu1 %v1507_v34  ;;  %1422 = vmatprep.subr.bf16.mxu0 %v1552_v1 }
  0x4a   : > { %1407 = vmatmul.mubr.msk.bf16.vlgmr.msra.gmra.mrb[12].mxu0 %vm364_vm1, %v795_v35 }
  0x4b   : > { %1419 = vmatmul.mubr.msk.bf16.vlgmr.msra.gmra.mrb[12].mxu1 %vm364_vm1, %v795_v35  ;;  %1423 = vmatpush3.bf16.msra.mxu0 %v1508_v36 }
  0x4c   : > { %1424 = vmatprep.subr.bf16.mxu0 %v1552_v1  ;;  %1430 = vmatprep.mubr.msk.bf16.mxu0 %vm1553_vm0, %v1552_v1 }
  0x4f   : > { %1425 = vmatpush3.bf16.msra.mxu0 %v1509_v37 }
  0x50   : > { %1426 = vmatprep.subr.bf16.mxu0 %v1552_v1 }
  0x53   : > { %1427 = vmatpush3.bf16.msra.mxu0 %v1510_v38 }
  0x54   : > { %1428 = vmatprep.subr.bf16.mxu0 %v1552_v1 }
  0x57   : > { %1429 = vmatpush3.bf16.msra.mxu0 %v1511_v39 }
  0x5a   : > { %1431 = vmatmul.mubr.msk.bf16.vlgmr.msra.gmra.mrb[16].mxu0 %vm364_vm1, %v795_v35 }
  0xed   : > { %v402_v40 = vpop.f32.mrb[0].mxu0 }
  0xee   : > { %v476_v41 = vpop.f32.mrb[0].mxu1  ;;  %v1336_v42 = vpop.f32.mrb[1].mxu0 }
  0xef   : > { %v483_v43 = vrot.slane %v476_v41, 1  ;;  %v405_v44 = vpop.f32.mrb[2].mxu0  ;;  %v1348_v45 = vpop.f32.mrb[1].mxu1 }
  0xf0   : > { %v1337_v46 = vpop.f32.mrb[3].mxu0  ;;  %v479_v47 = vpop.f32.mrb[2].mxu1 }
  0xf1   : > { %v485_v48 = vadd.f32 %v483_v43, %v402_v40  ;;  %v1349_v49 = vpop.f32.mrb[3].mxu1 }
  0xfd   : > { %v553_v50 = vpop.f32.mrb[4].mxu0 }
  0xfe   : > { %v560_v51 = vrot.slane %v553_v50, 2  ;;  %v1360_v52 = vpop.f32.mrb[5].mxu0  ;;  %v634_v53 = vpop.f32.mrb[4].mxu1 }
  0xff   : > { %v556_v54 = vpop.f32.mrb[6].mxu0  ;;  %v1372_v55 = vpop.f32.mrb[5].mxu1 }
 0x100   : > { %v1361_v56 = vpop.f32.mrb[7].mxu0  ;;  %v562_v57 = vadd.f32 %v560_v51, %v485_v48  ;;  %v637_v58 = vpop.f32.mrb[6].mxu1 }
 0x101   : > { %v1373_v59 = vpop.f32.mrb[7].mxu1 }
 0x102   : > { %v640_v60 = vadd.f32 %v634_v53, %v562_v57 }
 0x10d   : > { %v708_v61 = vpop.f32.mrb[8].mxu0 }
 0x10e   : > { %v715_v62 = vrot.slane %v708_v61, 1  ;;  %v1384_v63 = vpop.f32.mrb[9].mxu0  ;;  %v785_v0 = vpop.f32.mrb[8].mxu1 }
 0x10f   : > { %v711_v1 = vpop.f32.mrb[10].mxu0  ;;  %v792_v2 = vrot.slane %v785_v0, 2  ;;  %v1396_v3 = vpop.f32.mrb[9].mxu1 }
 0x110   : > { %v717_v4 = vadd.f32 %v715_v62, %v640_v60  ;;  %v1385_v5 = vpop.f32.mrb[11].mxu0  ;;  %v788_v6 = vpop.f32.mrb[10].mxu1 }
 0x111   : > { %v1397_v7 = vpop.f32.mrb[11].mxu1 }
 0x112   : > { %v794_v8 = vadd.f32 %v792_v2, %v717_v4 }
 0x11d   : > { %v866_v9 = vpop.f32.mrb[12].mxu0 }
 0x11e   : > { %v872_v10 = vadd.f32 %v866_v9, %v794_v8  ;;  %v940_v11 = vpop.f32.mrb[12].mxu1  ;;  %v1408_v12 = vpop.f32.mrb[13].mxu0 }
 0x11f   : > { %v947_v13 = vrot.slane %v940_v11, 1  ;;  %v869_v14 = vpop.f32.mrb[14].mxu0  ;;  %v1420_v15 = vpop.f32.mrb[13].mxu1 }
 0x120   : > { %v1409_v16 = vpop.f32.mrb[15].mxu0  ;;  %v943_v17 = vpop.f32.mrb[14].mxu1 }
 0x121   : > { %v949_v18 = vadd.f32 %v947_v13, %v872_v10  ;;  %v1421_v19 = vpop.f32.mrb[15].mxu1 }
 0x12d   : > { %v1017_v20 = vpop.f32.mrb[16].mxu0 }
 0x12e   : > { %v1024_v21 = vrot.slane %v1017_v20, 2  ;;  %v1432_v22 = vpop.f32.mrb[17].mxu0 }
 0x12f   : > { %v1020_v24 = vpop.f32.mrb[18].mxu0 }
 0x130   : > { %v1026_v25 = vadd.f32 %v1024_v21, %v949_v18  ;;  %v1433_v26 = vpop.f32.mrb[19].mxu0 }
 0x132   : > { %v1034_v27 = vadd.f32 %v1278_v23, %v1026_v25 }
 0x134   : > { %vm1035_vm2 = vcmp.gt.f32.partialorder %v1034_v27, 0.0  ;;  %v1036_v28 = vmul.f32 0.1, %v1034_v27 }
 0x136   : > { %v1037_v29 = vsel %vm1035_vm2, %v1034_v27, %v1036_v28 }
 0x137   : > { %v1038_v30 = vpack.c.bf16 %v1037_v29, %v1037_v29 }
 0x139   : > { %1040 = vst.msk [vmem:[%s329_s7] sm:$0x1] %vm1039_vm3, %v1038_v30 }
 0x13a PF: > { %s15_s22 = sadd.s32 1, %s1550_s22   ;;  %s1842_s18 = smov %s1542_s20 }
 0x13b   : > { %p12_p10 = scmp.ge.s32.totalorder %s15_s22, 6   ;;  %s1843_s19 = smov %s1546_s21 }
 0x13c   : > { %s1844_s20 = smov %s1847_s23  ;;  %s1845_s21 = smov %s1851_s24 }
 0x13d   :  { %14 = sbr.rel (!%p12_p10) target bundleno = 3 (0x3), region = 84 }

</bundles_post_ra>
